<compile_context>
chip_gen: v6e
topology: v6e:2x2x1
jax: 0.10.0
libtpu: 0.0.40
codegen_flags: <defaults>
</compile_context>

<pallas_src>
import functools

import jax
import jax.numpy as jnp
from jax.experimental import pallas as pl
from jax.experimental.pallas import tpu as pltpu


BLOCK_SIZE = 32
B2 = BLOCK_SIZE * BLOCK_SIZE  # 1024


def _round_up(n, m):
    return (n + m - 1) // m * m


def _lsm_recon_kernel(x_ref, w_ref, o_ref):
    # x_ref: (tm, 1024) flattened patches
    # w_ref: (1024, 1024) fused weight (W_i @ W_s).T, resident across the grid
    # o_ref: (tm, 1024) reconstructed patches
    o_ref[...] = jnp.dot(
        x_ref[...], w_ref[...], preferred_element_type=jnp.float32
    ).astype(o_ref.dtype)


def lsm_ini_recon_pallas(x_blocks, w_eff, *, row_tile=256):
    """x_blocks: (N, 1024) f32; w_eff: (1024, 1024) f32 -> (N, 1024) f32."""
    N, feat = x_blocks.shape
    assert feat == B2 and w_eff.shape == (B2, B2)

    # Row tile: multiple of 8 (sublane aligned); cap at the padded row count for small N.
    tm = min(row_tile, _round_up(N, 8))
    n_pad = _round_up(N, tm)
    if n_pad != N:
        x_blocks = jnp.pad(x_blocks, ((0, n_pad - N), (0, 0)))

    y = pl.pallas_call(
        _lsm_recon_kernel,
        out_shape=jax.ShapeDtypeStruct((n_pad, B2), jnp.float32),
        grid_spec=pltpu.PrefetchScalarGridSpec(
            num_scalar_prefetch=0,
            grid=(n_pad // tm,),
            in_specs=[
                pl.BlockSpec((tm, B2), lambda i: (i, 0)),   # patch row tile
                pl.BlockSpec((B2, B2), lambda i: (0, 0)),   # fused weight (resident)
            ],
            out_specs=pl.BlockSpec((tm, B2), lambda i: (i, 0)),
        ),
        compiler_params=pltpu.CompilerParams(
            dimension_semantics=("parallel",)),
    )(x_blocks, w_eff)

    return y[:N] if n_pad != N else y


def image_crop(x):
    """(nb, 1, H, L) -> (nb*num_patches, 1024), patches in row-major block order."""
    nb, nc, H, L = x.shape
    nh, nw = H // BLOCK_SIZE, L // BLOCK_SIZE
    y = x.reshape(nb, nc, nh, BLOCK_SIZE, nw, BLOCK_SIZE)
    y = y.transpose(0, 2, 4, 1, 3, 5)                 # (nb, nh, nw, nc, 32, 32)
    return y.reshape(nb * nh * nw, nc * B2)


def image_reshape(y_flat, nb, H, L):
    """(nb*num_patches, 1024) -> (nb, 1, H, L), inverse of the block crop."""
    nh, nw = H // BLOCK_SIZE, L // BLOCK_SIZE
    y = y_flat.reshape(nb, nh, nw, 1, BLOCK_SIZE, BLOCK_SIZE)
    y = y.transpose(0, 3, 1, 4, 2, 5)                 # (nb, 1, nh, 32, nw, 32)
    return y.reshape(nb, 1, H, L)


@functools.partial(jax.jit, static_argnames=("row_tile",))
def lsm_ini_recon_forward(x, w_sampling_conv, w_init_conv, *, row_tile=256):
    """
    x              : (nb, 1, H, L) float32 (NCHW, like the PyTorch module)
    w_sampling_conv: (SP, 1, 32, 32)  -- Conv2d(1, SP, 32, stride=32) weight
    w_init_conv    : (1024, SP, 1, 1) -- Conv2d(SP, 1024, 1) weight
    returns        : (nb, 1, H, L) float32
    """
    nb, nc, H, L = x.shape
    assert nc == 1
    SP = w_sampling_conv.shape[0]
    ws = w_sampling_conv.reshape(SP, B2)              # (SP, 1024)
    wi = w_init_conv.reshape(B2, SP)                  # (1024, SP)
    # Fuse the two convs once (outside the kernel):
    #   recon = x_blk @ W_s.T @ W_i.T = x_blk @ (W_i @ W_s).T
    w_eff = jnp.dot(wi, ws, precision=jax.lax.Precision.HIGHEST).T   # (1024, 1024)

    x_blocks = image_crop(x)                                          # (N, 1024)
    y_blocks = lsm_ini_recon_pallas(x_blocks, w_eff, row_tile=row_tile)
    return image_reshape(y_blocks, nb, H, L)


if __name__ == "__main__":
    key = jax.random.PRNGKey(0)
    k_x, k_ws, k_wi = jax.random.split(key, 3)

    # Small shapes consistent with the module: single-channel image, H, L multiples of 32.
    nb, H, L = 2, 128, 128            # -> 32 blocks of 32x32
    SamplingPoints = 32

    x = jax.random.normal(k_x, (nb, 1, H, L), dtype=jnp.float32)

    # sampling weight: normal(mean=0, std=0.028), same as nn.init.normal_ in the module
    w_sampling = 0.028 * jax.random.normal(
        k_ws, (SamplingPoints, 1, BLOCK_SIZE, BLOCK_SIZE), dtype=jnp.float32)
    # init_bl weight: uniform in [-1/sqrt(fan_in), 1/sqrt(fan_in)] (PyTorch default scale)
    bound = 1.0 / (SamplingPoints ** 0.5)
    w_init = jax.random.uniform(
        k_wi, (B2, SamplingPoints, 1, 1), dtype=jnp.float32,
        minval=-bound, maxval=bound)

    # Default (large-tile) path: tm caps at the row count for this small example.
    y = lsm_ini_recon_forward(x, w_sampling, w_init)
    y = jax.block_until_ready(y)
    assert y.shape == (nb, 1, H, L) and y.dtype == jnp.float32

    # Multi-step grid + padding path (N=32 rows, tile=24 -> padded to 48, grid=(2,)).
    y_tiled = lsm_ini_recon_forward(x, w_sampling, w_init, row_tile=24)
    y_tiled = jax.block_until_ready(y_tiled)
    assert y_tiled.shape == (nb, 1, H, L)

    # Reference: the module's two-conv math in plain JAX (full precision matmuls).
    xb = image_crop(x)
    meas = jnp.dot(xb, w_sampling.reshape(SamplingPoints, B2).T,
                   precision=jax.lax.Precision.HIGHEST)
    ref_blocks = jnp.dot(meas, w_init.reshape(B2, SamplingPoints).T,
                         precision=jax.lax.Precision.HIGHEST)
    ref = image_reshape(ref_blocks, nb, H, L)

    assert jnp.allclose(y, ref, atol=1e-4, rtol=1e-4)
    assert jnp.allclose(y_tiled, ref, atol=1e-4, rtol=1e-4)

    print("KERNEL_OK")
</pallas_src>

<mosaic_0001>
module attributes {stable_mosaic.version = 11 : i64} {
  func.func @_lsm_recon_kernel(%arg0: i32, %arg1: memref<32x1024xf32, #tpu.memory_space<vmem>>, %arg2: memref<1024x1024xf32, #tpu.memory_space<vmem>>, %arg3: memref<32x1024xf32, #tpu.memory_space<vmem>>) attributes {dimension_semantics = [#tpu.dimension_semantics<parallel>], iteration_bounds = array<i64: 1>, scalar_prefetch = 0 : i64, scratch_operands = 0 : i64, tpu.core_type = #tpu.core_type<tc>, window_params = [{transform_indices = @transform_0, window_bounds = array<i64: 32, 1024>}, {pipeline_mode = #tpu.pipeline_mode<synchronous>, transform_indices = @transform_1, window_bounds = array<i64: 1024, 1024>}, {transform_indices = @transform_2, window_bounds = array<i64: 32, 1024>}]} {
    %c0 = arith.constant 0 : index
    %c0_0 = arith.constant 0 : index
    %0 = vector.load %arg1[%c0, %c0_0] : memref<32x1024xf32, #tpu.memory_space<vmem>>, vector<32x1024xf32>
    %c0_1 = arith.constant 0 : index
    %c0_2 = arith.constant 0 : index
    %1 = vector.load %arg2[%c0_1, %c0_2] : memref<1024x1024xf32, #tpu.memory_space<vmem>>, vector<1024x1024xf32>
    %cst = arith.constant dense<0.000000e+00> : vector<32x1024xf32>
    %2 = tpu.matmul %0, %1, %cst {dimension_numbers = #tpu.dot_dimension_numbers<[1], [0], [0], [1], [0, 0, 1, 1], [], []>} : vector<32x1024xf32>, vector<1024x1024xf32>, vector<32x1024xf32> -> vector<32x1024xf32>
    %c0_3 = arith.constant 0 : index
    %c0_4 = arith.constant 0 : index
    %3 = vector.load %arg3[%c0_3, %c0_4] : memref<32x1024xf32, #tpu.memory_space<vmem>>, vector<32x1024xf32>
    tpu.vector_store %arg3[%c0_3, %c0_4], %2 {strides = array<i32>} : memref<32x1024xf32, #tpu.memory_space<vmem>>, vector<32x1024xf32>,
    return
  }
  func.func @transform_0(%arg0: i32) -> (i32, i32) {
    %c0_i32 = arith.constant 0 : i32
    %c0_i32_0 = arith.constant 0 : i32
    return %arg0, %c0_i32 : i32, i32
  }
  func.func @transform_1(%arg0: i32) -> (i32, i32) {
    %c0_i32 = arith.constant 0 : i32
    %c0_i32_0 = arith.constant 0 : i32
    %c0_i32_1 = arith.constant 0 : i32
    return %c0_i32, %c0_i32_0 : i32, i32
  }
  func.func @transform_2(%arg0: i32) -> (i32, i32) {
    %c0_i32 = arith.constant 0 : i32
    %c0_i32_0 = arith.constant 0 : i32
    return %arg0, %c0_i32 : i32, i32
  }
}

</mosaic_0001>

<bundles_post_ra>
// kernel: lsm_ini_recon_forward.1
= control target key start
LH: loop header
LB: loop body
LE: loop exit
PB: predicated region body
PF: predicated region fallthrough
CT: control target
= control target key end

     0   :  { %s6286_s1 = inlined_call_operand.vmem [shape: f32[1024,1024], index: 1, kind: input, shape index: {}]   ;;  %s6287_s0 = inlined_call_operand.vmem [shape: f32[32,1024], index: 0, kind: input, shape index: {}]   ;;  %s6288_s2 = inlined_call_operand.vmem [shape: f32[32,1024], index: 2, kind: output, shape index: {}]  }
   0x1   :  { %v164_v0 = vld [vmem:[%s6286_s1 + $0x3c8] sm:$0xff]  ;;  %v163_v2 = vld [vmem:[%s6286_s1 + $0x3c0] sm:$0xff] }
   0x2   :  { %v420_v1 = vld [vmem:[%s6286_s1 + $0xbc8] sm:$0xff]  ;;  %1067 = vmatprep.subr.mxu0 %v164_v0  ;;  %v419_v3 = vld [vmem:[%s6286_s1 + $0xbc0] sm:$0xff] }
   0x3   :  { %1156 = vmatprep.subr.mxu1 %v420_v1  ;;  %v156_v4 = vld [vmem:[%s6286_s1 + $0x388] sm:$0xff]  ;;  %1068 = vmatpush1.msra.mxu0 %v163_v2  ;;  %v155_v6 = vld [vmem:[%s6286_s1 + $0x380] sm:$0xff] }
   0x4   :  { %v412_v5 = vld [vmem:[%s6286_s1 + $0xb88] sm:$0xff]  ;;  %1157 = vmatpush1.msra.mxu1 %v419_v3  ;;  %v411_v7 = vld [vmem:[%s6286_s1 + $0xb80] sm:$0xff]  ;;  %1069 = vmatprep.subr.mxu0 %v156_v4 }
   0x5   :  { %v148_v8 = vld [vmem:[%s6286_s1 + $0x348] sm:$0xff]  ;;  %1158 = vmatprep.subr.mxu1 %v412_v5  ;;  %v147_v10 = vld [vmem:[%s6286_s1 + $0x340] sm:$0xff]  ;;  %1070 = vmatpush1.msra.mxu0 %v155_v6 }
   0x6   :  { %v404_v9 = vld [vmem:[%s6286_s1 + $0xb48] sm:$0xff]  ;;  %v403_v11 = vld [vmem:[%s6286_s1 + $0xb40] sm:$0xff]  ;;  %1159 = vmatpush1.msra.mxu1 %v411_v7  ;;  %1071 = vmatprep.subr.mxu0 %v148_v8 }
   0x7   :  { %v140_v12 = vld [vmem:[%s6286_s1 + $0x308] sm:$0xff]  ;;  %1160 = vmatprep.subr.mxu1 %v404_v9  ;;  %v139_v14 = vld [vmem:[%s6286_s1 + $0x300] sm:$0xff]  ;;  %1072 = vmatpush1.msra.mxu0 %v147_v10 }
   0x8   :  { %v396_v13 = vld [vmem:[%s6286_s1 + $0xb08] sm:$0xff]  ;;  %v395_v15 = vld [vmem:[%s6286_s1 + $0xb00] sm:$0xff]  ;;  %1161 = vmatpush1.msra.mxu1 %v403_v11  ;;  %1073 = vmatprep.subr.mxu0 %v140_v12 }
   0x9   :  { %v132_v16 = vld [vmem:[%s6286_s1 + $0x2c8] sm:$0xff]  ;;  %1162 = vmatprep.subr.mxu1 %v396_v13  ;;  %v131_v18 = vld [vmem:[%s6286_s1 + $0x2c0] sm:$0xff]  ;;  %1074 = vmatpush1.msra.mxu0 %v139_v14 }
   0xa   :  { %v388_v17 = vld [vmem:[%s6286_s1 + $0xac8] sm:$0xff]  ;;  %v387_v19 = vld [vmem:[%s6286_s1 + $0xac0] sm:$0xff]  ;;  %1163 = vmatpush1.msra.mxu1 %v395_v15  ;;  %1075 = vmatprep.subr.mxu0 %v132_v16 }
   0xb   :  { %v124_v20 = vld [vmem:[%s6286_s1 + $0x288] sm:$0xff]  ;;  %1164 = vmatprep.subr.mxu1 %v388_v17  ;;  %v123_v22 = vld [vmem:[%s6286_s1 + $0x280] sm:$0xff]  ;;  %1076 = vmatpush1.msra.mxu0 %v131_v18 }
   0xc   :  { %v380_v21 = vld [vmem:[%s6286_s1 + $0xa88] sm:$0xff]  ;;  %v379_v23 = vld [vmem:[%s6286_s1 + $0xa80] sm:$0xff]  ;;  %1165 = vmatpush1.msra.mxu1 %v387_v19  ;;  %1077 = vmatprep.subr.mxu0 %v124_v20 }
   0xd   :  { %v116_v24 = vld [vmem:[%s6286_s1 + $0x248] sm:$0xff]  ;;  %1166 = vmatprep.subr.mxu1 %v380_v21  ;;  %v115_v26 = vld [vmem:[%s6286_s1 + $0x240] sm:$0xff]  ;;  %1078 = vmatpush1.msra.mxu0 %v123_v22 }
   0xe   :  { %v372_v25 = vld [vmem:[%s6286_s1 + $0xa48] sm:$0xff]  ;;  %v371_v27 = vld [vmem:[%s6286_s1 + $0xa40] sm:$0xff]  ;;  %1167 = vmatpush1.msra.mxu1 %v379_v23  ;;  %1079 = vmatprep.subr.mxu0 %v116_v24 }
   0xf   :  { %v108_v28 = vld [vmem:[%s6286_s1 + $0x208] sm:$0xff]  ;;  %1168 = vmatprep.subr.mxu1 %v372_v25  ;;  %v107_v30 = vld [vmem:[%s6286_s1 + $0x200] sm:$0xff]  ;;  %1080 = vmatpush1.msra.mxu0 %v115_v26 }
  0x10   :  { %v364_v29 = vld [vmem:[%s6286_s1 + $0xa08] sm:$0xff]  ;;  %v363_v31 = vld [vmem:[%s6286_s1 + $0xa00] sm:$0xff]  ;;  %1169 = vmatpush1.msra.mxu1 %v371_v27  ;;  %1081 = vmatprep.subr.mxu0 %v108_v28 }
  0x11   :  { %v100_v32 = vld [vmem:[%s6286_s1 + $0x1c8] sm:$0xff]  ;;  %1170 = vmatprep.subr.mxu1 %v364_v29  ;;  %v99_v34 = vld [vmem:[%s6286_s1 + $0x1c0] sm:$0xff]  ;;  %1082 = vmatpush1.msra.mxu0 %v107_v30 }
  0x12   :  { %v356_v33 = vld [vmem:[%s6286_s1 + $0x9c8] sm:$0xff]  ;;  %v355_v35 = vld [vmem:[%s6286_s1 + $0x9c0] sm:$0xff]  ;;  %1171 = vmatpush1.msra.mxu1 %v363_v31  ;;  %1083 = vmatprep.subr.mxu0 %v100_v32 }
  0x13   :  { %v92_v36 = vld [vmem:[%s6286_s1 + $0x188] sm:$0xff]  ;;  %1172 = vmatprep.subr.mxu1 %v356_v33  ;;  %v91_v38 = vld [vmem:[%s6286_s1 + $0x180] sm:$0xff]  ;;  %1084 = vmatpush1.msra.mxu0 %v99_v34 }
  0x14   :  { %v348_v37 = vld [vmem:[%s6286_s1 + $0x988] sm:$0xff]  ;;  %v347_v39 = vld [vmem:[%s6286_s1 + $0x980] sm:$0xff]  ;;  %1173 = vmatpush1.msra.mxu1 %v355_v35  ;;  %1085 = vmatprep.subr.mxu0 %v92_v36 }
  0x15   :  { %v84_v40 = vld [vmem:[%s6286_s1 + $0x148] sm:$0xff]  ;;  %1174 = vmatprep.subr.mxu1 %v348_v37  ;;  %v83_v42 = vld [vmem:[%s6286_s1 + $0x140] sm:$0xff]  ;;  %1086 = vmatpush1.msra.mxu0 %v91_v38 }
  0x16   :  { %v340_v41 = vld [vmem:[%s6286_s1 + $0x948] sm:$0xff]  ;;  %v339_v43 = vld [vmem:[%s6286_s1 + $0x940] sm:$0xff]  ;;  %1175 = vmatpush1.msra.mxu1 %v347_v39  ;;  %1087 = vmatprep.subr.mxu0 %v84_v40 }
  0x17   :  { %v76_v44 = vld [vmem:[%s6286_s1 + $0x108] sm:$0xff]  ;;  %1176 = vmatprep.subr.mxu1 %v340_v41  ;;  %v75_v46 = vld [vmem:[%s6286_s1 + $0x100] sm:$0xff]  ;;  %1088 = vmatpush1.msra.mxu0 %v83_v42 }
  0x18   :  { %v332_v45 = vld [vmem:[%s6286_s1 + $0x908] sm:$0xff]  ;;  %v331_v47 = vld [vmem:[%s6286_s1 + $0x900] sm:$0xff]  ;;  %1177 = vmatpush1.msra.mxu1 %v339_v43  ;;  %1089 = vmatprep.subr.mxu0 %v76_v44 }
  0x19   :  { %v68_v48 = vld [vmem:[%s6286_s1 + $0xc8] sm:$0xff]  ;;  %1178 = vmatprep.subr.mxu1 %v332_v45  ;;  %v67_v50 = vld [vmem:[%s6286_s1 + $0xc0] sm:$0xff]  ;;  %1090 = vmatpush1.msra.mxu0 %v75_v46 }
  0x1a   :  { %v324_v49 = vld [vmem:[%s6286_s1 + $0x8c8] sm:$0xff]  ;;  %v323_v51 = vld [vmem:[%s6286_s1 + $0x8c0] sm:$0xff]  ;;  %1179 = vmatpush1.msra.mxu1 %v331_v47  ;;  %1091 = vmatprep.subr.mxu0 %v68_v48 }
  0x1b   :  { %v60_v52 = vld [vmem:[%s6286_s1 + $0x88] sm:$0xff]  ;;  %1180 = vmatprep.subr.mxu1 %v324_v49  ;;  %v59_v54 = vld [vmem:[%s6286_s1 + $0x80] sm:$0xff]  ;;  %1092 = vmatpush1.msra.mxu0 %v67_v50 }
  0x1c   :  { %v316_v53 = vld [vmem:[%s6286_s1 + $0x888] sm:$0xff]  ;;  %v315_v55 = vld [vmem:[%s6286_s1 + $0x880] sm:$0xff]  ;;  %1181 = vmatpush1.msra.mxu1 %v323_v51  ;;  %1093 = vmatprep.subr.mxu0 %v60_v52 }
  0x1d   :  { %v52_v56 = vld [vmem:[%s6286_s1 + $0x48] sm:$0xff]  ;;  %1182 = vmatprep.subr.mxu1 %v316_v53  ;;  %v51_v58 = vld [vmem:[%s6286_s1 + $0x40] sm:$0xff]  ;;  %1094 = vmatpush1.msra.mxu0 %v59_v54 }
  0x1e   :  { %v308_v57 = vld [vmem:[%s6286_s1 + $0x848] sm:$0xff]  ;;  %v307_v59 = vld [vmem:[%s6286_s1 + $0x840] sm:$0xff]  ;;  %1183 = vmatpush1.msra.mxu1 %v315_v55  ;;  %1095 = vmatprep.subr.mxu0 %v52_v56 }
  0x1f   :  { %v44_v60 = vld [vmem:[%s6286_s1 + $0x8] sm:$0xff]  ;;  %1184 = vmatprep.subr.mxu1 %v308_v57  ;;  %v43_v62 = vld [vmem:[%s6286_s1] sm:$0xff]  ;;  %1096 = vmatpush1.msra.mxu0 %v51_v58 }
  0x20   :  { %v300_v61 = vld [vmem:[%s6286_s1 + $0x808] sm:$0xff]  ;;  %v299_v63 = vld [vmem:[%s6286_s1 + $0x800] sm:$0xff]  ;;  %1185 = vmatpush1.msra.mxu1 %v307_v59  ;;  %1097 = vmatprep.subr.mxu0 %v44_v60 }
  0x21   :  { %v292_v0 = vld [vmem:[%s6286_s1 + $0x7c8] sm:$0xff]  ;;  %1186 = vmatprep.subr.mxu1 %v300_v61  ;;  %v291_v2 = vld [vmem:[%s6286_s1 + $0x7c0] sm:$0xff]  ;;  %1098 = vmatpush1.msra.mxu0 %v43_v62 }
  0x22   :  { %v548_v1 = vld [vmem:[%s6286_s1 + $0xfc8] sm:$0xff]  ;;  %v547_v3 = vld [vmem:[%s6286_s1 + $0xfc0] sm:$0xff]  ;;  %1187 = vmatpush1.msra.mxu1 %v299_v63  ;;  %1099 = vmatprep.subr.mxu0 %v292_v0 }
  0x23   :  { %v284_v4 = vld [vmem:[%s6286_s1 + $0x788] sm:$0xff]  ;;  %1188 = vmatprep.subr.mxu1 %v548_v1  ;;  %v283_v6 = vld [vmem:[%s6286_s1 + $0x780] sm:$0xff]  ;;  %1100 = vmatpush2.msra.mxu0 %v291_v2  ;;  %v14_v1 = vld [vmem:[%s6287_s0 + $0x18] sm:$0xff] }
  0x24   :  { %v540_v5 = vld [vmem:[%s6286_s1 + $0xf88] sm:$0xff]  ;;  %v539_v7 = vld [vmem:[%s6286_s1 + $0xf80] sm:$0xff]  ;;  %1189 = vmatpush2.msra.mxu1 %v547_v3  ;;  %1101 = vmatprep.subr.mxu0 %v284_v4  ;;  %v13_v3 = vld [vmem:[%s6287_s0 + $0x10] sm:$0xff] }
  0x25   :  { %v276_v8 = vld [vmem:[%s6286_s1 + $0x748] sm:$0xff]  ;;  %1190 = vmatprep.subr.mxu1 %v540_v5  ;;  %v275_v10 = vld [vmem:[%s6286_s1 + $0x740] sm:$0xff]  ;;  %1102 = vmatpush2.msra.mxu0 %v283_v6 }
  0x26   :  { %v532_v9 = vld [vmem:[%s6286_s1 + $0xf48] sm:$0xff]  ;;  %v531_v11 = vld [vmem:[%s6286_s1 + $0xf40] sm:$0xff]  ;;  %1191 = vmatpush2.msra.mxu1 %v539_v7  ;;  %1103 = vmatprep.subr.mxu0 %v276_v8 }
  0x27   :  { %v268_v12 = vld [vmem:[%s6286_s1 + $0x708] sm:$0xff]  ;;  %1192 = vmatprep.subr.mxu1 %v532_v9  ;;  %v267_v14 = vld [vmem:[%s6286_s1 + $0x700] sm:$0xff]  ;;  %1104 = vmatpush2.msra.mxu0 %v275_v10 }
  0x28   :  { %v524_v13 = vld [vmem:[%s6286_s1 + $0xf08] sm:$0xff]  ;;  %v523_v15 = vld [vmem:[%s6286_s1 + $0xf00] sm:$0xff]  ;;  %1193 = vmatpush2.msra.mxu1 %v531_v11  ;;  %1105 = vmatprep.subr.mxu0 %v268_v12 }
  0x29   :  { %v260_v16 = vld [vmem:[%s6286_s1 + $0x6c8] sm:$0xff]  ;;  %1194 = vmatprep.subr.mxu1 %v524_v13  ;;  %v259_v18 = vld [vmem:[%s6286_s1 + $0x6c0] sm:$0xff]  ;;  %1106 = vmatpush2.msra.mxu0 %v267_v14 }
  0x2a   :  { %v516_v17 = vld [vmem:[%s6286_s1 + $0xec8] sm:$0xff]  ;;  %v515_v19 = vld [vmem:[%s6286_s1 + $0xec0] sm:$0xff]  ;;  %1195 = vmatpush2.msra.mxu1 %v523_v15  ;;  %1107 = vmatprep.subr.mxu0 %v260_v16 }
  0x2b   :  { %v252_v20 = vld [vmem:[%s6286_s1 + $0x688] sm:$0xff]  ;;  %1196 = vmatprep.subr.mxu1 %v516_v17  ;;  %v251_v22 = vld [vmem:[%s6286_s1 + $0x680] sm:$0xff]  ;;  %1108 = vmatpush2.msra.mxu0 %v259_v18 }
  0x2c   :  { %v508_v21 = vld [vmem:[%s6286_s1 + $0xe88] sm:$0xff]  ;;  %v507_v23 = vld [vmem:[%s6286_s1 + $0xe80] sm:$0xff]  ;;  %1197 = vmatpush2.msra.mxu1 %v515_v19  ;;  %1109 = vmatprep.subr.mxu0 %v252_v20 }
  0x2d   :  { %v244_v24 = vld [vmem:[%s6286_s1 + $0x648] sm:$0xff]  ;;  %1198 = vmatprep.subr.mxu1 %v508_v21  ;;  %v243_v26 = vld [vmem:[%s6286_s1 + $0x640] sm:$0xff]  ;;  %1110 = vmatpush2.msra.mxu0 %v251_v22 }
  0x2e   :  { %v500_v25 = vld [vmem:[%s6286_s1 + $0xe48] sm:$0xff]  ;;  %v499_v27 = vld [vmem:[%s6286_s1 + $0xe40] sm:$0xff]  ;;  %1199 = vmatpush2.msra.mxu1 %v507_v23  ;;  %1111 = vmatprep.subr.mxu0 %v244_v24 }
  0x2f   :  { %v236_v28 = vld [vmem:[%s6286_s1 + $0x608] sm:$0xff]  ;;  %1200 = vmatprep.subr.mxu1 %v500_v25  ;;  %v235_v30 = vld [vmem:[%s6286_s1 + $0x600] sm:$0xff]  ;;  %1112 = vmatpush2.msra.mxu0 %v243_v26 }
  0x30   :  { %v492_v29 = vld [vmem:[%s6286_s1 + $0xe08] sm:$0xff]  ;;  %v491_v31 = vld [vmem:[%s6286_s1 + $0xe00] sm:$0xff]  ;;  %1201 = vmatpush2.msra.mxu1 %v499_v27  ;;  %1113 = vmatprep.subr.mxu0 %v236_v28 }
  0x31   :  { %v228_v32 = vld [vmem:[%s6286_s1 + $0x5c8] sm:$0xff]  ;;  %1202 = vmatprep.subr.mxu1 %v492_v29  ;;  %v227_v34 = vld [vmem:[%s6286_s1 + $0x5c0] sm:$0xff]  ;;  %1114 = vmatpush2.msra.mxu0 %v235_v30 }
  0x32   :  { %v484_v33 = vld [vmem:[%s6286_s1 + $0xdc8] sm:$0xff]  ;;  %v483_v35 = vld [vmem:[%s6286_s1 + $0xdc0] sm:$0xff]  ;;  %1203 = vmatpush2.msra.mxu1 %v491_v31  ;;  %1115 = vmatprep.subr.mxu0 %v228_v32 }
  0x33   :  { %v220_v36 = vld [vmem:[%s6286_s1 + $0x588] sm:$0xff]  ;;  %1204 = vmatprep.subr.mxu1 %v484_v33  ;;  %v219_v38 = vld [vmem:[%s6286_s1 + $0x580] sm:$0xff]  ;;  %1116 = vmatpush2.msra.mxu0 %v227_v34 }
  0x34   :  { %v476_v37 = vld [vmem:[%s6286_s1 + $0xd88] sm:$0xff]  ;;  %v475_v39 = vld [vmem:[%s6286_s1 + $0xd80] sm:$0xff]  ;;  %1205 = vmatpush2.msra.mxu1 %v483_v35  ;;  %1117 = vmatprep.subr.mxu0 %v220_v36 }
  0x35   :  { %v212_v40 = vld [vmem:[%s6286_s1 + $0x548] sm:$0xff]  ;;  %1206 = vmatprep.subr.mxu1 %v476_v37  ;;  %v211_v42 = vld [vmem:[%s6286_s1 + $0x540] sm:$0xff]  ;;  %1118 = vmatpush2.msra.mxu0 %v219_v38 }
  0x36   :  { %v468_v41 = vld [vmem:[%s6286_s1 + $0xd48] sm:$0xff]  ;;  %v467_v43 = vld [vmem:[%s6286_s1 + $0xd40] sm:$0xff]  ;;  %1207 = vmatpush2.msra.mxu1 %v475_v39  ;;  %1119 = vmatprep.subr.mxu0 %v212_v40 }
  0x37   :  { %v204_v44 = vld [vmem:[%s6286_s1 + $0x508] sm:$0xff]  ;;  %1208 = vmatprep.subr.mxu1 %v468_v41  ;;  %v203_v46 = vld [vmem:[%s6286_s1 + $0x500] sm:$0xff]  ;;  %1120 = vmatpush2.msra.mxu0 %v211_v42 }
  0x38   :  { %v460_v45 = vld [vmem:[%s6286_s1 + $0xd08] sm:$0xff]  ;;  %v459_v47 = vld [vmem:[%s6286_s1 + $0xd00] sm:$0xff]  ;;  %1209 = vmatpush2.msra.mxu1 %v467_v43  ;;  %1121 = vmatprep.subr.mxu0 %v204_v44 }
  0x39   :  { %v196_v48 = vld [vmem:[%s6286_s1 + $0x4c8] sm:$0xff]  ;;  %1210 = vmatprep.subr.mxu1 %v460_v45  ;;  %v195_v50 = vld [vmem:[%s6286_s1 + $0x4c0] sm:$0xff]  ;;  %1122 = vmatpush2.msra.mxu0 %v203_v46 }
  0x3a   :  { %v452_v49 = vld [vmem:[%s6286_s1 + $0xcc8] sm:$0xff]  ;;  %v451_v51 = vld [vmem:[%s6286_s1 + $0xcc0] sm:$0xff]  ;;  %1211 = vmatpush2.msra.mxu1 %v459_v47  ;;  %1123 = vmatprep.subr.mxu0 %v196_v48 }
  0x3b   :  { %v188_v52 = vld [vmem:[%s6286_s1 + $0x488] sm:$0xff]  ;;  %1212 = vmatprep.subr.mxu1 %v452_v49  ;;  %v187_v54 = vld [vmem:[%s6286_s1 + $0x480] sm:$0xff]  ;;  %1124 = vmatpush2.msra.mxu0 %v195_v50 }
  0x3c   :  { %v444_v53 = vld [vmem:[%s6286_s1 + $0xc88] sm:$0xff]  ;;  %v443_v55 = vld [vmem:[%s6286_s1 + $0xc80] sm:$0xff]  ;;  %1213 = vmatpush2.msra.mxu1 %v451_v51  ;;  %1125 = vmatprep.subr.mxu0 %v188_v52 }
  0x3d   :  { %v180_v56 = vld [vmem:[%s6286_s1 + $0x448] sm:$0xff]  ;;  %1214 = vmatprep.subr.mxu1 %v444_v53  ;;  %v179_v58 = vld [vmem:[%s6286_s1 + $0x440] sm:$0xff]  ;;  %1126 = vmatpush2.msra.mxu0 %v187_v54 }
  0x3e   :  { %v436_v57 = vld [vmem:[%s6286_s1 + $0xc48] sm:$0xff]  ;;  %v435_v59 = vld [vmem:[%s6286_s1 + $0xc40] sm:$0xff]  ;;  %1215 = vmatpush2.msra.mxu1 %v443_v55  ;;  %1127 = vmatprep.subr.mxu0 %v180_v56 }
  0x3f   :  { %v172_v60 = vld [vmem:[%s6286_s1 + $0x408] sm:$0xff]  ;;  %1216 = vmatprep.subr.mxu1 %v436_v57  ;;  %v171_v62 = vld [vmem:[%s6286_s1 + $0x400] sm:$0xff]  ;;  %1128 = vmatpush2.msra.mxu0 %v179_v58 }
  0x40   :  { %v428_v61 = vld [vmem:[%s6286_s1 + $0xc08] sm:$0xff]  ;;  %1217 = vmatpush2.msra.mxu1 %v435_v59  ;;  %v427_v0 = vld [vmem:[%s6286_s1 + $0xc00] sm:$0xff]  ;;  %1129 = vmatprep.subr.mxu0 %v172_v60 }
  0x41   :  { %v12_v63 = vld [vmem:[%s6287_s0 + $0x8] sm:$0xff]  ;;  %1218 = vmatprep.subr.mxu1 %v428_v61  ;;  %v11_v2 = vld [vmem:[%s6287_s0] sm:$0xff]  ;;  %1130 = vmatpush2.msra.mxu0 %v171_v62 }
  0x42   :  { %1131 = vmatprep.mubr.f32.mxu0 %v12_v63  ;;  %v676_v4 = vld [vmem:[%s6286_s1 + $0x13c8] sm:$0xff]  ;;  %1219 = vmatpush2.msra.mxu1 %v427_v0  ;;  %v675_v6 = vld [vmem:[%s6286_s1 + $0x13c0] sm:$0xff] }
  0x43   :  { %v932_v5 = vld [vmem:[%s6286_s1 + $0x1bc8] sm:$0xff]  ;;  %1220 = vmatprep.mubr.f32.mxu1 %v14_v1  ;;  %v931_v7 = vld [vmem:[%s6286_s1 + $0x1bc0] sm:$0xff]  ;;  %1132 = vmatmul.mubr.f32.vlgmr.msra.gmra.mxu0 %v11_v2 }
  0x44   :  { %1221 = vmatmul.mubr.f32.vlgmr.msra.gmra.mxu1 %v13_v3  ;;  %v668_v8 = vld [vmem:[%s6286_s1 + $0x1388] sm:$0xff]  ;;  %1245 = vmatprep.subr.mxu0 %v676_v4  ;;  %v667_v10 = vld [vmem:[%s6286_s1 + $0x1380] sm:$0xff] }
  0x45   :  { %v924_v9 = vld [vmem:[%s6286_s1 + $0x1b88] sm:$0xff]  ;;  %1334 = vmatprep.subr.mxu1 %v932_v5  ;;  %v923_v11 = vld [vmem:[%s6286_s1 + $0x1b80] sm:$0xff]  ;;  %1246 = vmatpush1.msra.mxu0 %v675_v6 }
  0x46   :  { %1335 = vmatpush1.msra.mxu1 %v931_v7  ;;  %v660_v12 = vld [vmem:[%s6286_s1 + $0x1348] sm:$0xff]  ;;  %1247 = vmatprep.subr.mxu0 %v668_v8  ;;  %v659_v14 = vld [vmem:[%s6286_s1 + $0x1340] sm:$0xff] }
  0x47   :  { %v916_v13 = vld [vmem:[%s6286_s1 + $0x1b48] sm:$0xff]  ;;  %1336 = vmatprep.subr.mxu1 %v924_v9  ;;  %v915_v15 = vld [vmem:[%s6286_s1 + $0x1b40] sm:$0xff]  ;;  %1248 = vmatpush1.msra.mxu0 %v667_v10 }
  0x48   :  { %1337 = vmatpush1.msra.mxu1 %v923_v11  ;;  %v652_v16 = vld [vmem:[%s6286_s1 + $0x1308] sm:$0xff]  ;;  %1249 = vmatprep.subr.mxu0 %v660_v12  ;;  %v651_v18 = vld [vmem:[%s6286_s1 + $0x1300] sm:$0xff] }
  0x49   :  { %v908_v17 = vld [vmem:[%s6286_s1 + $0x1b08] sm:$0xff]  ;;  %1338 = vmatprep.subr.mxu1 %v916_v13  ;;  %v907_v19 = vld [vmem:[%s6286_s1 + $0x1b00] sm:$0xff]  ;;  %1250 = vmatpush1.msra.mxu0 %v659_v14 }
  0x4a   :  { %1339 = vmatpush1.msra.mxu1 %v915_v15  ;;  %v644_v20 = vld [vmem:[%s6286_s1 + $0x12c8] sm:$0xff]  ;;  %1251 = vmatprep.subr.mxu0 %v652_v16  ;;  %v643_v22 = vld [vmem:[%s6286_s1 + $0x12c0] sm:$0xff] }
  0x4b   :  { %v900_v21 = vld [vmem:[%s6286_s1 + $0x1ac8] sm:$0xff]  ;;  %1340 = vmatprep.subr.mxu1 %v908_v17  ;;  %v899_v23 = vld [vmem:[%s6286_s1 + $0x1ac0] sm:$0xff]  ;;  %1252 = vmatpush1.msra.mxu0 %v651_v18 }
  0x4c   :  { %1341 = vmatpush1.msra.mxu1 %v907_v19  ;;  %v636_v24 = vld [vmem:[%s6286_s1 + $0x1288] sm:$0xff]  ;;  %1253 = vmatprep.subr.mxu0 %v644_v20  ;;  %v635_v26 = vld [vmem:[%s6286_s1 + $0x1280] sm:$0xff] }
  0x4d   :  { %v892_v25 = vld [vmem:[%s6286_s1 + $0x1a88] sm:$0xff]  ;;  %1342 = vmatprep.subr.mxu1 %v900_v21  ;;  %v891_v27 = vld [vmem:[%s6286_s1 + $0x1a80] sm:$0xff]  ;;  %1254 = vmatpush1.msra.mxu0 %v643_v22 }
  0x4e   :  { %1343 = vmatpush1.msra.mxu1 %v899_v23  ;;  %v628_v28 = vld [vmem:[%s6286_s1 + $0x1248] sm:$0xff]  ;;  %1255 = vmatprep.subr.mxu0 %v636_v24  ;;  %v627_v30 = vld [vmem:[%s6286_s1 + $0x1240] sm:$0xff] }
  0x4f   :  { %v884_v29 = vld [vmem:[%s6286_s1 + $0x1a48] sm:$0xff]  ;;  %1344 = vmatprep.subr.mxu1 %v892_v25  ;;  %v883_v31 = vld [vmem:[%s6286_s1 + $0x1a40] sm:$0xff]  ;;  %1256 = vmatpush1.msra.mxu0 %v635_v26 }
  0x50   :  { %1345 = vmatpush1.msra.mxu1 %v891_v27  ;;  %v620_v32 = vld [vmem:[%s6286_s1 + $0x1208] sm:$0xff]  ;;  %1257 = vmatprep.subr.mxu0 %v628_v28  ;;  %v619_v34 = vld [vmem:[%s6286_s1 + $0x1200] sm:$0xff] }
  0x51   :  { %v876_v33 = vld [vmem:[%s6286_s1 + $0x1a08] sm:$0xff]  ;;  %1346 = vmatprep.subr.mxu1 %v884_v29  ;;  %v875_v35 = vld [vmem:[%s6286_s1 + $0x1a00] sm:$0xff]  ;;  %1258 = vmatpush1.msra.mxu0 %v627_v30 }
  0x52   :  { %1347 = vmatpush1.msra.mxu1 %v883_v31  ;;  %v612_v36 = vld [vmem:[%s6286_s1 + $0x11c8] sm:$0xff]  ;;  %1259 = vmatprep.subr.mxu0 %v620_v32  ;;  %v611_v38 = vld [vmem:[%s6286_s1 + $0x11c0] sm:$0xff] }
  0x53   :  { %v868_v37 = vld [vmem:[%s6286_s1 + $0x19c8] sm:$0xff]  ;;  %1348 = vmatprep.subr.mxu1 %v876_v33  ;;  %v867_v39 = vld [vmem:[%s6286_s1 + $0x19c0] sm:$0xff]  ;;  %1260 = vmatpush1.msra.mxu0 %v619_v34 }
  0x54   :  { %1349 = vmatpush1.msra.mxu1 %v875_v35  ;;  %v604_v40 = vld [vmem:[%s6286_s1 + $0x1188] sm:$0xff]  ;;  %1261 = vmatprep.subr.mxu0 %v612_v36  ;;  %v603_v42 = vld [vmem:[%s6286_s1 + $0x1180] sm:$0xff] }
  0x55   :  { %v860_v41 = vld [vmem:[%s6286_s1 + $0x1988] sm:$0xff]  ;;  %1350 = vmatprep.subr.mxu1 %v868_v37  ;;  %v859_v43 = vld [vmem:[%s6286_s1 + $0x1980] sm:$0xff]  ;;  %1262 = vmatpush1.msra.mxu0 %v611_v38 }
  0x56   :  { %1351 = vmatpush1.msra.mxu1 %v867_v39  ;;  %v596_v44 = vld [vmem:[%s6286_s1 + $0x1148] sm:$0xff]  ;;  %1263 = vmatprep.subr.mxu0 %v604_v40  ;;  %v595_v46 = vld [vmem:[%s6286_s1 + $0x1140] sm:$0xff] }
  0x57   :  { %v852_v45 = vld [vmem:[%s6286_s1 + $0x1948] sm:$0xff]  ;;  %1352 = vmatprep.subr.mxu1 %v860_v41  ;;  %v851_v47 = vld [vmem:[%s6286_s1 + $0x1940] sm:$0xff]  ;;  %1264 = vmatpush1.msra.mxu0 %v603_v42  ;;  %v22_v41 = vld [vmem:[%s6287_s0 + $0x58] sm:$0xff] }
  0x58   :  { %1353 = vmatpush1.msra.mxu1 %v859_v43  ;;  %v588_v48 = vld [vmem:[%s6286_s1 + $0x1108] sm:$0xff]  ;;  %1265 = vmatprep.subr.mxu0 %v596_v44  ;;  %v587_v50 = vld [vmem:[%s6286_s1 + $0x1100] sm:$0xff] }
  0x59   :  { %v844_v49 = vld [vmem:[%s6286_s1 + $0x1908] sm:$0xff]  ;;  %1354 = vmatprep.subr.mxu1 %v852_v45  ;;  %v843_v51 = vld [vmem:[%s6286_s1 + $0x1900] sm:$0xff]  ;;  %1266 = vmatpush1.msra.mxu0 %v595_v46  ;;  %v21_v45 = vld [vmem:[%s6287_s0 + $0x50] sm:$0xff] }
  0x5a   :  { %1355 = vmatpush1.msra.mxu1 %v851_v47  ;;  %v580_v52 = vld [vmem:[%s6286_s1 + $0x10c8] sm:$0xff]  ;;  %1267 = vmatprep.subr.mxu0 %v588_v48  ;;  %v579_v54 = vld [vmem:[%s6286_s1 + $0x10c0] sm:$0xff] }
  0x5b   :  { %v836_v53 = vld [vmem:[%s6286_s1 + $0x18c8] sm:$0xff]  ;;  %1356 = vmatprep.subr.mxu1 %v844_v49  ;;  %v835_v55 = vld [vmem:[%s6286_s1 + $0x18c0] sm:$0xff]  ;;  %1268 = vmatpush1.msra.mxu0 %v587_v50 }
  0x5c   :  { %1357 = vmatpush1.msra.mxu1 %v843_v51  ;;  %v572_v56 = vld [vmem:[%s6286_s1 + $0x1088] sm:$0xff]  ;;  %1269 = vmatprep.subr.mxu0 %v580_v52  ;;  %v571_v58 = vld [vmem:[%s6286_s1 + $0x1080] sm:$0xff] }
  0x5d   :  { %v828_v57 = vld [vmem:[%s6286_s1 + $0x1888] sm:$0xff]  ;;  %1358 = vmatprep.subr.mxu1 %v836_v53  ;;  %v827_v59 = vld [vmem:[%s6286_s1 + $0x1880] sm:$0xff]  ;;  %1270 = vmatpush1.msra.mxu0 %v579_v54  ;;  %v30_v53 = vld [vmem:[%s6287_s0 + $0x98] sm:$0xff] }
  0x5e   :  { %1359 = vmatpush1.msra.mxu1 %v835_v55  ;;  %v564_v60 = vld [vmem:[%s6286_s1 + $0x1048] sm:$0xff]  ;;  %1271 = vmatprep.subr.mxu0 %v572_v56  ;;  %v563_v62 = vld [vmem:[%s6286_s1 + $0x1040] sm:$0xff] }
  0x5f   :  { %v820_v61 = vld [vmem:[%s6286_s1 + $0x1848] sm:$0xff]  ;;  %1360 = vmatprep.subr.mxu1 %v828_v57  ;;  %v819_v63 = vld [vmem:[%s6286_s1 + $0x1840] sm:$0xff]  ;;  %1272 = vmatpush1.msra.mxu0 %v571_v58  ;;  %v29_v57 = vld [vmem:[%s6287_s0 + $0x90] sm:$0xff] }
  0x60   :  { %1361 = vmatpush1.msra.mxu1 %v827_v59  ;;  %v556_v0 = vld [vmem:[%s6286_s1 + $0x1008] sm:$0xff]  ;;  %1273 = vmatprep.subr.mxu0 %v564_v60  ;;  %v555_v2 = vld [vmem:[%s6286_s1 + $0x1000] sm:$0xff] }
  0x61   :  { %v812_v1 = vld [vmem:[%s6286_s1 + $0x1808] sm:$0xff]  ;;  %1362 = vmatprep.subr.mxu1 %v820_v61  ;;  %v811_v3 = vld [vmem:[%s6286_s1 + $0x1800] sm:$0xff]  ;;  %1274 = vmatpush1.msra.mxu0 %v563_v62 }
  0x62   :  { %1363 = vmatpush1.msra.mxu1 %v819_v63  ;;  %v804_v4 = vld [vmem:[%s6286_s1 + $0x17c8] sm:$0xff]  ;;  %1275 = vmatprep.subr.mxu0 %v556_v0  ;;  %v803_v6 = vld [vmem:[%s6286_s1 + $0x17c0] sm:$0xff] }
  0x63   :  { %v1060_v5 = vld [vmem:[%s6286_s1 + $0x1fc8] sm:$0xff]  ;;  %1364 = vmatprep.subr.mxu1 %v812_v1  ;;  %v1059_v7 = vld [vmem:[%s6286_s1 + $0x1fc0] sm:$0xff]  ;;  %1276 = vmatpush1.msra.mxu0 %v555_v2  ;;  %v38_v1 = vld [vmem:[%s6287_s0 + $0xd8] sm:$0xff] }
  0x64   :  { %1365 = vmatpush1.msra.mxu1 %v811_v3  ;;  %v796_v8 = vld [vmem:[%s6286_s1 + $0x1788] sm:$0xff]  ;;  %1277 = vmatprep.subr.mxu0 %v804_v4  ;;  %v795_v10 = vld [vmem:[%s6286_s1 + $0x1780] sm:$0xff] }
  0x65   :  { %v1052_v9 = vld [vmem:[%s6286_s1 + $0x1f88] sm:$0xff]  ;;  %1366 = vmatprep.subr.mxu1 %v1060_v5  ;;  %v1051_v11 = vld [vmem:[%s6286_s1 + $0x1f80] sm:$0xff]  ;;  %1278 = vmatpush2.msra.mxu0 %v803_v6  ;;  %v37_v5 = vld [vmem:[%s6287_s0 + $0xd0] sm:$0xff] }
  0x66   :  { %1367 = vmatpush2.msra.mxu1 %v1059_v7  ;;  %v788_v12 = vld [vmem:[%s6286_s1 + $0x1748] sm:$0xff]  ;;  %1279 = vmatprep.subr.mxu0 %v796_v8  ;;  %v787_v14 = vld [vmem:[%s6286_s1 + $0x1740] sm:$0xff] }
  0x67   :  { %v1044_v13 = vld [vmem:[%s6286_s1 + $0x1f48] sm:$0xff]  ;;  %1368 = vmatprep.subr.mxu1 %v1052_v9  ;;  %v1043_v15 = vld [vmem:[%s6286_s1 + $0x1f40] sm:$0xff]  ;;  %1280 = vmatpush2.msra.mxu0 %v795_v10 }
  0x68   :  { %1369 = vmatpush2.msra.mxu1 %v1051_v11  ;;  %v780_v16 = vld [vmem:[%s6286_s1 + $0x1708] sm:$0xff]  ;;  %1281 = vmatprep.subr.mxu0 %v788_v12  ;;  %v779_v18 = vld [vmem:[%s6286_s1 + $0x1700] sm:$0xff] }
  0x69   :  { %v1036_v17 = vld [vmem:[%s6286_s1 + $0x1f08] sm:$0xff]  ;;  %1370 = vmatprep.subr.mxu1 %v1044_v13  ;;  %v1035_v19 = vld [vmem:[%s6286_s1 + $0x1f00] sm:$0xff]  ;;  %1282 = vmatpush2.msra.mxu0 %v787_v14 }
  0x6a   :  { %1371 = vmatpush2.msra.mxu1 %v1043_v15  ;;  %v772_v20 = vld [vmem:[%s6286_s1 + $0x16c8] sm:$0xff]  ;;  %1283 = vmatprep.subr.mxu0 %v780_v16  ;;  %v771_v22 = vld [vmem:[%s6286_s1 + $0x16c0] sm:$0xff] }
  0x6b   :  { %v1028_v21 = vld [vmem:[%s6286_s1 + $0x1ec8] sm:$0xff]  ;;  %1372 = vmatprep.subr.mxu1 %v1036_v17  ;;  %v1027_v23 = vld [vmem:[%s6286_s1 + $0x1ec0] sm:$0xff]  ;;  %1284 = vmatpush2.msra.mxu0 %v779_v18  ;;  %v18_v18 = vld [vmem:[%s6287_s0 + $0x38] sm:$0xff] }
  0x6c   :  { %1373 = vmatpush2.msra.mxu1 %v1035_v19  ;;  %v764_v24 = vld [vmem:[%s6286_s1 + $0x1688] sm:$0xff]  ;;  %1285 = vmatprep.subr.mxu0 %v772_v20  ;;  %v763_v26 = vld [vmem:[%s6286_s1 + $0x1680] sm:$0xff]  ;;  %v166_v19 = vld [vmem:[%s6286_s1 + $0x3d8] sm:$0xff] }
  0x6d   :  { %v1020_v25 = vld [vmem:[%s6286_s1 + $0x1e88] sm:$0xff]  ;;  %1374 = vmatprep.subr.mxu1 %v1028_v21  ;;  %v1019_v27 = vld [vmem:[%s6286_s1 + $0x1e80] sm:$0xff]  ;;  %1286 = vmatpush2.msra.mxu0 %v771_v22  ;;  %v422_v20 = vld [vmem:[%s6286_s1 + $0xbd8] sm:$0xff] }
  0x6e   :  { %1375 = vmatpush2.msra.mxu1 %v1027_v23  ;;  %v756_v28 = vld [vmem:[%s6286_s1 + $0x1648] sm:$0xff]  ;;  %1287 = vmatprep.subr.mxu0 %v764_v24  ;;  %v755_v30 = vld [vmem:[%s6286_s1 + $0x1640] sm:$0xff]  ;;  %v17_v21 = vld [vmem:[%s6287_s0 + $0x30] sm:$0xff] }
  0x6f   :  { %v1012_v29 = vld [vmem:[%s6286_s1 + $0x1e48] sm:$0xff]  ;;  %1376 = vmatprep.subr.mxu1 %v1020_v25  ;;  %v1011_v31 = vld [vmem:[%s6286_s1 + $0x1e40] sm:$0xff]  ;;  %1288 = vmatpush2.msra.mxu0 %v763_v26  ;;  %v165_v22 = vld [vmem:[%s6286_s1 + $0x3d0] sm:$0xff] }
  0x70   :  { %1377 = vmatpush2.msra.mxu1 %v1019_v27  ;;  %v748_v32 = vld [vmem:[%s6286_s1 + $0x1608] sm:$0xff]  ;;  %1289 = vmatprep.subr.mxu0 %v756_v28  ;;  %v747_v34 = vld [vmem:[%s6286_s1 + $0x1600] sm:$0xff]  ;;  %v421_v23 = vld [vmem:[%s6286_s1 + $0xbd0] sm:$0xff] }
  0x71   :  { %v1004_v33 = vld [vmem:[%s6286_s1 + $0x1e08] sm:$0xff]  ;;  %1378 = vmatprep.subr.mxu1 %v1012_v29  ;;  %v1003_v35 = vld [vmem:[%s6286_s1 + $0x1e00] sm:$0xff]  ;;  %1290 = vmatpush2.msra.mxu0 %v755_v30  ;;  %v158_v24 = vld [vmem:[%s6286_s1 + $0x398] sm:$0xff] }
  0x72   :  { %1379 = vmatpush2.msra.mxu1 %v1011_v31  ;;  %v740_v36 = vld [vmem:[%s6286_s1 + $0x15c8] sm:$0xff]  ;;  %1291 = vmatprep.subr.mxu0 %v748_v32  ;;  %v739_v38 = vld [vmem:[%s6286_s1 + $0x15c0] sm:$0xff]  ;;  %v414_v25 = vld [vmem:[%s6286_s1 + $0xb98] sm:$0xff] }
  0x73   :  { %v996_v37 = vld [vmem:[%s6286_s1 + $0x1dc8] sm:$0xff]  ;;  %1380 = vmatprep.subr.mxu1 %v1004_v33  ;;  %v995_v39 = vld [vmem:[%s6286_s1 + $0x1dc0] sm:$0xff]  ;;  %1292 = vmatpush2.msra.mxu0 %v747_v34  ;;  %v157_v27 = vld [vmem:[%s6286_s1 + $0x390] sm:$0xff] }
  0x74   :  { %1381 = vmatpush2.msra.mxu1 %v1003_v35  ;;  %v20_v40 = vld [vmem:[%s6287_s0 + $0x48] sm:$0xff]  ;;  %1293 = vmatprep.subr.mxu0 %v740_v36  ;;  %v19_v44 = vld [vmem:[%s6287_s0 + $0x40] sm:$0xff]  ;;  %v413_v28 = vld [vmem:[%s6286_s1 + $0xb90] sm:$0xff] }
  0x75   :  { %1382 = vmatprep.subr.mxu1 %v996_v37  ;;  %v732_v42 = vld [vmem:[%s6286_s1 + $0x1588] sm:$0xff]  ;;  %1294 = vmatpush2.msra.mxu0 %v739_v38  ;;  %v731_v46 = vld [vmem:[%s6286_s1 + $0x1580] sm:$0xff]  ;;  %v150_v30 = vld [vmem:[%s6286_s1 + $0x358] sm:$0xff] }
  0x76   :  { %v988_v43 = vld [vmem:[%s6286_s1 + $0x1d88] sm:$0xff]  ;;  %1383 = vmatpush2.msra.mxu1 %v995_v39  ;;  %1137 = vmatprep.mubr.f32.mxu0 %v20_v40  ;;  %v987_v47 = vld [vmem:[%s6286_s1 + $0x1d80] sm:$0xff]  ;;  %v406_v31 = vld [vmem:[%s6286_s1 + $0xb58] sm:$0xff] }
  0x77   :  { %1226 = vmatprep.mubr.f32.mxu1 %v22_v41  ;;  %1295 = vmatprep.subr.mxu0 %v732_v42  ;;  %v724_v48 = vld [vmem:[%s6286_s1 + $0x1548] sm:$0xff]  ;;  %v723_v50 = vld [vmem:[%s6286_s1 + $0x1540] sm:$0xff]  ;;  %v26_v32 = vld [vmem:[%s6287_s0 + $0x78] sm:$0xff] }
  0x78   :  { %1384 = vmatprep.subr.mxu1 %v988_v43  ;;  %v980_v49 = vld [vmem:[%s6286_s1 + $0x1d48] sm:$0xff]  ;;  %1138 = vmatmul.mubr.f32.gmra.mxu0 %v19_v44  ;;  %v979_v51 = vld [vmem:[%s6286_s1 + $0x1d40] sm:$0xff]  ;;  %v149_v33 = vld [vmem:[%s6286_s1 + $0x350] sm:$0xff] }
  0x79   :  { %1227 = vmatmul.mubr.f32.gmra.mxu1 %v21_v45  ;;  %1296 = vmatpush2.msra.mxu0 %v731_v46  ;;  %v28_v52 = vld [vmem:[%s6287_s0 + $0x88] sm:$0xff]  ;;  %v27_v56 = vld [vmem:[%s6287_s0 + $0x80] sm:$0xff]  ;;  %v405_v34 = vld [vmem:[%s6286_s1 + $0xb50] sm:$0xff] }
  0x7a   :  { %1385 = vmatpush2.msra.mxu1 %v987_v47  ;;  %1297 = vmatprep.subr.mxu0 %v724_v48  ;;  %v716_v54 = vld [vmem:[%s6286_s1 + $0x1508] sm:$0xff]  ;;  %v715_v58 = vld [vmem:[%s6286_s1 + $0x1500] sm:$0xff]  ;;  %v142_v35 = vld [vmem:[%s6286_s1 + $0x318] sm:$0xff] }
  0x7b   :  { %1386 = vmatprep.subr.mxu1 %v980_v49  ;;  %v972_v55 = vld [vmem:[%s6286_s1 + $0x1d08] sm:$0xff]  ;;  %1298 = vmatpush2.msra.mxu0 %v723_v50  ;;  %v971_v59 = vld [vmem:[%s6286_s1 + $0x1d00] sm:$0xff]  ;;  %v25_v36 = vld [vmem:[%s6287_s0 + $0x70] sm:$0xff] }
  0x7c   :  { %1387 = vmatpush2.msra.mxu1 %v979_v51  ;;  %1143 = vmatprep.mubr.f32.mxu0 %v28_v52  ;;  %v708_v60 = vld [vmem:[%s6286_s1 + $0x14c8] sm:$0xff]  ;;  %v707_v62 = vld [vmem:[%s6286_s1 + $0x14c0] sm:$0xff]  ;;  %v398_v37 = vld [vmem:[%s6286_s1 + $0xb18] sm:$0xff] }
  0x7d   :  { %1232 = vmatprep.mubr.f32.mxu1 %v30_v53  ;;  %1299 = vmatprep.subr.mxu0 %v716_v54  ;;  %v964_v61 = vld [vmem:[%s6286_s1 + $0x1cc8] sm:$0xff]  ;;  %v963_v63 = vld [vmem:[%s6286_s1 + $0x1cc0] sm:$0xff]  ;;  %v141_v39 = vld [vmem:[%s6286_s1 + $0x310] sm:$0xff] }
  0x7e   :  { %1388 = vmatprep.subr.mxu1 %v972_v55  ;;  %1144 = vmatmul.mubr.f32.gmra.mxu0 %v27_v56  ;;  %v36_v0 = vld [vmem:[%s6287_s0 + $0xc8] sm:$0xff]  ;;  %v35_v4 = vld [vmem:[%s6287_s0 + $0xc0] sm:$0xff]  ;;  %v397_v40 = vld [vmem:[%s6286_s1 + $0xb10] sm:$0xff] }
  0x7f   :  { %1233 = vmatmul.mubr.f32.gmra.mxu1 %v29_v57  ;;  %1300 = vmatpush2.msra.mxu0 %v715_v58  ;;  %v700_v2 = vld [vmem:[%s6286_s1 + $0x1488] sm:$0xff]  ;;  %v699_v6 = vld [vmem:[%s6286_s1 + $0x1480] sm:$0xff]  ;;  %v134_v42 = vld [vmem:[%s6286_s1 + $0x2d8] sm:$0xff] }
  0x80   :  { %1389 = vmatpush2.msra.mxu1 %v971_v59  ;;  %1301 = vmatprep.subr.mxu0 %v708_v60  ;;  %v956_v3 = vld [vmem:[%s6286_s1 + $0x1c88] sm:$0xff]  ;;  %v955_v7 = vld [vmem:[%s6286_s1 + $0x1c80] sm:$0xff]  ;;  %v390_v43 = vld [vmem:[%s6286_s1 + $0xad8] sm:$0xff] }
  0x81   :  { %1390 = vmatprep.subr.mxu1 %v964_v61  ;;  %1302 = vmatpush2.msra.mxu0 %v707_v62  ;;  %v692_v8 = vld [vmem:[%s6286_s1 + $0x1448] sm:$0xff]  ;;  %v691_v10 = vld [vmem:[%s6286_s1 + $0x1440] sm:$0xff]  ;;  %v34_v44 = vld [vmem:[%s6287_s0 + $0xb8] sm:$0xff] }
  0x82   :  { %1391 = vmatpush2.msra.mxu1 %v963_v63  ;;  %1149 = vmatprep.mubr.f32.mxu0 %v36_v0  ;;  %v948_v9 = vld [vmem:[%s6286_s1 + $0x1c48] sm:$0xff]  ;;  %v947_v11 = vld [vmem:[%s6286_s1 + $0x1c40] sm:$0xff]  ;;  %v133_v45 = vld [vmem:[%s6286_s1 + $0x2d0] sm:$0xff] }
  0x83   :  { %1238 = vmatprep.mubr.f32.mxu1 %v38_v1  ;;  %1303 = vmatprep.subr.mxu0 %v700_v2  ;;  %v684_v12 = vld [vmem:[%s6286_s1 + $0x1408] sm:$0xff]  ;;  %v683_v14 = vld [vmem:[%s6286_s1 + $0x1400] sm:$0xff]  ;;  %v389_v46 = vld [vmem:[%s6286_s1 + $0xad0] sm:$0xff] }
  0x84   :  { %1392 = vmatprep.subr.mxu1 %v956_v3  ;;  %1150 = vmatmul.mubr.f32.gmra.mxu0 %v35_v4  ;;  %v940_v13 = vld [vmem:[%s6286_s1 + $0x1c08] sm:$0xff]  ;;  %v939_v16 = vld [vmem:[%s6286_s1 + $0x1c00] sm:$0xff]  ;;  %v126_v47 = vld [vmem:[%s6286_s1 + $0x298] sm:$0xff] }
  0x85   :  { %1239 = vmatmul.mubr.f32.gmra.mxu1 %v37_v5  ;;  %1304 = vmatpush2.msra.mxu0 %v699_v6  ;;  %v16_v15 = vld [vmem:[%s6287_s0 + $0x28] sm:$0xff]  ;;  %v15_v17 = vld [vmem:[%s6287_s0 + $0x20] sm:$0xff]  ;;  %v33_v48 = vld [vmem:[%s6287_s0 + $0xb0] sm:$0xff] }
  0x86   :  { %1393 = vmatpush2.msra.mxu1 %v955_v7  ;;  %1305 = vmatprep.subr.mxu0 %v692_v8  ;;  %v24_v26 = vld [vmem:[%s6287_s0 + $0x68] sm:$0xff]  ;;  %v23_v29 = vld [vmem:[%s6287_s0 + $0x60] sm:$0xff]  ;;  %v382_v49 = vld [vmem:[%s6286_s1 + $0xa98] sm:$0xff] }
  0x87   :  { %1394 = vmatprep.subr.mxu1 %v948_v9  ;;  %1306 = vmatpush2.msra.mxu0 %v691_v10  ;;  %v32_v38 = vld [vmem:[%s6287_s0 + $0xa8] sm:$0xff]  ;;  %v31_v41 = vld [vmem:[%s6287_s0 + $0xa0] sm:$0xff]  ;;  %v125_v51 = vld [vmem:[%s6286_s1 + $0x290] sm:$0xff] }
  0x88   :  { %1395 = vmatpush2.msra.mxu1 %v947_v11  ;;  %1307 = vmatprep.subr.mxu0 %v684_v12  ;;  %v40_v50 = vld [vmem:[%s6287_s0 + $0xe8] sm:$0xff]  ;;  %v381_v52 = vld [vmem:[%s6286_s1 + $0xa90] sm:$0xff]  ;;  %v39_v53 = vld [vmem:[%s6287_s0 + $0xe0] sm:$0xff] }
  0x89   :  { %1396 = vmatprep.subr.mxu1 %v940_v13  ;;  %1308 = vmatpush2.msra.mxu0 %v683_v14  ;;  %v118_v54 = vld [vmem:[%s6286_s1 + $0x258] sm:$0xff]  ;;  %v117_v57 = vld [vmem:[%s6286_s1 + $0x250] sm:$0xff] }
  0x8a   :  { %1309 = vmatprep.mubr.f32.mxu0 %v16_v15  ;;  %1397 = vmatpush2.msra.mxu1 %v939_v16  ;;  %v374_v55 = vld [vmem:[%s6286_s1 + $0xa58] sm:$0xff]  ;;  %v373_v58 = vld [vmem:[%s6286_s1 + $0xa50] sm:$0xff] }
  0x8b   :  { %1310 = vmatmul.mubr.f32.vlgmr.msra.gmra.mxu0 %v15_v17  ;;  %1398 = vmatprep.mubr.f32.mxu1 %v18_v18  ;;  %v42_v56 = vld [vmem:[%s6287_s0 + $0xf8] sm:$0xff]  ;;  %v41_v60 = vld [vmem:[%s6287_s0 + $0xf0] sm:$0xff] }
  0x8c   :  { %1423 = vmatprep.subr.mxu0 %v166_v19  ;;  %1512 = vmatprep.subr.mxu1 %v422_v20  ;;  %v110_v59 = vld [vmem:[%s6286_s1 + $0x218] sm:$0xff]  ;;  %v109_v62 = vld [vmem:[%s6286_s1 + $0x210] sm:$0xff] }
  0x8d   :  { %1399 = vmatmul.mubr.f32.vlgmr.msra.gmra.mxu1 %v17_v21  ;;  %1424 = vmatpush1.msra.mxu0 %v165_v22  ;;  %v366_v61 = vld [vmem:[%s6286_s1 + $0xa18] sm:$0xff]  ;;  %v365_v63 = vld [vmem:[%s6286_s1 + $0xa10] sm:$0xff] }
  0x8e   :  { %1513 = vmatpush1.msra.mxu1 %v421_v23  ;;  %1425 = vmatprep.subr.mxu0 %v158_v24  ;;  %v102_v0 = vld [vmem:[%s6286_s1 + $0x1d8] sm:$0xff]  ;;  %v101_v2 = vld [vmem:[%s6286_s1 + $0x1d0] sm:$0xff] }
  0x8f   :  { %1514 = vmatprep.subr.mxu1 %v414_v25  ;;  %1315 = vmatprep.mubr.f32.mxu0 %v24_v26  ;;  %v358_v1 = vld [vmem:[%s6286_s1 + $0x9d8] sm:$0xff]  ;;  %v357_v3 = vld [vmem:[%s6286_s1 + $0x9d0] sm:$0xff] }
  0x90   :  { %1426 = vmatpush1.msra.mxu0 %v157_v27  ;;  %1515 = vmatpush1.msra.mxu1 %v413_v28  ;;  %v94_v4 = vld [vmem:[%s6286_s1 + $0x198] sm:$0xff]  ;;  %v93_v6 = vld [vmem:[%s6286_s1 + $0x190] sm:$0xff] }
  0x91   :  { %1316 = vmatmul.mubr.f32.gmra.mxu0 %v23_v29  ;;  %1427 = vmatprep.subr.mxu0 %v150_v30  ;;  %v350_v5 = vld [vmem:[%s6286_s1 + $0x998] sm:$0xff]  ;;  %v349_v7 = vld [vmem:[%s6286_s1 + $0x990] sm:$0xff] }
  0x92   :  { %1516 = vmatprep.subr.mxu1 %v406_v31  ;;  %1404 = vmatprep.mubr.f32.mxu1 %v26_v32  ;;  %v86_v8 = vld [vmem:[%s6286_s1 + $0x158] sm:$0xff]  ;;  %v85_v10 = vld [vmem:[%s6286_s1 + $0x150] sm:$0xff] }
  0x93   :  { %1428 = vmatpush1.msra.mxu0 %v149_v33  ;;  %1517 = vmatpush1.msra.mxu1 %v405_v34  ;;  %v342_v9 = vld [vmem:[%s6286_s1 + $0x958] sm:$0xff]  ;;  %v341_v11 = vld [vmem:[%s6286_s1 + $0x950] sm:$0xff] }
  0x94   :  { %1429 = vmatprep.subr.mxu0 %v142_v35  ;;  %1405 = vmatmul.mubr.f32.gmra.mxu1 %v25_v36  ;;  %v78_v12 = vld [vmem:[%s6286_s1 + $0x118] sm:$0xff]  ;;  %v77_v14 = vld [vmem:[%s6286_s1 + $0x110] sm:$0xff] }
  0x95   :  { %1518 = vmatprep.subr.mxu1 %v398_v37  ;;  %1321 = vmatprep.mubr.f32.mxu0 %v32_v38  ;;  %v334_v13 = vld [vmem:[%s6286_s1 + $0x918] sm:$0xff]  ;;  %v333_v15 = vld [vmem:[%s6286_s1 + $0x910] sm:$0xff] }
  0x96   :  { %1430 = vmatpush1.msra.mxu0 %v141_v39  ;;  %1519 = vmatpush1.msra.mxu1 %v397_v40  ;;  %v70_v16 = vld [vmem:[%s6286_s1 + $0xd8] sm:$0xff]  ;;  %v69_v18 = vld [vmem:[%s6286_s1 + $0xd0] sm:$0xff] }
  0x97   :  { %1322 = vmatmul.mubr.f32.gmra.mxu0 %v31_v41  ;;  %1431 = vmatprep.subr.mxu0 %v134_v42  ;;  %v326_v17 = vld [vmem:[%s6286_s1 + $0x8d8] sm:$0xff]  ;;  %v325_v19 = vld [vmem:[%s6286_s1 + $0x8d0] sm:$0xff] }
  0x98   :  { %1520 = vmatprep.subr.mxu1 %v390_v43  ;;  %1410 = vmatprep.mubr.f32.mxu1 %v34_v44  ;;  %v62_v20 = vld [vmem:[%s6286_s1 + $0x98] sm:$0xff]  ;;  %v61_v22 = vld [vmem:[%s6286_s1 + $0x90] sm:$0xff] }
  0x99   :  { %1432 = vmatpush1.msra.mxu0 %v133_v45  ;;  %1521 = vmatpush1.msra.mxu1 %v389_v46  ;;  %v318_v21 = vld [vmem:[%s6286_s1 + $0x898] sm:$0xff]  ;;  %v317_v23 = vld [vmem:[%s6286_s1 + $0x890] sm:$0xff] }
  0x9a   :  { %1433 = vmatprep.subr.mxu0 %v126_v47  ;;  %1411 = vmatmul.mubr.f32.gmra.mxu1 %v33_v48  ;;  %v54_v24 = vld [vmem:[%s6286_s1 + $0x58] sm:$0xff]  ;;  %v53_v26 = vld [vmem:[%s6286_s1 + $0x50] sm:$0xff] }
  0x9b   :  { %1522 = vmatprep.subr.mxu1 %v382_v49  ;;  %1327 = vmatprep.mubr.f32.mxu0 %v40_v50  ;;  %v310_v25 = vld [vmem:[%s6286_s1 + $0x858] sm:$0xff]  ;;  %v309_v27 = vld [vmem:[%s6286_s1 + $0x850] sm:$0xff] }
  0x9c   :  { %1434 = vmatpush1.msra.mxu0 %v125_v51  ;;  %1523 = vmatpush1.msra.mxu1 %v381_v52  ;;  %v46_v28 = vld [vmem:[%s6286_s1 + $0x18] sm:$0xff]  ;;  %v45_v30 = vld [vmem:[%s6286_s1 + $0x10] sm:$0xff] }
  0x9d   :  { %1328 = vmatmul.mubr.f32.gmra.mxu0 %v39_v53  ;;  %1435 = vmatprep.subr.mxu0 %v118_v54  ;;  %v302_v29 = vld [vmem:[%s6286_s1 + $0x818] sm:$0xff]  ;;  %v301_v31 = vld [vmem:[%s6286_s1 + $0x810] sm:$0xff] }
  0x9e   :  { %1524 = vmatprep.subr.mxu1 %v374_v55  ;;  %1416 = vmatprep.mubr.f32.mxu1 %v42_v56  ;;  %v294_v32 = vld [vmem:[%s6286_s1 + $0x7d8] sm:$0xff]  ;;  %v293_v34 = vld [vmem:[%s6286_s1 + $0x7d0] sm:$0xff] }
  0x9f   :  { %1436 = vmatpush1.msra.mxu0 %v117_v57  ;;  %1525 = vmatpush1.msra.mxu1 %v373_v58  ;;  %v550_v33 = vld [vmem:[%s6286_s1 + $0xfd8] sm:$0xff]  ;;  %v549_v35 = vld [vmem:[%s6286_s1 + $0xfd0] sm:$0xff] }
  0xa0   :  { %1437 = vmatprep.subr.mxu0 %v110_v59  ;;  %1417 = vmatmul.mubr.f32.gmra.mxu1 %v41_v60  ;;  %v286_v36 = vld [vmem:[%s6286_s1 + $0x798] sm:$0xff]  ;;  %v285_v38 = vld [vmem:[%s6286_s1 + $0x790] sm:$0xff] }
  0xa1   :  { %1526 = vmatprep.subr.mxu1 %v366_v61  ;;  %1438 = vmatpush1.msra.mxu0 %v109_v62  ;;  %v542_v37 = vld [vmem:[%s6286_s1 + $0xf98] sm:$0xff]  ;;  %v541_v39 = vld [vmem:[%s6286_s1 + $0xf90] sm:$0xff] }
  0xa2   :  { %1527 = vmatpush1.msra.mxu1 %v365_v63  ;;  %1439 = vmatprep.subr.mxu0 %v102_v0  ;;  %v278_v40 = vld [vmem:[%s6286_s1 + $0x758] sm:$0xff]  ;;  %v277_v42 = vld [vmem:[%s6286_s1 + $0x750] sm:$0xff] }
  0xa3   :  { %1528 = vmatprep.subr.mxu1 %v358_v1  ;;  %1440 = vmatpush1.msra.mxu0 %v101_v2  ;;  %v534_v41 = vld [vmem:[%s6286_s1 + $0xf58] sm:$0xff]  ;;  %v533_v43 = vld [vmem:[%s6286_s1 + $0xf50] sm:$0xff] }
  0xa4   :  { %1529 = vmatpush1.msra.mxu1 %v357_v3  ;;  %1441 = vmatprep.subr.mxu0 %v94_v4  ;;  %v270_v44 = vld [vmem:[%s6286_s1 + $0x718] sm:$0xff]  ;;  %v269_v46 = vld [vmem:[%s6286_s1 + $0x710] sm:$0xff] }
  0xa5   :  { %1530 = vmatprep.subr.mxu1 %v350_v5  ;;  %1442 = vmatpush1.msra.mxu0 %v93_v6  ;;  %v526_v45 = vld [vmem:[%s6286_s1 + $0xf18] sm:$0xff]  ;;  %v525_v47 = vld [vmem:[%s6286_s1 + $0xf10] sm:$0xff] }
  0xa6   :  { %1531 = vmatpush1.msra.mxu1 %v349_v7  ;;  %1443 = vmatprep.subr.mxu0 %v86_v8  ;;  %v262_v48 = vld [vmem:[%s6286_s1 + $0x6d8] sm:$0xff]  ;;  %v261_v50 = vld [vmem:[%s6286_s1 + $0x6d0] sm:$0xff] }
  0xa7   :  { %1532 = vmatprep.subr.mxu1 %v342_v9  ;;  %1444 = vmatpush1.msra.mxu0 %v85_v10  ;;  %v518_v49 = vld [vmem:[%s6286_s1 + $0xed8] sm:$0xff]  ;;  %v517_v51 = vld [vmem:[%s6286_s1 + $0xed0] sm:$0xff] }
  0xa8   :  { %1533 = vmatpush1.msra.mxu1 %v341_v11  ;;  %1445 = vmatprep.subr.mxu0 %v78_v12  ;;  %v254_v52 = vld [vmem:[%s6286_s1 + $0x698] sm:$0xff]  ;;  %v253_v54 = vld [vmem:[%s6286_s1 + $0x690] sm:$0xff] }
  0xa9   :  { %1534 = vmatprep.subr.mxu1 %v334_v13  ;;  %1446 = vmatpush1.msra.mxu0 %v77_v14  ;;  %v510_v53 = vld [vmem:[%s6286_s1 + $0xe98] sm:$0xff]  ;;  %v509_v55 = vld [vmem:[%s6286_s1 + $0xe90] sm:$0xff] }
  0xaa   :  { %1535 = vmatpush1.msra.mxu1 %v333_v15  ;;  %1447 = vmatprep.subr.mxu0 %v70_v16  ;;  %v246_v56 = vld [vmem:[%s6286_s1 + $0x658] sm:$0xff]  ;;  %v245_v58 = vld [vmem:[%s6286_s1 + $0x650] sm:$0xff] }
  0xab   :  { %1536 = vmatprep.subr.mxu1 %v326_v17  ;;  %1448 = vmatpush1.msra.mxu0 %v69_v18  ;;  %v502_v57 = vld [vmem:[%s6286_s1 + $0xe58] sm:$0xff]  ;;  %v501_v59 = vld [vmem:[%s6286_s1 + $0xe50] sm:$0xff] }
  0xac   :  { %1537 = vmatpush1.msra.mxu1 %v325_v19  ;;  %1449 = vmatprep.subr.mxu0 %v62_v20  ;;  %v238_v60 = vld [vmem:[%s6286_s1 + $0x618] sm:$0xff]  ;;  %v237_v62 = vld [vmem:[%s6286_s1 + $0x610] sm:$0xff] }
  0xad   :  { %1538 = vmatprep.subr.mxu1 %v318_v21  ;;  %1450 = vmatpush1.msra.mxu0 %v61_v22  ;;  %v494_v61 = vld [vmem:[%s6286_s1 + $0xe18] sm:$0xff]  ;;  %v493_v63 = vld [vmem:[%s6286_s1 + $0xe10] sm:$0xff] }
  0xae   :  { %1539 = vmatpush1.msra.mxu1 %v317_v23  ;;  %1451 = vmatprep.subr.mxu0 %v54_v24  ;;  %v230_v0 = vld [vmem:[%s6286_s1 + $0x5d8] sm:$0xff]  ;;  %v229_v2 = vld [vmem:[%s6286_s1 + $0x5d0] sm:$0xff] }
  0xaf   :  { %1540 = vmatprep.subr.mxu1 %v310_v25  ;;  %1452 = vmatpush1.msra.mxu0 %v53_v26  ;;  %v486_v1 = vld [vmem:[%s6286_s1 + $0xdd8] sm:$0xff]  ;;  %v485_v3 = vld [vmem:[%s6286_s1 + $0xdd0] sm:$0xff] }
  0xb0   :  { %1541 = vmatpush1.msra.mxu1 %v309_v27  ;;  %1453 = vmatprep.subr.mxu0 %v46_v28  ;;  %v222_v4 = vld [vmem:[%s6286_s1 + $0x598] sm:$0xff]  ;;  %v221_v6 = vld [vmem:[%s6286_s1 + $0x590] sm:$0xff] }
  0xb1   :  { %1542 = vmatprep.subr.mxu1 %v302_v29  ;;  %1454 = vmatpush1.msra.mxu0 %v45_v30  ;;  %v478_v5 = vld [vmem:[%s6286_s1 + $0xd98] sm:$0xff]  ;;  %v477_v7 = vld [vmem:[%s6286_s1 + $0xd90] sm:$0xff] }
  0xb2   :  { %1543 = vmatpush1.msra.mxu1 %v301_v31  ;;  %1455 = vmatprep.subr.mxu0 %v294_v32  ;;  %v214_v8 = vld [vmem:[%s6286_s1 + $0x558] sm:$0xff]  ;;  %v213_v10 = vld [vmem:[%s6286_s1 + $0x550] sm:$0xff]  ;;  %v2527_v32 = vld [vmem:[%s6287_s0 + $0x8] sm:$0xff] }
  0xb3   :  { %1544 = vmatprep.subr.mxu1 %v550_v33  ;;  %1456 = vmatpush2.msra.mxu0 %v293_v34  ;;  %v470_v9 = vld [vmem:[%s6286_s1 + $0xd58] sm:$0xff]  ;;  %v469_v11 = vld [vmem:[%s6286_s1 + $0xd50] sm:$0xff] }
  0xb4   :  { %1545 = vmatpush2.msra.mxu1 %v549_v35  ;;  %1457 = vmatprep.subr.mxu0 %v286_v36  ;;  %v206_v12 = vld [vmem:[%s6286_s1 + $0x518] sm:$0xff]  ;;  %v205_v14 = vld [vmem:[%s6286_s1 + $0x510] sm:$0xff] }
  0xb5   :  { %1546 = vmatprep.subr.mxu1 %v542_v37  ;;  %1458 = vmatpush2.msra.mxu0 %v285_v38  ;;  %v462_v13 = vld [vmem:[%s6286_s1 + $0xd18] sm:$0xff]  ;;  %v461_v15 = vld [vmem:[%s6286_s1 + $0xd10] sm:$0xff]  ;;  %v2529_v38 = vld [vmem:[%s6287_s0] sm:$0xff] }
  0xb6   :  { %1547 = vmatpush2.msra.mxu1 %v541_v39  ;;  %1459 = vmatprep.subr.mxu0 %v278_v40  ;;  %v198_v16 = vld [vmem:[%s6286_s1 + $0x4d8] sm:$0xff]  ;;  %v197_v18 = vld [vmem:[%s6286_s1 + $0x4d0] sm:$0xff] }
  0xb7   :  { %1548 = vmatprep.subr.mxu1 %v534_v41  ;;  %1460 = vmatpush2.msra.mxu0 %v277_v42  ;;  %v454_v17 = vld [vmem:[%s6286_s1 + $0xcd8] sm:$0xff]  ;;  %v453_v19 = vld [vmem:[%s6286_s1 + $0xcd0] sm:$0xff] }
  0xb8   :  { %1549 = vmatpush2.msra.mxu1 %v533_v43  ;;  %1461 = vmatprep.subr.mxu0 %v270_v44  ;;  %v190_v20 = vld [vmem:[%s6286_s1 + $0x498] sm:$0xff]  ;;  %v189_v22 = vld [vmem:[%s6286_s1 + $0x490] sm:$0xff] }
  0xb9   :  { %1550 = vmatprep.subr.mxu1 %v526_v45  ;;  %1462 = vmatpush2.msra.mxu0 %v269_v46  ;;  %v446_v21 = vld [vmem:[%s6286_s1 + $0xc98] sm:$0xff]  ;;  %v445_v23 = vld [vmem:[%s6286_s1 + $0xc90] sm:$0xff] }
  0xba   :  { %1551 = vmatpush2.msra.mxu1 %v525_v47  ;;  %1463 = vmatprep.subr.mxu0 %v262_v48  ;;  %v182_v24 = vld [vmem:[%s6286_s1 + $0x458] sm:$0xff]  ;;  %v181_v26 = vld [vmem:[%s6286_s1 + $0x450] sm:$0xff] }
  0xbb   :  { %1552 = vmatprep.subr.mxu1 %v518_v49  ;;  %1464 = vmatpush2.msra.mxu0 %v261_v50  ;;  %v438_v25 = vld [vmem:[%s6286_s1 + $0xc58] sm:$0xff]  ;;  %v437_v27 = vld [vmem:[%s6286_s1 + $0xc50] sm:$0xff] }
  0xbc   :  { %1553 = vmatpush2.msra.mxu1 %v517_v51  ;;  %1465 = vmatprep.subr.mxu0 %v254_v52  ;;  %v174_v28 = vld [vmem:[%s6286_s1 + $0x418] sm:$0xff]  ;;  %v173_v30 = vld [vmem:[%s6286_s1 + $0x410] sm:$0xff] }
  0xbd   :  { %1554 = vmatprep.subr.mxu1 %v510_v53  ;;  %1466 = vmatpush2.msra.mxu0 %v253_v54  ;;  %v430_v29 = vld [vmem:[%s6286_s1 + $0xc18] sm:$0xff]  ;;  %v429_v31 = vld [vmem:[%s6286_s1 + $0xc10] sm:$0xff] }
  0xbe   :  { %1555 = vmatpush2.msra.mxu1 %v509_v55  ;;  %1467 = vmatprep.subr.mxu0 %v246_v56  ;;  %v678_v33 = vld [vmem:[%s6286_s1 + $0x13d8] sm:$0xff]  ;;  %v677_v36 = vld [vmem:[%s6286_s1 + $0x13d0] sm:$0xff] }
  0xbf   :  { %1556 = vmatprep.subr.mxu1 %v502_v57  ;;  %1468 = vmatpush2.msra.mxu0 %v245_v58  ;;  %v934_v34 = vld [vmem:[%s6286_s1 + $0x1bd8] sm:$0xff]  ;;  %v933_v37 = vld [vmem:[%s6286_s1 + $0x1bd0] sm:$0xff] }
  0xc0   :  { %1557 = vmatpush2.msra.mxu1 %v501_v59  ;;  %1469 = vmatprep.subr.mxu0 %v238_v60  ;;  %v2528_v35 = vld [vmem:[%s6287_s0 + $0x18] sm:$0xff]  ;;  %v2530_v39 = vld [vmem:[%s6287_s0 + $0x10] sm:$0xff] }
  0xc1   :  { %1558 = vmatprep.subr.mxu1 %v494_v61  ;;  %1470 = vmatpush2.msra.mxu0 %v237_v62  ;;  %v670_v40 = vld [vmem:[%s6286_s1 + $0x1398] sm:$0xff]  ;;  %v669_v42 = vld [vmem:[%s6286_s1 + $0x1390] sm:$0xff] }
  0xc2   :  { %1559 = vmatpush2.msra.mxu1 %v493_v63  ;;  %1471 = vmatprep.subr.mxu0 %v230_v0  ;;  %v926_v41 = vld [vmem:[%s6286_s1 + $0x1b98] sm:$0xff]  ;;  %v925_v43 = vld [vmem:[%s6286_s1 + $0x1b90] sm:$0xff] }
  0xc3   :  { %1560 = vmatprep.subr.mxu1 %v486_v1  ;;  %1472 = vmatpush2.msra.mxu0 %v229_v2  ;;  %v662_v44 = vld [vmem:[%s6286_s1 + $0x1358] sm:$0xff]  ;;  %v661_v46 = vld [vmem:[%s6286_s1 + $0x1350] sm:$0xff] }
  0xc4   :  { %1561 = vmatpush2.msra.mxu1 %v485_v3  ;;  %1473 = vmatprep.subr.mxu0 %v222_v4  ;;  %v918_v45 = vld [vmem:[%s6286_s1 + $0x1b58] sm:$0xff]  ;;  %v917_v47 = vld [vmem:[%s6286_s1 + $0x1b50] sm:$0xff] }
  0xc5   :  { %1562 = vmatprep.subr.mxu1 %v478_v5  ;;  %1474 = vmatpush2.msra.mxu0 %v221_v6  ;;  %v654_v48 = vld [vmem:[%s6286_s1 + $0x1318] sm:$0xff]  ;;  %v653_v50 = vld [vmem:[%s6286_s1 + $0x1310] sm:$0xff] }
  0xc6   :  { %1563 = vmatpush2.msra.mxu1 %v477_v7  ;;  %1475 = vmatprep.subr.mxu0 %v214_v8  ;;  %v910_v49 = vld [vmem:[%s6286_s1 + $0x1b18] sm:$0xff]  ;;  %v909_v51 = vld [vmem:[%s6286_s1 + $0x1b10] sm:$0xff] }
  0xc7   :  { %1564 = vmatprep.subr.mxu1 %v470_v9  ;;  %1476 = vmatpush2.msra.mxu0 %v213_v10  ;;  %v646_v52 = vld [vmem:[%s6286_s1 + $0x12d8] sm:$0xff]  ;;  %v645_v54 = vld [vmem:[%s6286_s1 + $0x12d0] sm:$0xff] }
  0xc8   :  { %1565 = vmatpush2.msra.mxu1 %v469_v11  ;;  %1477 = vmatprep.subr.mxu0 %v206_v12  ;;  %v902_v53 = vld [vmem:[%s6286_s1 + $0x1ad8] sm:$0xff]  ;;  %v901_v55 = vld [vmem:[%s6286_s1 + $0x1ad0] sm:$0xff] }
  0xc9   :  { %1566 = vmatprep.subr.mxu1 %v462_v13  ;;  %1478 = vmatpush2.msra.mxu0 %v205_v14  ;;  %v638_v56 = vld [vmem:[%s6286_s1 + $0x1298] sm:$0xff]  ;;  %v637_v58 = vld [vmem:[%s6286_s1 + $0x1290] sm:$0xff] }
  0xca   :  { %1567 = vmatpush2.msra.mxu1 %v461_v15  ;;  %1479 = vmatprep.subr.mxu0 %v198_v16  ;;  %v894_v57 = vld [vmem:[%s6286_s1 + $0x1a98] sm:$0xff]  ;;  %v893_v59 = vld [vmem:[%s6286_s1 + $0x1a90] sm:$0xff] }
  0xcb   :  { %1568 = vmatprep.subr.mxu1 %v454_v17  ;;  %1480 = vmatpush2.msra.mxu0 %v197_v18  ;;  %v630_v60 = vld [vmem:[%s6286_s1 + $0x1258] sm:$0xff]  ;;  %v629_v62 = vld [vmem:[%s6286_s1 + $0x1250] sm:$0xff] }
  0xcc   :  { %1569 = vmatpush2.msra.mxu1 %v453_v19  ;;  %1481 = vmatprep.subr.mxu0 %v190_v20  ;;  %v886_v61 = vld [vmem:[%s6286_s1 + $0x1a58] sm:$0xff]  ;;  %v885_v63 = vld [vmem:[%s6286_s1 + $0x1a50] sm:$0xff] }
  0xcd   :  { %1570 = vmatprep.subr.mxu1 %v446_v21  ;;  %1482 = vmatpush2.msra.mxu0 %v189_v22  ;;  %v622_v0 = vld [vmem:[%s6286_s1 + $0x1218] sm:$0xff]  ;;  %v621_v2 = vld [vmem:[%s6286_s1 + $0x1210] sm:$0xff] }
  0xce   :  { %1571 = vmatpush2.msra.mxu1 %v445_v23  ;;  %1483 = vmatprep.subr.mxu0 %v182_v24  ;;  %v878_v1 = vld [vmem:[%s6286_s1 + $0x1a18] sm:$0xff]  ;;  %v877_v3 = vld [vmem:[%s6286_s1 + $0x1a10] sm:$0xff] }
  0xcf   :  { %1572 = vmatprep.subr.mxu1 %v438_v25  ;;  %1484 = vmatpush2.msra.mxu0 %v181_v26  ;;  %v614_v4 = vld [vmem:[%s6286_s1 + $0x11d8] sm:$0xff]  ;;  %v613_v6 = vld [vmem:[%s6286_s1 + $0x11d0] sm:$0xff] }
  0xd0   :  { %1573 = vmatpush2.msra.mxu1 %v437_v27  ;;  %1485 = vmatprep.subr.mxu0 %v174_v28  ;;  %v870_v5 = vld [vmem:[%s6286_s1 + $0x19d8] sm:$0xff]  ;;  %v869_v7 = vld [vmem:[%s6286_s1 + $0x19d0] sm:$0xff] }
  0xd1   :  { %1574 = vmatprep.subr.mxu1 %v430_v29  ;;  %1486 = vmatpush2.msra.mxu0 %v173_v30  ;;  %v606_v8 = vld [vmem:[%s6286_s1 + $0x1198] sm:$0xff]  ;;  %v605_v10 = vld [vmem:[%s6286_s1 + $0x1190] sm:$0xff] }
  0xd2   :  { %1487 = vmatprep.mubr.f32.mxu0 %v2527_v32  ;;  %1575 = vmatpush2.msra.mxu1 %v429_v31  ;;  %v862_v9 = vld [vmem:[%s6286_s1 + $0x1998] sm:$0xff]  ;;  %v861_v11 = vld [vmem:[%s6286_s1 + $0x1990] sm:$0xff] }
  0xd3   :  { %1576 = vmatprep.mubr.f32.mxu1 %v2528_v35  ;;  %1488 = vmatmul.mubr.f32.vlgmr.msra.gmra.mxu0 %v2529_v38  ;;  %v598_v12 = vld [vmem:[%s6286_s1 + $0x1158] sm:$0xff]  ;;  %v597_v14 = vld [vmem:[%s6286_s1 + $0x1150] sm:$0xff] }
  0xd4   :  { %1577 = vmatmul.mubr.f32.vlgmr.msra.gmra.mxu1 %v2530_v39  ;;  %1601 = vmatprep.subr.mxu0 %v678_v33  ;;  %v854_v13 = vld [vmem:[%s6286_s1 + $0x1958] sm:$0xff]  ;;  %v853_v15 = vld [vmem:[%s6286_s1 + $0x1950] sm:$0xff] }
  0xd5   :  { %1690 = vmatprep.subr.mxu1 %v934_v34  ;;  %1602 = vmatpush1.msra.mxu0 %v677_v36  ;;  %v590_v16 = vld [vmem:[%s6286_s1 + $0x1118] sm:$0xff]  ;;  %v589_v18 = vld [vmem:[%s6286_s1 + $0x1110] sm:$0xff] }
  0xd6   :  { %1691 = vmatpush1.msra.mxu1 %v933_v37  ;;  %1603 = vmatprep.subr.mxu0 %v670_v40  ;;  %v846_v17 = vld [vmem:[%s6286_s1 + $0x1918] sm:$0xff]  ;;  %v845_v19 = vld [vmem:[%s6286_s1 + $0x1910] sm:$0xff] }
  0xd7   :  { %1692 = vmatprep.subr.mxu1 %v926_v41  ;;  %1604 = vmatpush1.msra.mxu0 %v669_v42  ;;  %v582_v20 = vld [vmem:[%s6286_s1 + $0x10d8] sm:$0xff]  ;;  %v581_v22 = vld [vmem:[%s6286_s1 + $0x10d0] sm:$0xff] }
  0xd8   :  { %1693 = vmatpush1.msra.mxu1 %v925_v43  ;;  %1605 = vmatprep.subr.mxu0 %v662_v44  ;;  %v838_v21 = vld [vmem:[%s6286_s1 + $0x18d8] sm:$0xff]  ;;  %v837_v23 = vld [vmem:[%s6286_s1 + $0x18d0] sm:$0xff] }
  0xd9   :  { %1694 = vmatprep.subr.mxu1 %v918_v45  ;;  %1606 = vmatpush1.msra.mxu0 %v661_v46  ;;  %v574_v24 = vld [vmem:[%s6286_s1 + $0x1098] sm:$0xff]  ;;  %v573_v26 = vld [vmem:[%s6286_s1 + $0x1090] sm:$0xff] }
  0xda   :  { %1695 = vmatpush1.msra.mxu1 %v917_v47  ;;  %1607 = vmatprep.subr.mxu0 %v654_v48  ;;  %v830_v25 = vld [vmem:[%s6286_s1 + $0x1898] sm:$0xff]  ;;  %v829_v27 = vld [vmem:[%s6286_s1 + $0x1890] sm:$0xff] }
  0xdb   :  { %1696 = vmatprep.subr.mxu1 %v910_v49  ;;  %1608 = vmatpush1.msra.mxu0 %v653_v50  ;;  %v566_v28 = vld [vmem:[%s6286_s1 + $0x1058] sm:$0xff]  ;;  %v565_v30 = vld [vmem:[%s6286_s1 + $0x1050] sm:$0xff] }
  0xdc   :  { %1697 = vmatpush1.msra.mxu1 %v909_v51  ;;  %1609 = vmatprep.subr.mxu0 %v646_v52  ;;  %v822_v29 = vld [vmem:[%s6286_s1 + $0x1858] sm:$0xff]  ;;  %v821_v31 = vld [vmem:[%s6286_s1 + $0x1850] sm:$0xff] }
  0xdd   :  { %1698 = vmatprep.subr.mxu1 %v902_v53  ;;  %1610 = vmatpush1.msra.mxu0 %v645_v54  ;;  %v558_v32 = vld [vmem:[%s6286_s1 + $0x1018] sm:$0xff]  ;;  %v557_v34 = vld [vmem:[%s6286_s1 + $0x1010] sm:$0xff] }
  0xde   :  { %1699 = vmatpush1.msra.mxu1 %v901_v55  ;;  %1611 = vmatprep.subr.mxu0 %v638_v56  ;;  %v814_v33 = vld [vmem:[%s6286_s1 + $0x1818] sm:$0xff]  ;;  %v813_v35 = vld [vmem:[%s6286_s1 + $0x1810] sm:$0xff] }
  0xdf   :  { %1700 = vmatprep.subr.mxu1 %v894_v57  ;;  %1612 = vmatpush1.msra.mxu0 %v637_v58  ;;  %v806_v36 = vld [vmem:[%s6286_s1 + $0x17d8] sm:$0xff]  ;;  %v805_v38 = vld [vmem:[%s6286_s1 + $0x17d0] sm:$0xff] }
  0xe0   :  { %1701 = vmatpush1.msra.mxu1 %v893_v59  ;;  %1613 = vmatprep.subr.mxu0 %v630_v60  ;;  %v1062_v37 = vld [vmem:[%s6286_s1 + $0x1fd8] sm:$0xff]  ;;  %v1061_v39 = vld [vmem:[%s6286_s1 + $0x1fd0] sm:$0xff] }
  0xe1   :  { %1702 = vmatprep.subr.mxu1 %v886_v61  ;;  %1614 = vmatpush1.msra.mxu0 %v629_v62  ;;  %v798_v40 = vld [vmem:[%s6286_s1 + $0x1798] sm:$0xff]  ;;  %v797_v42 = vld [vmem:[%s6286_s1 + $0x1790] sm:$0xff] }
  0xe2   :  { %1703 = vmatpush1.msra.mxu1 %v885_v63  ;;  %1615 = vmatprep.subr.mxu0 %v622_v0  ;;  %v1054_v41 = vld [vmem:[%s6286_s1 + $0x1f98] sm:$0xff]  ;;  %v1053_v43 = vld [vmem:[%s6286_s1 + $0x1f90] sm:$0xff] }
  0xe3   :  { %1704 = vmatprep.subr.mxu1 %v878_v1  ;;  %1616 = vmatpush1.msra.mxu0 %v621_v2  ;;  %v790_v44 = vld [vmem:[%s6286_s1 + $0x1758] sm:$0xff]  ;;  %v789_v46 = vld [vmem:[%s6286_s1 + $0x1750] sm:$0xff] }
  0xe4   :  { %1705 = vmatpush1.msra.mxu1 %v877_v3  ;;  %1617 = vmatprep.subr.mxu0 %v614_v4  ;;  %v1046_v45 = vld [vmem:[%s6286_s1 + $0x1f58] sm:$0xff]  ;;  %v1045_v47 = vld [vmem:[%s6286_s1 + $0x1f50] sm:$0xff] }
  0xe5   :  { %1706 = vmatprep.subr.mxu1 %v870_v5  ;;  %1618 = vmatpush1.msra.mxu0 %v613_v6  ;;  %v782_v48 = vld [vmem:[%s6286_s1 + $0x1718] sm:$0xff]  ;;  %v781_v50 = vld [vmem:[%s6286_s1 + $0x1710] sm:$0xff] }
  0xe6   :  { %1707 = vmatpush1.msra.mxu1 %v869_v7  ;;  %1619 = vmatprep.subr.mxu0 %v606_v8  ;;  %v1038_v49 = vld [vmem:[%s6286_s1 + $0x1f18] sm:$0xff]  ;;  %v1037_v51 = vld [vmem:[%s6286_s1 + $0x1f10] sm:$0xff] }
  0xe7   :  { %1708 = vmatprep.subr.mxu1 %v862_v9  ;;  %1620 = vmatpush1.msra.mxu0 %v605_v10  ;;  %v774_v52 = vld [vmem:[%s6286_s1 + $0x16d8] sm:$0xff]  ;;  %v773_v54 = vld [vmem:[%s6286_s1 + $0x16d0] sm:$0xff]  ;;  %v2531_v10 = vld [vmem:[%s6287_s0 + $0x48] sm:$0xff] }
  0xe8   :  { %1709 = vmatpush1.msra.mxu1 %v861_v11  ;;  %1621 = vmatprep.subr.mxu0 %v598_v12  ;;  %v1030_v53 = vld [vmem:[%s6286_s1 + $0x1ed8] sm:$0xff]  ;;  %v1029_v55 = vld [vmem:[%s6286_s1 + $0x1ed0] sm:$0xff] }
  0xe9   :  { %1710 = vmatprep.subr.mxu1 %v854_v13  ;;  %1622 = vmatpush1.msra.mxu0 %v597_v14  ;;  %v766_v56 = vld [vmem:[%s6286_s1 + $0x1698] sm:$0xff]  ;;  %v765_v58 = vld [vmem:[%s6286_s1 + $0x1690] sm:$0xff] }
  0xea   :  { %1711 = vmatpush1.msra.mxu1 %v853_v15  ;;  %1623 = vmatprep.subr.mxu0 %v590_v16  ;;  %v1022_v57 = vld [vmem:[%s6286_s1 + $0x1e98] sm:$0xff]  ;;  %v1021_v59 = vld [vmem:[%s6286_s1 + $0x1e90] sm:$0xff]  ;;  %v2533_v16 = vld [vmem:[%s6287_s0 + $0x40] sm:$0xff] }
  0xeb   :  { %1712 = vmatprep.subr.mxu1 %v846_v17  ;;  %1624 = vmatpush1.msra.mxu0 %v589_v18  ;;  %v758_v60 = vld [vmem:[%s6286_s1 + $0x1658] sm:$0xff]  ;;  %v757_v62 = vld [vmem:[%s6286_s1 + $0x1650] sm:$0xff] }
  0xec   :  { %1713 = vmatpush1.msra.mxu1 %v845_v19  ;;  %1625 = vmatprep.subr.mxu0 %v582_v20  ;;  %v1014_v61 = vld [vmem:[%s6286_s1 + $0x1e58] sm:$0xff]  ;;  %v1013_v63 = vld [vmem:[%s6286_s1 + $0x1e50] sm:$0xff] }
  0xed   :  { %1714 = vmatprep.subr.mxu1 %v838_v21  ;;  %1626 = vmatpush1.msra.mxu0 %v581_v22  ;;  %v750_v0 = vld [vmem:[%s6286_s1 + $0x1618] sm:$0xff]  ;;  %v749_v2 = vld [vmem:[%s6286_s1 + $0x1610] sm:$0xff]  ;;  %v2535_v22 = vld [vmem:[%s6287_s0 + $0x88] sm:$0xff] }
  0xee   :  { %1715 = vmatpush1.msra.mxu1 %v837_v23  ;;  %1627 = vmatprep.subr.mxu0 %v574_v24  ;;  %v1006_v1 = vld [vmem:[%s6286_s1 + $0x1e18] sm:$0xff]  ;;  %v1005_v3 = vld [vmem:[%s6286_s1 + $0x1e10] sm:$0xff] }
  0xef   :  { %1716 = vmatprep.subr.mxu1 %v830_v25  ;;  %1628 = vmatpush1.msra.mxu0 %v573_v26  ;;  %v742_v4 = vld [vmem:[%s6286_s1 + $0x15d8] sm:$0xff]  ;;  %v741_v6 = vld [vmem:[%s6286_s1 + $0x15d0] sm:$0xff] }
  0xf0   :  { %1717 = vmatpush1.msra.mxu1 %v829_v27  ;;  %1629 = vmatprep.subr.mxu0 %v566_v28  ;;  %v998_v5 = vld [vmem:[%s6286_s1 + $0x1dd8] sm:$0xff]  ;;  %v997_v7 = vld [vmem:[%s6286_s1 + $0x1dd0] sm:$0xff]  ;;  %v2537_v28 = vld [vmem:[%s6287_s0 + $0x80] sm:$0xff] }
  0xf1   :  { %1718 = vmatprep.subr.mxu1 %v822_v29  ;;  %1630 = vmatpush1.msra.mxu0 %v565_v30  ;;  %v734_v8 = vld [vmem:[%s6286_s1 + $0x1598] sm:$0xff]  ;;  %v733_v12 = vld [vmem:[%s6286_s1 + $0x1590] sm:$0xff] }
  0xf2   :  { %1719 = vmatpush1.msra.mxu1 %v821_v31  ;;  %1631 = vmatprep.subr.mxu0 %v558_v32  ;;  %v990_v9 = vld [vmem:[%s6286_s1 + $0x1d98] sm:$0xff]  ;;  %v989_v13 = vld [vmem:[%s6286_s1 + $0x1d90] sm:$0xff] }
  0xf3   :  { %1720 = vmatprep.subr.mxu1 %v814_v33  ;;  %1632 = vmatpush1.msra.mxu0 %v557_v34  ;;  %v2532_v11 = vld [vmem:[%s6287_s0 + $0x58] sm:$0xff]  ;;  %v2534_v17 = vld [vmem:[%s6287_s0 + $0x50] sm:$0xff]  ;;  %v2539_v34 = vld [vmem:[%s6287_s0 + $0xc8] sm:$0xff] }
  0xf4   :  { %1721 = vmatpush1.msra.mxu1 %v813_v35  ;;  %1633 = vmatprep.subr.mxu0 %v806_v36  ;;  %v726_v14 = vld [vmem:[%s6286_s1 + $0x1558] sm:$0xff]  ;;  %v725_v18 = vld [vmem:[%s6286_s1 + $0x1550] sm:$0xff] }
  0xf5   :  { %1722 = vmatprep.subr.mxu1 %v1062_v37  ;;  %1634 = vmatpush2.msra.mxu0 %v805_v38  ;;  %v982_v15 = vld [vmem:[%s6286_s1 + $0x1d58] sm:$0xff]  ;;  %v981_v19 = vld [vmem:[%s6286_s1 + $0x1d50] sm:$0xff] }
  0xf6   :  { %1723 = vmatpush2.msra.mxu1 %v1061_v39  ;;  %1635 = vmatprep.subr.mxu0 %v798_v40  ;;  %v718_v20 = vld [vmem:[%s6286_s1 + $0x1518] sm:$0xff]  ;;  %v717_v24 = vld [vmem:[%s6286_s1 + $0x1510] sm:$0xff]  ;;  %v2541_v40 = vld [vmem:[%s6287_s0 + $0xc0] sm:$0xff] }
  0xf7   :  { %1724 = vmatprep.subr.mxu1 %v1054_v41  ;;  %1636 = vmatpush2.msra.mxu0 %v797_v42  ;;  %v974_v21 = vld [vmem:[%s6286_s1 + $0x1d18] sm:$0xff]  ;;  %v973_v25 = vld [vmem:[%s6286_s1 + $0x1d10] sm:$0xff] }
  0xf8   :  { %1725 = vmatpush2.msra.mxu1 %v1053_v43  ;;  %1637 = vmatprep.subr.mxu0 %v790_v44  ;;  %v2536_v23 = vld [vmem:[%s6287_s0 + $0x98] sm:$0xff]  ;;  %v2538_v29 = vld [vmem:[%s6287_s0 + $0x90] sm:$0xff] }
  0xf9   :  { %1726 = vmatprep.subr.mxu1 %v1046_v45  ;;  %1638 = vmatpush2.msra.mxu0 %v789_v46  ;;  %v710_v26 = vld [vmem:[%s6286_s1 + $0x14d8] sm:$0xff]  ;;  %v709_v30 = vld [vmem:[%s6286_s1 + $0x14d0] sm:$0xff] }
  0xfa   :  { %1727 = vmatpush2.msra.mxu1 %v1045_v47  ;;  %1639 = vmatprep.subr.mxu0 %v782_v48  ;;  %v966_v27 = vld [vmem:[%s6286_s1 + $0x1cd8] sm:$0xff]  ;;  %v965_v31 = vld [vmem:[%s6286_s1 + $0x1cd0] sm:$0xff]  ;;  %v168_v48 = vld [vmem:[%s6286_s1 + $0x3e8] sm:$0xff] }
  0xfb   :  { %1728 = vmatprep.subr.mxu1 %v1038_v49  ;;  %1640 = vmatpush2.msra.mxu0 %v781_v50  ;;  %v702_v32 = vld [vmem:[%s6286_s1 + $0x1498] sm:$0xff]  ;;  %v701_v36 = vld [vmem:[%s6286_s1 + $0x1490] sm:$0xff]  ;;  %v2543_v49 = vld [vmem:[%s6287_s0 + $0x28] sm:$0xff] }
  0xfc   :  { %1729 = vmatpush2.msra.mxu1 %v1037_v51  ;;  %1641 = vmatprep.subr.mxu0 %v774_v52  ;;  %v958_v33 = vld [vmem:[%s6286_s1 + $0x1c98] sm:$0xff]  ;;  %v957_v37 = vld [vmem:[%s6286_s1 + $0x1c90] sm:$0xff]  ;;  %v424_v50 = vld [vmem:[%s6286_s1 + $0xbe8] sm:$0xff] }
  0xfd   :  { %1730 = vmatprep.subr.mxu1 %v1030_v53  ;;  %1642 = vmatpush2.msra.mxu0 %v773_v54  ;;  %v2540_v35 = vld [vmem:[%s6287_s0 + $0xd8] sm:$0xff]  ;;  %v2542_v41 = vld [vmem:[%s6287_s0 + $0xd0] sm:$0xff]  ;;  %v2544_v51 = vld [vmem:[%s6287_s0 + $0x20] sm:$0xff] }
  0xfe   :  { %1731 = vmatpush2.msra.mxu1 %v1029_v55  ;;  %1643 = vmatprep.subr.mxu0 %v766_v56  ;;  %v694_v38 = vld [vmem:[%s6286_s1 + $0x1458] sm:$0xff]  ;;  %v693_v42 = vld [vmem:[%s6286_s1 + $0x1450] sm:$0xff]  ;;  %v167_v52 = vld [vmem:[%s6286_s1 + $0x3e0] sm:$0xff] }
  0xff   :  { %1732 = vmatprep.subr.mxu1 %v1022_v57  ;;  %1644 = vmatpush2.msra.mxu0 %v765_v58  ;;  %v950_v39 = vld [vmem:[%s6286_s1 + $0x1c58] sm:$0xff]  ;;  %v949_v43 = vld [vmem:[%s6286_s1 + $0x1c50] sm:$0xff]  ;;  %v423_v53 = vld [vmem:[%s6286_s1 + $0xbe0] sm:$0xff] }
 0x100   :  { %1733 = vmatpush2.msra.mxu1 %v1021_v59  ;;  %1645 = vmatprep.subr.mxu0 %v758_v60  ;;  %v686_v44 = vld [vmem:[%s6286_s1 + $0x1418] sm:$0xff]  ;;  %v685_v46 = vld [vmem:[%s6286_s1 + $0x1410] sm:$0xff]  ;;  %v160_v55 = vld [vmem:[%s6286_s1 + $0x3a8] sm:$0xff] }
 0x101   :  { %1734 = vmatprep.subr.mxu1 %v1014_v61  ;;  %1646 = vmatpush2.msra.mxu0 %v757_v62  ;;  %v942_v45 = vld [vmem:[%s6286_s1 + $0x1c18] sm:$0xff]  ;;  %v941_v47 = vld [vmem:[%s6286_s1 + $0x1c10] sm:$0xff]  ;;  %v416_v56 = vld [vmem:[%s6286_s1 + $0xba8] sm:$0xff] }
 0x102   :  { %1735 = vmatpush2.msra.mxu1 %v1013_v63  ;;  %1647 = vmatprep.subr.mxu0 %v750_v0  ;;  %v2545_v54 = vld [vmem:[%s6287_s0 + $0x38] sm:$0xff]  ;;  %v2546_v57 = vld [vmem:[%s6287_s0 + $0x30] sm:$0xff]  ;;  %v159_v58 = vld [vmem:[%s6286_s1 + $0x3a0] sm:$0xff] }
 0x103   :  { %1736 = vmatprep.subr.mxu1 %v1006_v1  ;;  %1648 = vmatpush2.msra.mxu0 %v749_v2  ;;  %v415_v59 = vld [vmem:[%s6286_s1 + $0xba0] sm:$0xff]  ;;  %v152_v60 = vld [vmem:[%s6286_s1 + $0x368] sm:$0xff] }
 0x104   :  { %1737 = vmatpush2.msra.mxu1 %v1005_v3  ;;  %1649 = vmatprep.subr.mxu0 %v742_v4  ;;  %v408_v61 = vld [vmem:[%s6286_s1 + $0xb68] sm:$0xff]  ;;  %v151_v63 = vld [vmem:[%s6286_s1 + $0x360] sm:$0xff]  ;;  %v2549_v4 = vld [vmem:[%s6287_s0 + $0x78] sm:$0xff] }
 0x105   :  { %1738 = vmatprep.subr.mxu1 %v998_v5  ;;  %1650 = vmatpush2.msra.mxu0 %v741_v6  ;;  %v2547_v62 = vld [vmem:[%s6287_s0 + $0x68] sm:$0xff]  ;;  %v2548_v0 = vld [vmem:[%s6287_s0 + $0x60] sm:$0xff] }
 0x106   :  { %1739 = vmatpush2.msra.mxu1 %v997_v7  ;;  %1493 = vmatprep.mubr.f32.mxu0 %v2531_v10  ;;  %v407_v1 = vld [vmem:[%s6286_s1 + $0xb60] sm:$0xff]  ;;  %v144_v2 = vld [vmem:[%s6286_s1 + $0x328] sm:$0xff]  ;;  %v2550_v7 = vld [vmem:[%s6287_s0 + $0x70] sm:$0xff] }
 0x107   :  { %1582 = vmatprep.mubr.f32.mxu1 %v2532_v11  ;;  %1651 = vmatprep.subr.mxu0 %v734_v8  ;;  %v400_v3 = vld [vmem:[%s6286_s1 + $0xb28] sm:$0xff]  ;;  %v143_v5 = vld [vmem:[%s6286_s1 + $0x320] sm:$0xff] }
 0x108   :  { %1740 = vmatprep.subr.mxu1 %v990_v9  ;;  %1494 = vmatmul.mubr.f32.gmra.mxu0 %v2533_v16  ;;  %v399_v6 = vld [vmem:[%s6286_s1 + $0xb20] sm:$0xff]  ;;  %v136_v8 = vld [vmem:[%s6286_s1 + $0x2e8] sm:$0xff]  ;;  %v2553_v16 = vld [vmem:[%s6287_s0 + $0xb8] sm:$0xff] }
 0x109   :  { %1583 = vmatmul.mubr.f32.gmra.mxu1 %v2534_v17  ;;  %1652 = vmatpush2.msra.mxu0 %v733_v12  ;;  %v392_v9 = vld [vmem:[%s6286_s1 + $0xae8] sm:$0xff]  ;;  %v135_v11 = vld [vmem:[%s6286_s1 + $0x2e0] sm:$0xff] }
 0x10a   :  { %1741 = vmatpush2.msra.mxu1 %v989_v13  ;;  %1653 = vmatprep.subr.mxu0 %v726_v14  ;;  %v2551_v10 = vld [vmem:[%s6287_s0 + $0xa8] sm:$0xff]  ;;  %v2552_v12 = vld [vmem:[%s6287_s0 + $0xa0] sm:$0xff] }
 0x10b   :  { %1742 = vmatprep.subr.mxu1 %v982_v15  ;;  %1654 = vmatpush2.msra.mxu0 %v725_v18  ;;  %v391_v13 = vld [vmem:[%s6286_s1 + $0xae0] sm:$0xff]  ;;  %v128_v14 = vld [vmem:[%s6286_s1 + $0x2a8] sm:$0xff] }
 0x10c   :  { %1743 = vmatpush2.msra.mxu1 %v981_v19  ;;  %1499 = vmatprep.mubr.f32.mxu0 %v2535_v22  ;;  %v384_v15 = vld [vmem:[%s6286_s1 + $0xaa8] sm:$0xff]  ;;  %v127_v17 = vld [vmem:[%s6286_s1 + $0x2a0] sm:$0xff]  ;;  %v2554_v19 = vld [vmem:[%s6287_s0 + $0xb0] sm:$0xff] }
 0x10d   :  { %1588 = vmatprep.mubr.f32.mxu1 %v2536_v23  ;;  %1655 = vmatprep.subr.mxu0 %v718_v20  ;;  %v383_v18 = vld [vmem:[%s6286_s1 + $0xaa0] sm:$0xff]  ;;  %v120_v20 = vld [vmem:[%s6286_s1 + $0x268] sm:$0xff] }
 0x10e   :  { %1744 = vmatprep.subr.mxu1 %v974_v21  ;;  %1500 = vmatmul.mubr.f32.gmra.mxu0 %v2537_v28  ;;  %v376_v21 = vld [vmem:[%s6286_s1 + $0xa68] sm:$0xff]  ;;  %v119_v23 = vld [vmem:[%s6286_s1 + $0x260] sm:$0xff]  ;;  %v2557_v28 = vld [vmem:[%s6287_s0 + $0xf8] sm:$0xff] }
 0x10f   :  { %1589 = vmatmul.mubr.f32.gmra.mxu1 %v2538_v29  ;;  %1656 = vmatpush2.msra.mxu0 %v717_v24  ;;  %v2555_v22 = vld [vmem:[%s6287_s0 + $0xe8] sm:$0xff]  ;;  %v2556_v24 = vld [vmem:[%s6287_s0 + $0xe0] sm:$0xff] }
 0x110   :  { %1745 = vmatpush2.msra.mxu1 %v973_v25  ;;  %1657 = vmatprep.subr.mxu0 %v710_v26  ;;  %v375_v25 = vld [vmem:[%s6286_s1 + $0xa60] sm:$0xff]  ;;  %v112_v26 = vld [vmem:[%s6286_s1 + $0x228] sm:$0xff] }
 0x111   :  { %1746 = vmatprep.subr.mxu1 %v966_v27  ;;  %1658 = vmatpush2.msra.mxu0 %v709_v30  ;;  %v368_v27 = vld [vmem:[%s6286_s1 + $0xa28] sm:$0xff]  ;;  %v111_v29 = vld [vmem:[%s6286_s1 + $0x220] sm:$0xff] }
 0x112   :  { %1747 = vmatpush2.msra.mxu1 %v965_v31  ;;  %1505 = vmatprep.mubr.f32.mxu0 %v2539_v34  ;;  %v367_v30 = vld [vmem:[%s6286_s1 + $0xa20] sm:$0xff]  ;;  %v104_v31 = vld [vmem:[%s6286_s1 + $0x1e8] sm:$0xff] }
 0x113   :  { %1594 = vmatprep.mubr.f32.mxu1 %v2540_v35  ;;  %1659 = vmatprep.subr.mxu0 %v702_v32  ;;  %v360_v32 = vld [vmem:[%s6286_s1 + $0x9e8] sm:$0xff]  ;;  %v103_v34 = vld [vmem:[%s6286_s1 + $0x1e0] sm:$0xff] }
 0x114   :  { %1748 = vmatprep.subr.mxu1 %v958_v33  ;;  %1506 = vmatmul.mubr.f32.gmra.mxu0 %v2541_v40  ;;  %v2558_v33 = vld [vmem:[%s6287_s0 + $0xf0] sm:$0xff]  ;;  %v359_v35 = vld [vmem:[%s6286_s1 + $0x9e0] sm:$0xff] }
 0x115   :  { %1595 = vmatmul.mubr.f32.gmra.mxu1 %v2542_v41  ;;  %1660 = vmatpush2.msra.mxu0 %v701_v36  ;;  %v96_v36 = vld [vmem:[%s6286_s1 + $0x1a8] sm:$0xff]  ;;  %v95_v40 = vld [vmem:[%s6286_s1 + $0x1a0] sm:$0xff] }
 0x116   :  { %1749 = vmatpush2.msra.mxu1 %v957_v37  ;;  %1661 = vmatprep.subr.mxu0 %v694_v38  ;;  %v352_v37 = vld [vmem:[%s6286_s1 + $0x9a8] sm:$0xff]  ;;  %v4480_v38 = vpop.f32.mrf.mxu0  ;;  %v351_v41 = vld [vmem:[%s6286_s1 + $0x9a0] sm:$0xff] }
 0x117   :  { %1750 = vmatprep.subr.mxu1 %v950_v39  ;;  %1662 = vmatpush2.msra.mxu0 %v693_v42  ;;  %v4482_v39 = vpop.f32.mrf.mxu1  ;;  %v88_v42 = vld [vmem:[%s6286_s1 + $0x168] sm:$0xff] }
 0x118   :  { %1751 = vmatpush2.msra.mxu1 %v949_v43  ;;  %1663 = vmatprep.subr.mxu0 %v686_v44  ;;  %v344_v43 = vld [vmem:[%s6286_s1 + $0x968] sm:$0xff]  ;;  %v87_v44 = vld [vmem:[%s6286_s1 + $0x160] sm:$0xff] }
 0x119   :  { %1752 = vmatprep.subr.mxu1 %v942_v45  ;;  %1664 = vmatpush2.msra.mxu0 %v685_v46  ;;  %v343_v45 = vld [vmem:[%s6286_s1 + $0x960] sm:$0xff]  ;;  %v80_v46 = vld [vmem:[%s6286_s1 + $0x128] sm:$0xff] }
 0x11a   :  { %1665 = vmatprep.mubr.f32.mxu0 %v2543_v49  ;;  %1753 = vmatpush2.msra.mxu1 %v941_v47  ;;  %v336_v47 = vld [vmem:[%s6286_s1 + $0x928] sm:$0xff]  ;;  %v4510_v49 = vpop.f32.mrf.mxu1 }
 0x11b   :  { %1666 = vmatmul.mubr.f32.vlgmr.msra.gmra.mxu0 %v2544_v51  ;;  %1754 = vmatprep.mubr.f32.mxu1 %v2545_v54  ;;  %v335_v51 = vld [vmem:[%s6286_s1 + $0x920] sm:$0xff] }
 0x11c   :  { %1779 = vmatprep.subr.mxu0 %v168_v48  ;;  %1868 = vmatprep.subr.mxu1 %v424_v50  ;;  %v4508_v48 = vpop.f32.mrf.mxu0  ;;  %v79_v50 = vld [vmem:[%s6286_s1 + $0x120] sm:$0xff] }
 0x11d   :  { %1755 = vmatmul.mubr.f32.vlgmr.msra.gmra.mxu1 %v2546_v57  ;;  %1780 = vmatpush1.msra.mxu0 %v167_v52  ;;  %v72_v52 = vld [vmem:[%s6286_s1 + $0xe8] sm:$0xff]  ;;  %v71_v54 = vld [vmem:[%s6286_s1 + $0xe0] sm:$0xff] }
 0x11e   :  { %1869 = vmatpush1.msra.mxu1 %v423_v53  ;;  %1781 = vmatprep.subr.mxu0 %v160_v55  ;;  %v328_v53 = vld [vmem:[%s6286_s1 + $0x8e8] sm:$0xff]  ;;  %v327_v55 = vld [vmem:[%s6286_s1 + $0x8e0] sm:$0xff] }
 0x11f   :  { %1870 = vmatprep.subr.mxu1 %v416_v56  ;;  %1671 = vmatprep.mubr.f32.mxu0 %v2547_v62 }
 0x120   :  { %1782 = vmatpush1.msra.mxu0 %v159_v58  ;;  %1871 = vmatpush1.msra.mxu1 %v415_v59  ;;  %v64_v58 = vld [vmem:[%s6286_s1 + $0xa8] sm:$0xff] }
 0x121   :  { %1672 = vmatmul.mubr.f32.gmra.mxu0 %v2548_v0  ;;  %1783 = vmatprep.subr.mxu0 %v152_v60  ;;  %v320_v59 = vld [vmem:[%s6286_s1 + $0x8a8] sm:$0xff]  ;;  %v63_v60 = vld [vmem:[%s6286_s1 + $0xa0] sm:$0xff] }
 0x122   :  { %1872 = vmatprep.subr.mxu1 %v408_v61  ;;  %1760 = vmatprep.mubr.f32.mxu1 %v2549_v4  ;;  %v319_v61 = vld [vmem:[%s6286_s1 + $0x8a0] sm:$0xff]  ;;  %v56_v0 = vld [vmem:[%s6286_s1 + $0x68] sm:$0xff] }
 0x123   :  { %1784 = vmatpush1.msra.mxu0 %v151_v63  ;;  %1873 = vmatpush1.msra.mxu1 %v407_v1  ;;  %v312_v1 = vld [vmem:[%s6286_s1 + $0x868] sm:$0xff] }
 0x124   :  { %1785 = vmatprep.subr.mxu0 %v144_v2  ;;  %1761 = vmatmul.mubr.f32.gmra.mxu1 %v2550_v7  ;;  %v55_v2 = vld [vmem:[%s6286_s1 + $0x60] sm:$0xff]  ;;  %v48_v4 = vld [vmem:[%s6286_s1 + $0x28] sm:$0xff] }
 0x125   :  { %1874 = vmatprep.subr.mxu1 %v400_v3  ;;  %1677 = vmatprep.mubr.f32.mxu0 %v2551_v10  ;;  %v311_v3 = vld [vmem:[%s6286_s1 + $0x860] sm:$0xff]  ;;  %v296_v10 = vld [vmem:[%s6286_s1 + $0x7e8] sm:$0xff] }
 0x126   :  { %1786 = vmatpush1.msra.mxu0 %v143_v5  ;;  %1875 = vmatpush1.msra.mxu1 %v399_v6  ;;  %v304_v5 = vld [vmem:[%s6286_s1 + $0x828] sm:$0xff]  ;;  %v47_v6 = vld [vmem:[%s6286_s1 + $0x20] sm:$0xff] }
 0x127   :  { %1678 = vmatmul.mubr.f32.gmra.mxu0 %v2552_v12  ;;  %1787 = vmatprep.subr.mxu0 %v136_v8  ;;  %v303_v7 = vld [vmem:[%s6286_s1 + $0x820] sm:$0xff] }
 0x128   :  { %1876 = vmatprep.subr.mxu1 %v392_v9  ;;  %1766 = vmatprep.mubr.f32.mxu1 %v2553_v16  ;;  %v295_v12 = vld [vmem:[%s6286_s1 + $0x7e0] sm:$0xff]  ;;  %v544_v16 = vld [vmem:[%s6286_s1 + $0xfa8] sm:$0xff] }
 0x129   :  { %1788 = vmatpush1.msra.mxu0 %v135_v11  ;;  %1877 = vmatpush1.msra.mxu1 %v391_v13  ;;  %v552_v11 = vld [vmem:[%s6286_s1 + $0xfe8] sm:$0xff]  ;;  %v551_v13 = vld [vmem:[%s6286_s1 + $0xfe0] sm:$0xff] }
 0x12a   :  { %1789 = vmatprep.subr.mxu0 %v128_v14  ;;  %1767 = vmatmul.mubr.f32.gmra.mxu1 %v2554_v19 }
 0x12b   :  { %1878 = vmatprep.subr.mxu1 %v384_v15  ;;  %1683 = vmatprep.mubr.f32.mxu0 %v2555_v22  ;;  %v288_v15 = vld [vmem:[%s6286_s1 + $0x7a8] sm:$0xff]  ;;  %v279_v22 = vld [vmem:[%s6286_s1 + $0x760] sm:$0xff] }
 0x12c   :  { %1790 = vmatpush1.msra.mxu0 %v127_v17  ;;  %1879 = vmatpush1.msra.mxu1 %v383_v18  ;;  %v287_v17 = vld [vmem:[%s6286_s1 + $0x7a0] sm:$0xff] }
 0x12d   :  { %1684 = vmatmul.mubr.f32.gmra.mxu0 %v2556_v24  ;;  %1791 = vmatprep.subr.mxu0 %v120_v20  ;;  %v543_v18 = vld [vmem:[%s6286_s1 + $0xfa0] sm:$0xff]  ;;  %v280_v20 = vld [vmem:[%s6286_s1 + $0x768] sm:$0xff] }
 0x12e   :  { %1880 = vmatprep.subr.mxu1 %v376_v21  ;;  %1772 = vmatprep.mubr.f32.mxu1 %v2557_v28  ;;  %v536_v21 = vld [vmem:[%s6286_s1 + $0xf68] sm:$0xff]  ;;  %v527_v28 = vld [vmem:[%s6286_s1 + $0xf20] sm:$0xff] }
 0x12f   :  { %1792 = vmatpush1.msra.mxu0 %v119_v23  ;;  %1881 = vmatpush1.msra.mxu1 %v375_v25  ;;  %v535_v23 = vld [vmem:[%s6286_s1 + $0xf60] sm:$0xff]  ;;  %v272_v25 = vld [vmem:[%s6286_s1 + $0x728] sm:$0xff] }
 0x130   :  { %1793 = vmatprep.subr.mxu0 %v112_v26  ;;  %1773 = vmatmul.mubr.f32.gmra.mxu1 %v2558_v33  ;;  %v528_v26 = vld [vmem:[%s6286_s1 + $0xf28] sm:$0xff]  ;;  %v263_v33 = vld [vmem:[%s6286_s1 + $0x6e0] sm:$0xff] }
 0x131   :  { %1882 = vmatprep.subr.mxu1 %v368_v27  ;;  %1794 = vmatpush1.msra.mxu0 %v111_v29  ;;  %v271_v27 = vld [vmem:[%s6286_s1 + $0x720] sm:$0xff] }
 0x132   :  { %1883 = vmatpush1.msra.mxu1 %v367_v30  ;;  %1795 = vmatprep.subr.mxu0 %v104_v31  ;;  %v264_v31 = vld [vmem:[%s6286_s1 + $0x6e8] sm:$0xff] }
 0x133   :  { %1884 = vmatprep.subr.mxu1 %v360_v32  ;;  %1796 = vmatpush1.msra.mxu0 %v103_v34  ;;  %v520_v32 = vld [vmem:[%s6286_s1 + $0xee8] sm:$0xff]  ;;  %v519_v34 = vld [vmem:[%s6286_s1 + $0xee0] sm:$0xff] }
 0x134   :  { %1885 = vmatpush1.msra.mxu1 %v359_v35  ;;  %1797 = vmatprep.subr.mxu0 %v96_v36  ;;  %v1223_v35 = vadd.f32 %v4482_v39, %v4480_v38  ;;  %v256_v36 = vld [vmem:[%s6286_s1 + $0x6a8] sm:$0xff]  ;;  %v511_v38 = vld [vmem:[%s6286_s1 + $0xea0] sm:$0xff] }
 0x135   :  { %1886 = vmatprep.subr.mxu1 %v352_v37  ;;  %1798 = vmatpush1.msra.mxu0 %v95_v40  ;;  %v512_v37 = vld [vmem:[%s6286_s1 + $0xea8] sm:$0xff]  ;;  %v255_v40 = vld [vmem:[%s6286_s1 + $0x6a0] sm:$0xff] }
 0x136   :  { %1887 = vmatpush1.msra.mxu1 %v351_v41  ;;  %1799 = vmatprep.subr.mxu0 %v88_v42  ;;  %v1225_v42 = vadd.f32 %v4510_v49, %v4508_v48 }
 0x137   :  { %1888 = vmatprep.subr.mxu1 %v344_v43  ;;  %1800 = vmatpush1.msra.mxu0 %v87_v44  ;;  %v248_v43 = vld [vmem:[%s6286_s1 + $0x668] sm:$0xff] }
 0x138   :  { %1889 = vmatpush1.msra.mxu1 %v343_v45  ;;  %1801 = vmatprep.subr.mxu0 %v80_v46  ;;  %v4530_v56 = vpop.f32.mrf.mxu0  ;;  %v504_v44 = vld [vmem:[%s6286_s1 + $0xe68] sm:$0xff]  ;;  %v247_v46 = vld [vmem:[%s6286_s1 + $0x660] sm:$0xff] }
 0x139   :  { %1890 = vmatprep.subr.mxu1 %v336_v47  ;;  %v4532_v57 = vpop.f32.mrf.mxu1  ;;  %1802 = vmatpush1.msra.mxu0 %v79_v50  ;;  %v503_v47 = vld [vmem:[%s6286_s1 + $0xe60] sm:$0xff]  ;;  %v240_v50 = vld [vmem:[%s6286_s1 + $0x628] sm:$0xff] }
 0x13a   :  { %1891 = vmatpush1.msra.mxu1 %v335_v51  ;;  %1803 = vmatprep.subr.mxu0 %v72_v52  ;;  %v4546_v62 = vpop.f32.mrf.mxu0  ;;  %v496_v51 = vld [vmem:[%s6286_s1 + $0xe28] sm:$0xff] }
 0x13b   :  { %1892 = vmatprep.subr.mxu1 %v328_v53  ;;  %v4548_v63 = vpop.f32.mrf.mxu1  ;;  %1804 = vmatpush1.msra.mxu0 %v71_v54  ;;  %v239_v54 = vld [vmem:[%s6286_s1 + $0x620] sm:$0xff] }
 0x13c   :  { %1893 = vmatpush1.msra.mxu1 %v327_v55  ;;  %1805 = vmatprep.subr.mxu0 %v64_v58  ;;  %v495_v55 = vld [vmem:[%s6286_s1 + $0xe20] sm:$0xff] }
 0x13d   :  { %1894 = vmatprep.subr.mxu1 %v320_v59  ;;  %1806 = vmatpush1.msra.mxu0 %v63_v60  ;;  %v232_v59 = vld [vmem:[%s6286_s1 + $0x5e8] sm:$0xff] }
 0x13e   :  { %1895 = vmatpush1.msra.mxu1 %v319_v61  ;;  %1807 = vmatprep.subr.mxu0 %v56_v0  ;;  %v4574_v8 = vpop.f32.mrf.mxu0  ;;  %v488_v60 = vld [vmem:[%s6286_s1 + $0xde8] sm:$0xff]  ;;  %v1229_v61 = vadd.f32 %v4532_v57, %v4530_v56 }
 0x13f   :  { %1896 = vmatprep.subr.mxu1 %v312_v1  ;;  %v4576_v9 = vpop.f32.mrf.mxu1  ;;  %1808 = vmatpush1.msra.mxu0 %v55_v2  ;;  %v231_v1 = vld [vmem:[%s6286_s1 + $0x5e0] sm:$0xff]  ;;  %v224_v56 = vld [vmem:[%s6286_s1 + $0x5a8] sm:$0xff] }
 0x140   :  { %1897 = vmatpush1.msra.mxu1 %v311_v3  ;;  %1809 = vmatprep.subr.mxu0 %v48_v4  ;;  %v4590_v14 = vpop.f32.mrf.mxu0  ;;  %v487_v2 = vld [vmem:[%s6286_s1 + $0xde0] sm:$0xff]  ;;  %v480_v57 = vld [vmem:[%s6286_s1 + $0xda8] sm:$0xff]  ;;  %v1231_v4 = vadd.f32 %v4548_v63, %v4546_v62 }
 0x141   :  { %1898 = vmatprep.subr.mxu1 %v304_v5  ;;  %1810 = vmatpush1.msra.mxu0 %v47_v6  ;;  %v4604_v19 = vpop.f32.mrf.mxu1  ;;  %v223_v6 = vld [vmem:[%s6286_s1 + $0x5a0] sm:$0xff]  ;;  %v216_v62 = vld [vmem:[%s6286_s1 + $0x568] sm:$0xff] }
 0x142   :  { %1899 = vmatpush1.msra.mxu1 %v303_v7  ;;  %1811 = vmatprep.subr.mxu0 %v296_v10  ;;  %v479_v7 = vld [vmem:[%s6286_s1 + $0xda0] sm:$0xff]  ;;  %v472_v63 = vld [vmem:[%s6286_s1 + $0xd68] sm:$0xff] }
 0x143   :  { %1900 = vmatprep.subr.mxu1 %v552_v11  ;;  %1812 = vmatpush2.msra.mxu0 %v295_v12  ;;  %v215_v12 = vld [vmem:[%s6286_s1 + $0x560] sm:$0xff] }
 0x144   :  { %1901 = vmatpush2.msra.mxu1 %v551_v13  ;;  %1813 = vmatprep.subr.mxu0 %v288_v15  ;;  %v4618_v24 = vpop.f32.mrf.mxu0  ;;  %v471_v13 = vld [vmem:[%s6286_s1 + $0xd60] sm:$0xff] }
 0x145   :  { %1902 = vmatprep.subr.mxu1 %v544_v16  ;;  %1814 = vmatpush2.msra.mxu0 %v287_v17  ;;  %v4632_v29 = vpop.f32.mrf.mxu1  ;;  %v208_v16 = vld [vmem:[%s6286_s1 + $0x528] sm:$0xff] }
 0x146   :  { %1903 = vmatpush2.msra.mxu1 %v543_v18  ;;  %1815 = vmatprep.subr.mxu0 %v280_v20  ;;  %v4634_v30 = vpop.f32.mrf.mxu0  ;;  %v464_v17 = vld [vmem:[%s6286_s1 + $0xd28] sm:$0xff]  ;;  %v1235_v18 = vadd.f32 %v4576_v9, %v4574_v8  ;;  %v1237_v9 = vadd.f32 %v4604_v19, %v4590_v14 }
 0x147   :  { %1904 = vmatprep.subr.mxu1 %v536_v21  ;;  %1816 = vmatpush2.msra.mxu0 %v279_v22  ;;  %v4662_v39 = vpop.f32.mrf.mxu1  ;;  %v207_v21 = vld [vmem:[%s6286_s1 + $0x520] sm:$0xff]  ;;  %v456_v8 = vld [vmem:[%s6286_s1 + $0xce8] sm:$0xff] }
 0x148   :  { %1905 = vmatpush2.msra.mxu1 %v535_v23  ;;  %1817 = vmatprep.subr.mxu0 %v272_v25  ;;  %v463_v22 = vld [vmem:[%s6286_s1 + $0xd20] sm:$0xff]  ;;  %v192_v14 = vld [vmem:[%s6286_s1 + $0x4a8] sm:$0xff] }
 0x149   :  { %1906 = vmatprep.subr.mxu1 %v528_v26  ;;  %1818 = vmatpush2.msra.mxu0 %v271_v27  ;;  %v200_v26 = vld [vmem:[%s6286_s1 + $0x4e8] sm:$0xff] }
 0x14a   :  { %1907 = vmatpush2.msra.mxu1 %v527_v28  ;;  %1819 = vmatprep.subr.mxu0 %v264_v31  ;;  %v199_v31 = vld [vmem:[%s6286_s1 + $0x4e0] sm:$0xff]  ;;  %v448_v19 = vld [vmem:[%s6286_s1 + $0xca8] sm:$0xff] }
 0x14b   :  { %1908 = vmatprep.subr.mxu1 %v520_v32  ;;  %v1311_v41 = vpop.f32.mrf.mxu0  ;;  %1820 = vmatpush2.msra.mxu0 %v263_v33  ;;  %v455_v32 = vld [vmem:[%s6286_s1 + $0xce0] sm:$0xff] }
 0x14c   :  { %1909 = vmatpush2.msra.mxu1 %v519_v34  ;;  %v1312_v45 = vadd.f32 %v1311_v41, %v1223_v35  ;;  %1821 = vmatprep.subr.mxu0 %v256_v36  ;;  %v191_v35 = vld [vmem:[%s6286_s1 + $0x4a0] sm:$0xff]  ;;  %v440_v41 = vld [vmem:[%s6286_s1 + $0xc68] sm:$0xff] }
 0x14d   :  { %1910 = vmatprep.subr.mxu1 %v512_v37  ;;  %v1400_v48 = vpop.f32.mrf.mxu1  ;;  %v1313_v49 = vpop.f32.mrf.mxu0  ;;  %1822 = vmatpush2.msra.mxu0 %v255_v40  ;;  %v447_v36 = vld [vmem:[%s6286_s1 + $0xca0] sm:$0xff]  ;;  %v1241_v40 = vadd.f32 %v4632_v29, %v4618_v24 }
 0x14e   :  { %1911 = vmatpush2.msra.mxu1 %v511_v38  ;;  %v1401_v52 = vadd.f32 %v1400_v48, %v1312_v45  ;;  %v1314_v53 = vadd.f32 %v1313_v49, %v1225_v42  ;;  %1823 = vmatprep.subr.mxu0 %v248_v43  ;;  %v184_v38 = vld [vmem:[%s6286_s1 + $0x468] sm:$0xff]  ;;  %v183_v43 = vld [vmem:[%s6286_s1 + $0x460] sm:$0xff]  ;;  %v1243_v45 = vadd.f32 %v4662_v39, %v4634_v30 }
 0x14f   :  { %1912 = vmatprep.subr.mxu1 %v504_v44  ;;  %v1402_v58 = vpop.f32.mrf.mxu1  ;;  %1824 = vmatpush2.msra.mxu0 %v247_v46  ;;  %v439_v44 = vld [vmem:[%s6286_s1 + $0xc60] sm:$0xff]  ;;  %v176_v46 = vld [vmem:[%s6286_s1 + $0x428] sm:$0xff] }
 0x150   :  { %1913 = vmatpush2.msra.mxu1 %v503_v47  ;;  %2491 = vst [vmem:[%s6288_s2] sm:$0xff] %v1401_v52  ;;  %v1403_v0 = vadd.f32 %v1402_v58, %v1314_v53  ;;  %1825 = vmatprep.subr.mxu0 %v240_v50  ;;  %v432_v47 = vld [vmem:[%s6286_s1 + $0xc28] sm:$0xff]  ;;  %v175_v30 = vld [vmem:[%s6286_s1 + $0x420] sm:$0xff] }
 0x151   :  { %1914 = vmatprep.subr.mxu1 %v496_v51  ;;  %v1317_v3 = vpop.f32.mrf.mxu0  ;;  %1826 = vmatpush2.msra.mxu0 %v239_v54  ;;  %v431_v50 = vld [vmem:[%s6286_s1 + $0xc20] sm:$0xff]  ;;  %v2559_v53 = vld [vmem:[%s6287_s0 + $0x8] sm:$0xff] }
 0x152   :  { %1915 = vmatpush2.msra.mxu1 %v495_v55  ;;  %2492 = vst [vmem:[%s6288_s2 + $0x8] sm:$0xff] %v1403_v0  ;;  %v1318_v5 = vadd.f32 %v1317_v3, %v1229_v61  ;;  %1827 = vmatprep.subr.mxu0 %v232_v59  ;;  %v680_v54 = vld [vmem:[%s6286_s1 + $0x13e8] sm:$0xff]  ;;  %v2560_v59 = vld [vmem:[%s6287_s0 + $0x18] sm:$0xff]  ;;  %v935_v61 = vld [vmem:[%s6286_s1 + $0x1be0] sm:$0xff] }
 0x153   :  { %1916 = vmatprep.subr.mxu1 %v488_v60  ;;  %v1319_v10 = vpop.f32.mrf.mxu0  ;;  %1828 = vmatpush2.msra.mxu0 %v231_v1  ;;  %v936_v55 = vld [vmem:[%s6286_s1 + $0x1be8] sm:$0xff]  ;;  %v679_v60 = vld [vmem:[%s6286_s1 + $0x13e0] sm:$0xff] }
 0x154   :  { %1917 = vmatpush2.msra.mxu1 %v487_v2  ;;  %v1320_v11 = vadd.f32 %v1319_v10, %v1231_v4  ;;  %1829 = vmatprep.subr.mxu0 %v224_v56  ;;  %v1406_v15 = vpop.f32.mrf.mxu1  ;;  %v2561_v1 = vld [vmem:[%s6287_s0] sm:$0xff]  ;;  %v2562_v2 = vld [vmem:[%s6287_s0 + $0x10] sm:$0xff]  ;;  %v672_v3 = vld [vmem:[%s6286_s1 + $0x13a8] sm:$0xff] }
 0x155   :  { %1918 = vmatprep.subr.mxu1 %v480_v57  ;;  %1830 = vmatpush2.msra.mxu0 %v223_v6  ;;  %v1407_v20 = vadd.f32 %v1406_v15, %v1318_v5  ;;  %v928_v56 = vld [vmem:[%s6286_s1 + $0x1ba8] sm:$0xff]  ;;  %v671_v4 = vld [vmem:[%s6286_s1 + $0x13a0] sm:$0xff] }
 0x156   :  { %1919 = vmatpush2.msra.mxu1 %v479_v7  ;;  %1831 = vmatprep.subr.mxu0 %v216_v62  ;;  %v1408_v25 = vpop.f32.mrf.mxu1  ;;  %v927_v5 = vld [vmem:[%s6286_s1 + $0x1ba0] sm:$0xff]  ;;  %v664_v6 = vld [vmem:[%s6286_s1 + $0x1368] sm:$0xff] }
 0x157   :  { %1920 = vmatprep.subr.mxu1 %v472_v63  ;;  %v1323_v23 = vpop.f32.mrf.mxu0  ;;  %1832 = vmatpush2.msra.mxu0 %v215_v12  ;;  %2499 = vst [vmem:[%s6288_s2 + $0x40] sm:$0xff] %v1407_v20  ;;  %v1409_v28 = vadd.f32 %v1408_v25, %v1320_v11  ;;  %v920_v7 = vld [vmem:[%s6286_s1 + $0x1b68] sm:$0xff]  ;;  %v663_v10 = vld [vmem:[%s6286_s1 + $0x1360] sm:$0xff] }
 0x158   :  { %1921 = vmatpush2.msra.mxu1 %v471_v13  ;;  %v1324_v27 = vadd.f32 %v1323_v23, %v1235_v18  ;;  %1833 = vmatprep.subr.mxu0 %v208_v16  ;;  %v919_v62 = vld [vmem:[%s6286_s1 + $0x1b60] sm:$0xff]  ;;  %v656_v63 = vld [vmem:[%s6286_s1 + $0x1328] sm:$0xff] }
 0x159   :  { %1922 = vmatprep.subr.mxu1 %v464_v17  ;;  %v1325_v33 = vpop.f32.mrf.mxu0  ;;  %1834 = vmatpush2.msra.mxu0 %v207_v21  ;;  %2500 = vst [vmem:[%s6288_s2 + $0x48] sm:$0xff] %v1409_v28  ;;  %v912_v11 = vld [vmem:[%s6286_s1 + $0x1b28] sm:$0xff]  ;;  %v655_v12 = vld [vmem:[%s6286_s1 + $0x1320] sm:$0xff] }
 0x15a   :  { %1923 = vmatpush2.msra.mxu1 %v463_v22  ;;  %v1326_v34 = vadd.f32 %v1325_v33, %v1237_v9  ;;  %1835 = vmatprep.subr.mxu0 %v200_v26  ;;  %v1412_v37 = vpop.f32.mrf.mxu1  ;;  %v911_v13 = vld [vmem:[%s6286_s1 + $0x1b20] sm:$0xff]  ;;  %v648_v15 = vld [vmem:[%s6286_s1 + $0x12e8] sm:$0xff] }
 0x15b   :  { %1924 = vmatprep.subr.mxu1 %v456_v8  ;;  %1836 = vmatpush2.msra.mxu0 %v199_v31  ;;  %v1413_v42 = vadd.f32 %v1412_v37, %v1324_v27  ;;  %v904_v16 = vld [vmem:[%s6286_s1 + $0x1ae8] sm:$0xff]  ;;  %v647_v17 = vld [vmem:[%s6286_s1 + $0x12e0] sm:$0xff] }
 0x15c   :  { %1925 = vmatpush2.msra.mxu1 %v455_v32  ;;  %1837 = vmatprep.subr.mxu0 %v192_v14  ;;  %v1414_v29 = vpop.f32.mrf.mxu1  ;;  %v903_v18 = vld [vmem:[%s6286_s1 + $0x1ae0] sm:$0xff]  ;;  %v640_v20 = vld [vmem:[%s6286_s1 + $0x12a8] sm:$0xff] }
 0x15d   :  { %1926 = vmatprep.subr.mxu1 %v448_v19  ;;  %v1329_v24 = vpop.f32.mrf.mxu0  ;;  %1838 = vmatpush2.msra.mxu0 %v191_v35  ;;  %2507 = vst [vmem:[%s6288_s2 + $0x80] sm:$0xff] %v1413_v42  ;;  %v1415_v49 = vadd.f32 %v1414_v29, %v1326_v34  ;;  %v896_v21 = vld [vmem:[%s6286_s1 + $0x1aa8] sm:$0xff]  ;;  %v639_v22 = vld [vmem:[%s6286_s1 + $0x12a0] sm:$0xff] }
 0x15e   :  { %1927 = vmatpush2.msra.mxu1 %v447_v36  ;;  %v1330_v48 = vadd.f32 %v1329_v24, %v1241_v40  ;;  %1839 = vmatprep.subr.mxu0 %v184_v38  ;;  %v895_v23 = vld [vmem:[%s6286_s1 + $0x1aa0] sm:$0xff]  ;;  %v632_v25 = vld [vmem:[%s6286_s1 + $0x1268] sm:$0xff] }
 0x15f   :  { %1928 = vmatprep.subr.mxu1 %v440_v41  ;;  %v1331_v39 = vpop.f32.mrf.mxu0  ;;  %1840 = vmatpush2.msra.mxu0 %v183_v43  ;;  %2508 = vst [vmem:[%s6288_s2 + $0x88] sm:$0xff] %v1415_v49  ;;  %v888_v26 = vld [vmem:[%s6286_s1 + $0x1a68] sm:$0xff]  ;;  %v631_v8 = vld [vmem:[%s6286_s1 + $0x1260] sm:$0xff] }
 0x160   :  { %1929 = vmatpush2.msra.mxu1 %v439_v44  ;;  %v1332_v51 = vadd.f32 %v1331_v39, %v1243_v45  ;;  %1841 = vmatprep.subr.mxu0 %v176_v46  ;;  %v1418_v52 = vpop.f32.mrf.mxu1  ;;  %v887_v9 = vld [vmem:[%s6286_s1 + $0x1a60] sm:$0xff]  ;;  %v624_v27 = vld [vmem:[%s6286_s1 + $0x1228] sm:$0xff] }
 0x161   :  { %1930 = vmatprep.subr.mxu1 %v432_v47  ;;  %1842 = vmatpush2.msra.mxu0 %v175_v30  ;;  %v1419_v58 = vadd.f32 %v1418_v52, %v1330_v48  ;;  %v880_v28 = vld [vmem:[%s6286_s1 + $0x1a28] sm:$0xff]  ;;  %v623_v31 = vld [vmem:[%s6286_s1 + $0x1220] sm:$0xff] }
 0x162   :  { %1843 = vmatprep.mubr.f32.mxu0 %v2559_v53  ;;  %1931 = vmatpush2.msra.mxu1 %v431_v50  ;;  %v1420_v0 = vpop.f32.mrf.mxu1  ;;  %v879_v32 = vld [vmem:[%s6286_s1 + $0x1a20] sm:$0xff]  ;;  %v616_v33 = vld [vmem:[%s6286_s1 + $0x11e8] sm:$0xff] }
 0x163   :  { %1932 = vmatprep.mubr.f32.mxu1 %v2560_v59  ;;  %1844 = vmatmul.mubr.f32.vlgmr.msra.gmra.mxu0 %v2561_v1  ;;  %2515 = vst [vmem:[%s6288_s2 + $0xc0] sm:$0xff] %v1419_v58  ;;  %v1421_v57 = vadd.f32 %v1420_v0, %v1332_v51  ;;  %v872_v14 = vld [vmem:[%s6286_s1 + $0x19e8] sm:$0xff]  ;;  %v615_v19 = vld [vmem:[%s6286_s1 + $0x11e0] sm:$0xff] }
 0x164   :  { %1933 = vmatmul.mubr.f32.vlgmr.msra.gmra.mxu1 %v2562_v2  ;;  %1957 = vmatprep.subr.mxu0 %v680_v54  ;;  %v871_v34 = vld [vmem:[%s6286_s1 + $0x19e0] sm:$0xff]  ;;  %v608_v35 = vld [vmem:[%s6286_s1 + $0x11a8] sm:$0xff] }
 0x165   :  { %2046 = vmatprep.subr.mxu1 %v936_v55  ;;  %1958 = vmatpush1.msra.mxu0 %v679_v60  ;;  %2516 = vst [vmem:[%s6288_s2 + $0xc8] sm:$0xff] %v1421_v57  ;;  %v864_v36 = vld [vmem:[%s6286_s1 + $0x19a8] sm:$0xff]  ;;  %v607_v37 = vld [vmem:[%s6286_s1 + $0x11a0] sm:$0xff] }
 0x166   :  { %2047 = vmatpush1.msra.mxu1 %v935_v61  ;;  %1959 = vmatprep.subr.mxu0 %v672_v3  ;;  %v863_v40 = vld [vmem:[%s6286_s1 + $0x19a0] sm:$0xff]  ;;  %v600_v38 = vld [vmem:[%s6286_s1 + $0x1168] sm:$0xff] }
 0x167   :  { %2048 = vmatprep.subr.mxu1 %v928_v56  ;;  %1960 = vmatpush1.msra.mxu0 %v671_v4  ;;  %v856_v41 = vld [vmem:[%s6286_s1 + $0x1968] sm:$0xff]  ;;  %v599_v42 = vld [vmem:[%s6286_s1 + $0x1160] sm:$0xff] }
 0x168   :  { %2049 = vmatpush1.msra.mxu1 %v927_v5  ;;  %1961 = vmatprep.subr.mxu0 %v664_v6  ;;  %v855_v43 = vld [vmem:[%s6286_s1 + $0x1960] sm:$0xff]  ;;  %v592_v44 = vld [vmem:[%s6286_s1 + $0x1128] sm:$0xff] }
 0x169   :  { %2050 = vmatprep.subr.mxu1 %v920_v7  ;;  %1962 = vmatpush1.msra.mxu0 %v663_v10  ;;  %v848_v24 = vld [vmem:[%s6286_s1 + $0x1928] sm:$0xff]  ;;  %v591_v29 = vld [vmem:[%s6286_s1 + $0x1120] sm:$0xff] }
 0x16a   :  { %2051 = vmatpush1.msra.mxu1 %v919_v62  ;;  %1963 = vmatprep.subr.mxu0 %v656_v63  ;;  %v847_v45 = vld [vmem:[%s6286_s1 + $0x1920] sm:$0xff]  ;;  %v584_v46 = vld [vmem:[%s6286_s1 + $0x10e8] sm:$0xff] }
 0x16b   :  { %2052 = vmatprep.subr.mxu1 %v912_v11  ;;  %1964 = vmatpush1.msra.mxu0 %v655_v12  ;;  %v840_v47 = vld [vmem:[%s6286_s1 + $0x18e8] sm:$0xff]  ;;  %v583_v48 = vld [vmem:[%s6286_s1 + $0x10e0] sm:$0xff] }
 0x16c   :  { %2053 = vmatpush1.msra.mxu1 %v911_v13  ;;  %1965 = vmatprep.subr.mxu0 %v648_v15  ;;  %v839_v49 = vld [vmem:[%s6286_s1 + $0x18e0] sm:$0xff]  ;;  %v576_v30 = vld [vmem:[%s6286_s1 + $0x10a8] sm:$0xff] }
 0x16d   :  { %2054 = vmatprep.subr.mxu1 %v904_v16  ;;  %1966 = vmatpush1.msra.mxu0 %v647_v17  ;;  %v832_v39 = vld [vmem:[%s6286_s1 + $0x18a8] sm:$0xff]  ;;  %v575_v50 = vld [vmem:[%s6286_s1 + $0x10a0] sm:$0xff] }
 0x16e   :  { %2055 = vmatpush1.msra.mxu1 %v903_v18  ;;  %1967 = vmatprep.subr.mxu0 %v640_v20  ;;  %v831_v51 = vld [vmem:[%s6286_s1 + $0x18a0] sm:$0xff]  ;;  %v568_v52 = vld [vmem:[%s6286_s1 + $0x1068] sm:$0xff] }
 0x16f   :  { %2056 = vmatprep.subr.mxu1 %v896_v21  ;;  %1968 = vmatpush1.msra.mxu0 %v639_v22  ;;  %v824_v53 = vld [vmem:[%s6286_s1 + $0x1868] sm:$0xff]  ;;  %v567_v54 = vld [vmem:[%s6286_s1 + $0x1060] sm:$0xff] }
 0x170   :  { %2057 = vmatpush1.msra.mxu1 %v895_v23  ;;  %1969 = vmatprep.subr.mxu0 %v632_v25  ;;  %v823_v55 = vld [vmem:[%s6286_s1 + $0x1860] sm:$0xff]  ;;  %v560_v58 = vld [vmem:[%s6286_s1 + $0x1028] sm:$0xff] }
 0x171   :  { %2058 = vmatprep.subr.mxu1 %v888_v26  ;;  %1970 = vmatpush1.msra.mxu0 %v631_v8  ;;  %v816_v59 = vld [vmem:[%s6286_s1 + $0x1828] sm:$0xff]  ;;  %v559_v60 = vld [vmem:[%s6286_s1 + $0x1020] sm:$0xff] }
 0x172   :  { %2059 = vmatpush1.msra.mxu1 %v887_v9  ;;  %1971 = vmatprep.subr.mxu0 %v624_v27  ;;  %v815_v61 = vld [vmem:[%s6286_s1 + $0x1820] sm:$0xff]  ;;  %v808_v0 = vld [vmem:[%s6286_s1 + $0x17e8] sm:$0xff] }
 0x173   :  { %2060 = vmatprep.subr.mxu1 %v880_v28  ;;  %1972 = vmatpush1.msra.mxu0 %v623_v31  ;;  %v1064_v1 = vld [vmem:[%s6286_s1 + $0x1fe8] sm:$0xff]  ;;  %v807_v2 = vld [vmem:[%s6286_s1 + $0x17e0] sm:$0xff] }
 0x174   :  { %2061 = vmatpush1.msra.mxu1 %v879_v32  ;;  %1973 = vmatprep.subr.mxu0 %v616_v33  ;;  %v1063_v3 = vld [vmem:[%s6286_s1 + $0x1fe0] sm:$0xff]  ;;  %v800_v56 = vld [vmem:[%s6286_s1 + $0x17a8] sm:$0xff] }
 0x175   :  { %2062 = vmatprep.subr.mxu1 %v872_v14  ;;  %1974 = vmatpush1.msra.mxu0 %v615_v19  ;;  %v1056_v57 = vld [vmem:[%s6286_s1 + $0x1fa8] sm:$0xff]  ;;  %v799_v4 = vld [vmem:[%s6286_s1 + $0x17a0] sm:$0xff] }
 0x176   :  { %2063 = vmatpush1.msra.mxu1 %v871_v34  ;;  %1975 = vmatprep.subr.mxu0 %v608_v35  ;;  %v1055_v5 = vld [vmem:[%s6286_s1 + $0x1fa0] sm:$0xff]  ;;  %v792_v6 = vld [vmem:[%s6286_s1 + $0x1768] sm:$0xff] }
 0x177   :  { %2064 = vmatprep.subr.mxu1 %v864_v36  ;;  %1976 = vmatpush1.msra.mxu0 %v607_v37  ;;  %v1048_v7 = vld [vmem:[%s6286_s1 + $0x1f68] sm:$0xff]  ;;  %v791_v10 = vld [vmem:[%s6286_s1 + $0x1760] sm:$0xff] }
 0x178   :  { %2065 = vmatpush1.msra.mxu1 %v863_v40  ;;  %1977 = vmatprep.subr.mxu0 %v600_v38  ;;  %v1047_v62 = vld [vmem:[%s6286_s1 + $0x1f60] sm:$0xff]  ;;  %v784_v63 = vld [vmem:[%s6286_s1 + $0x1728] sm:$0xff]  ;;  %v2564_v40 = vld [vmem:[%s6287_s0 + $0x58] sm:$0xff] }
 0x179   :  { %2066 = vmatprep.subr.mxu1 %v856_v41  ;;  %1978 = vmatpush1.msra.mxu0 %v599_v42  ;;  %v1040_v11 = vld [vmem:[%s6286_s1 + $0x1f28] sm:$0xff]  ;;  %v783_v12 = vld [vmem:[%s6286_s1 + $0x1720] sm:$0xff] }
 0x17a   :  { %2067 = vmatpush1.msra.mxu1 %v855_v43  ;;  %1979 = vmatprep.subr.mxu0 %v592_v44  ;;  %v1039_v13 = vld [vmem:[%s6286_s1 + $0x1f20] sm:$0xff]  ;;  %v776_v15 = vld [vmem:[%s6286_s1 + $0x16e8] sm:$0xff] }
 0x17b   :  { %2068 = vmatprep.subr.mxu1 %v848_v24  ;;  %1980 = vmatpush1.msra.mxu0 %v591_v29  ;;  %v1032_v16 = vld [vmem:[%s6286_s1 + $0x1ee8] sm:$0xff]  ;;  %v775_v17 = vld [vmem:[%s6286_s1 + $0x16e0] sm:$0xff]  ;;  %v2566_v24 = vld [vmem:[%s6287_s0 + $0x50] sm:$0xff] }
 0x17c   :  { %2069 = vmatpush1.msra.mxu1 %v847_v45  ;;  %1981 = vmatprep.subr.mxu0 %v584_v46  ;;  %v1031_v18 = vld [vmem:[%s6286_s1 + $0x1ee0] sm:$0xff]  ;;  %v768_v20 = vld [vmem:[%s6286_s1 + $0x16a8] sm:$0xff] }
 0x17d   :  { %2070 = vmatprep.subr.mxu1 %v840_v47  ;;  %1982 = vmatpush1.msra.mxu0 %v583_v48  ;;  %v1024_v21 = vld [vmem:[%s6286_s1 + $0x1ea8] sm:$0xff]  ;;  %v767_v22 = vld [vmem:[%s6286_s1 + $0x16a0] sm:$0xff] }
 0x17e   :  { %2071 = vmatpush1.msra.mxu1 %v839_v49  ;;  %1983 = vmatprep.subr.mxu0 %v576_v30  ;;  %v1023_v23 = vld [vmem:[%s6286_s1 + $0x1ea0] sm:$0xff]  ;;  %v760_v25 = vld [vmem:[%s6286_s1 + $0x1668] sm:$0xff]  ;;  %v2568_v49 = vld [vmem:[%s6287_s0 + $0x98] sm:$0xff] }
 0x17f   :  { %2072 = vmatprep.subr.mxu1 %v832_v39  ;;  %1984 = vmatpush1.msra.mxu0 %v575_v50  ;;  %v1016_v26 = vld [vmem:[%s6286_s1 + $0x1e68] sm:$0xff]  ;;  %v759_v8 = vld [vmem:[%s6286_s1 + $0x1660] sm:$0xff] }
 0x180   :  { %2073 = vmatpush1.msra.mxu1 %v831_v51  ;;  %1985 = vmatprep.subr.mxu0 %v568_v52  ;;  %v1015_v9 = vld [vmem:[%s6286_s1 + $0x1e60] sm:$0xff]  ;;  %v752_v27 = vld [vmem:[%s6286_s1 + $0x1628] sm:$0xff] }
 0x181   :  { %2074 = vmatprep.subr.mxu1 %v824_v53  ;;  %1986 = vmatpush1.msra.mxu0 %v567_v54  ;;  %v1008_v28 = vld [vmem:[%s6286_s1 + $0x1e28] sm:$0xff]  ;;  %v751_v31 = vld [vmem:[%s6286_s1 + $0x1620] sm:$0xff]  ;;  %v2570_v53 = vld [vmem:[%s6287_s0 + $0x90] sm:$0xff] }
 0x182   :  { %2075 = vmatpush1.msra.mxu1 %v823_v55  ;;  %1987 = vmatprep.subr.mxu0 %v560_v58  ;;  %v1007_v32 = vld [vmem:[%s6286_s1 + $0x1e20] sm:$0xff]  ;;  %v744_v33 = vld [vmem:[%s6286_s1 + $0x15e8] sm:$0xff] }
 0x183   :  { %2076 = vmatprep.subr.mxu1 %v816_v59  ;;  %1988 = vmatpush1.msra.mxu0 %v559_v60  ;;  %v1000_v14 = vld [vmem:[%s6286_s1 + $0x1de8] sm:$0xff]  ;;  %v743_v19 = vld [vmem:[%s6286_s1 + $0x15e0] sm:$0xff] }
 0x184   :  { %2077 = vmatpush1.msra.mxu1 %v815_v61  ;;  %1989 = vmatprep.subr.mxu0 %v808_v0  ;;  %v999_v34 = vld [vmem:[%s6286_s1 + $0x1de0] sm:$0xff]  ;;  %v736_v35 = vld [vmem:[%s6286_s1 + $0x15a8] sm:$0xff]  ;;  %v2572_v61 = vld [vmem:[%s6287_s0 + $0xd8] sm:$0xff] }
 0x185   :  { %2078 = vmatprep.subr.mxu1 %v1064_v1  ;;  %1990 = vmatpush2.msra.mxu0 %v807_v2  ;;  %v992_v36 = vld [vmem:[%s6286_s1 + $0x1da8] sm:$0xff]  ;;  %v735_v38 = vld [vmem:[%s6286_s1 + $0x15a0] sm:$0xff] }
 0x186   :  { %2079 = vmatpush2.msra.mxu1 %v1063_v3  ;;  %1991 = vmatprep.subr.mxu0 %v800_v56  ;;  %v2563_v37 = vld [vmem:[%s6287_s0 + $0x48] sm:$0xff]  ;;  %v991_v41 = vld [vmem:[%s6286_s1 + $0x1da0] sm:$0xff] }
 0x187   :  { %2080 = vmatprep.subr.mxu1 %v1056_v57  ;;  %1992 = vmatpush2.msra.mxu0 %v799_v4  ;;  %v728_v42 = vld [vmem:[%s6286_s1 + $0x1568] sm:$0xff]  ;;  %v2565_v44 = vld [vmem:[%s6287_s0 + $0x40] sm:$0xff]  ;;  %v2574_v57 = vld [vmem:[%s6287_s0 + $0xd0] sm:$0xff] }
 0x188   :  { %2081 = vmatpush2.msra.mxu1 %v1055_v5  ;;  %1993 = vmatprep.subr.mxu0 %v792_v6  ;;  %v984_v43 = vld [vmem:[%s6286_s1 + $0x1d68] sm:$0xff]  ;;  %v727_v29 = vld [vmem:[%s6286_s1 + $0x1560] sm:$0xff] }
 0x189   :  { %2082 = vmatprep.subr.mxu1 %v1048_v7  ;;  %1994 = vmatpush2.msra.mxu0 %v791_v10  ;;  %v983_v45 = vld [vmem:[%s6286_s1 + $0x1d60] sm:$0xff]  ;;  %v720_v46 = vld [vmem:[%s6286_s1 + $0x1528] sm:$0xff] }
 0x18a   :  { %2083 = vmatpush2.msra.mxu1 %v1047_v62  ;;  %1995 = vmatprep.subr.mxu0 %v784_v63  ;;  %v976_v47 = vld [vmem:[%s6286_s1 + $0x1d28] sm:$0xff]  ;;  %v719_v30 = vld [vmem:[%s6286_s1 + $0x1520] sm:$0xff]  ;;  %v170_v63 = vld [vmem:[%s6286_s1 + $0x3f8] sm:$0xff] }
 0x18b   :  { %2084 = vmatprep.subr.mxu1 %v1040_v11  ;;  %1996 = vmatpush2.msra.mxu0 %v783_v12  ;;  %v2567_v48 = vld [vmem:[%s6287_s0 + $0x88] sm:$0xff]  ;;  %v975_v39 = vld [vmem:[%s6286_s1 + $0x1d20] sm:$0xff]  ;;  %v426_v12 = vld [vmem:[%s6286_s1 + $0xbf8] sm:$0xff] }
 0x18c   :  { %2085 = vmatpush2.msra.mxu1 %v1039_v13  ;;  %1997 = vmatprep.subr.mxu0 %v776_v15  ;;  %v712_v50 = vld [vmem:[%s6286_s1 + $0x14e8] sm:$0xff]  ;;  %v2569_v52 = vld [vmem:[%s6287_s0 + $0x80] sm:$0xff]  ;;  %v169_v15 = vld [vmem:[%s6286_s1 + $0x3f0] sm:$0xff] }
 0x18d   :  { %2086 = vmatprep.subr.mxu1 %v1032_v16  ;;  %1998 = vmatpush2.msra.mxu0 %v775_v17  ;;  %v968_v51 = vld [vmem:[%s6286_s1 + $0x1ce8] sm:$0xff]  ;;  %v711_v54 = vld [vmem:[%s6286_s1 + $0x14e0] sm:$0xff]  ;;  %v425_v16 = vld [vmem:[%s6286_s1 + $0xbf0] sm:$0xff] }
 0x18e   :  { %2087 = vmatpush2.msra.mxu1 %v1031_v18  ;;  %1999 = vmatprep.subr.mxu0 %v768_v20  ;;  %v967_v55 = vld [vmem:[%s6286_s1 + $0x1ce0] sm:$0xff]  ;;  %v704_v58 = vld [vmem:[%s6286_s1 + $0x14a8] sm:$0xff]  ;;  %v2577_v17 = vld [vmem:[%s6287_s0 + $0x38] sm:$0xff] }
 0x18f   :  { %2088 = vmatprep.subr.mxu1 %v1024_v21  ;;  %2000 = vmatpush2.msra.mxu0 %v767_v22  ;;  %v960_v59 = vld [vmem:[%s6286_s1 + $0x1ca8] sm:$0xff]  ;;  %v703_v0 = vld [vmem:[%s6286_s1 + $0x14a0] sm:$0xff]  ;;  %v162_v18 = vld [vmem:[%s6286_s1 + $0x3b8] sm:$0xff] }
 0x190   :  { %2089 = vmatpush2.msra.mxu1 %v1023_v23  ;;  %2001 = vmatprep.subr.mxu0 %v760_v25  ;;  %v2571_v60 = vld [vmem:[%s6287_s0 + $0xc8] sm:$0xff]  ;;  %v959_v1 = vld [vmem:[%s6286_s1 + $0x1ca0] sm:$0xff]  ;;  %v418_v20 = vld [vmem:[%s6286_s1 + $0xbb8] sm:$0xff] }
 0x191   :  { %2090 = vmatprep.subr.mxu1 %v1016_v26  ;;  %2002 = vmatpush2.msra.mxu0 %v759_v8  ;;  %v696_v2 = vld [vmem:[%s6286_s1 + $0x1468] sm:$0xff]  ;;  %v2573_v56 = vld [vmem:[%s6287_s0 + $0xc0] sm:$0xff]  ;;  %v2578_v21 = vld [vmem:[%s6287_s0 + $0x30] sm:$0xff] }
 0x192   :  { %2091 = vmatpush2.msra.mxu1 %v1015_v9  ;;  %2003 = vmatprep.subr.mxu0 %v752_v27  ;;  %v952_v3 = vld [vmem:[%s6286_s1 + $0x1c68] sm:$0xff]  ;;  %v695_v4 = vld [vmem:[%s6286_s1 + $0x1460] sm:$0xff]  ;;  %v161_v22 = vld [vmem:[%s6286_s1 + $0x3b0] sm:$0xff] }
 0x193   :  { %2092 = vmatprep.subr.mxu1 %v1008_v28  ;;  %2004 = vmatpush2.msra.mxu0 %v751_v31  ;;  %v951_v5 = vld [vmem:[%s6286_s1 + $0x1c60] sm:$0xff]  ;;  %v688_v6 = vld [vmem:[%s6286_s1 + $0x1428] sm:$0xff]  ;;  %v417_v23 = vld [vmem:[%s6286_s1 + $0xbb0] sm:$0xff] }
 0x194   :  { %2093 = vmatpush2.msra.mxu1 %v1007_v32  ;;  %2005 = vmatprep.subr.mxu0 %v744_v33  ;;  %v944_v7 = vld [vmem:[%s6286_s1 + $0x1c28] sm:$0xff]  ;;  %v687_v10 = vld [vmem:[%s6286_s1 + $0x1420] sm:$0xff]  ;;  %v154_v25 = vld [vmem:[%s6286_s1 + $0x378] sm:$0xff] }
 0x195   :  { %2094 = vmatprep.subr.mxu1 %v1000_v14  ;;  %2006 = vmatpush2.msra.mxu0 %v743_v19  ;;  %v943_v62 = vld [vmem:[%s6286_s1 + $0x1c20] sm:$0xff]  ;;  %v2575_v11 = vld [vmem:[%s6287_s0 + $0x28] sm:$0xff]  ;;  %v410_v26 = vld [vmem:[%s6286_s1 + $0xb78] sm:$0xff] }
 0x196   :  { %2095 = vmatpush2.msra.mxu1 %v999_v34  ;;  %1849 = vmatprep.mubr.f32.mxu0 %v2563_v37  ;;  %v2576_v13 = vld [vmem:[%s6287_s0 + $0x20] sm:$0xff]  ;;  %v2579_v8 = vld [vmem:[%s6287_s0 + $0x68] sm:$0xff]  ;;  %v153_v9 = vld [vmem:[%s6286_s1 + $0x370] sm:$0xff] }
 0x197   :  { %1938 = vmatprep.mubr.f32.mxu1 %v2564_v40  ;;  %2007 = vmatprep.subr.mxu0 %v736_v35  ;;  %v2580_v27 = vld [vmem:[%s6287_s0 + $0x60] sm:$0xff]  ;;  %v409_v28 = vld [vmem:[%s6286_s1 + $0xb70] sm:$0xff]  ;;  %v146_v31 = vld [vmem:[%s6286_s1 + $0x338] sm:$0xff] }
 0x198   :  { %2096 = vmatprep.subr.mxu1 %v992_v36  ;;  %1850 = vmatmul.mubr.f32.gmra.mxu0 %v2565_v44  ;;  %v402_v32 = vld [vmem:[%s6286_s1 + $0xb38] sm:$0xff]  ;;  %v145_v14 = vld [vmem:[%s6286_s1 + $0x330] sm:$0xff]  ;;  %v2583_v37 = vld [vmem:[%s6287_s0 + $0xa8] sm:$0xff] }
 0x199   :  { %1939 = vmatmul.mubr.f32.gmra.mxu1 %v2566_v24  ;;  %2008 = vmatpush2.msra.mxu0 %v735_v38  ;;  %v2581_v33 = vld [vmem:[%s6287_s0 + $0x78] sm:$0xff]  ;;  %v401_v19 = vld [vmem:[%s6286_s1 + $0xb30] sm:$0xff]  ;;  %v2584_v38 = vld [vmem:[%s6287_s0 + $0xa0] sm:$0xff] }
 0x19a   :  { %2097 = vmatpush2.msra.mxu1 %v991_v41  ;;  %2009 = vmatprep.subr.mxu0 %v728_v42  ;;  %v2582_v34 = vld [vmem:[%s6287_s0 + $0x70] sm:$0xff]  ;;  %v138_v35 = vld [vmem:[%s6286_s1 + $0x2f8] sm:$0xff] }
 0x19b   :  { %2098 = vmatprep.subr.mxu1 %v984_v43  ;;  %2010 = vmatpush2.msra.mxu0 %v727_v29  ;;  %v394_v36 = vld [vmem:[%s6286_s1 + $0xaf8] sm:$0xff]  ;;  %v137_v40 = vld [vmem:[%s6286_s1 + $0x2f0] sm:$0xff] }
 0x19c   :  { %2099 = vmatpush2.msra.mxu1 %v983_v45  ;;  %1855 = vmatprep.mubr.f32.mxu0 %v2567_v48  ;;  %v393_v41 = vld [vmem:[%s6286_s1 + $0xaf0] sm:$0xff]  ;;  %v130_v42 = vld [vmem:[%s6286_s1 + $0x2b8] sm:$0xff]  ;;  %v2587_v48 = vld [vmem:[%s6287_s0 + $0xe8] sm:$0xff] }
 0x19d   :  { %1944 = vmatprep.mubr.f32.mxu1 %v2568_v49  ;;  %2011 = vmatprep.subr.mxu0 %v720_v46  ;;  %v386_v43 = vld [vmem:[%s6286_s1 + $0xab8] sm:$0xff]  ;;  %v129_v24 = vld [vmem:[%s6286_s1 + $0x2b0] sm:$0xff] }
 0x19e   :  { %2100 = vmatprep.subr.mxu1 %v976_v47  ;;  %1856 = vmatmul.mubr.f32.gmra.mxu0 %v2569_v52  ;;  %v2585_v44 = vld [vmem:[%s6287_s0 + $0xb8] sm:$0xff]  ;;  %v385_v29 = vld [vmem:[%s6286_s1 + $0xab0] sm:$0xff] }
 0x19f   :  { %1945 = vmatmul.mubr.f32.gmra.mxu1 %v2570_v53  ;;  %2012 = vmatpush2.msra.mxu0 %v719_v30  ;;  %v2586_v45 = vld [vmem:[%s6287_s0 + $0xb0] sm:$0xff]  ;;  %v122_v46 = vld [vmem:[%s6286_s1 + $0x278] sm:$0xff]  ;;  %v2588_v30 = vld [vmem:[%s6287_s0 + $0xe0] sm:$0xff] }
 0x1a0   :  { %2101 = vmatpush2.msra.mxu1 %v975_v39  ;;  %2013 = vmatprep.subr.mxu0 %v712_v50  ;;  %v378_v47 = vld [vmem:[%s6286_s1 + $0xa78] sm:$0xff]  ;;  %v121_v49 = vld [vmem:[%s6286_s1 + $0x270] sm:$0xff] }
 0x1a1   :  { %2102 = vmatprep.subr.mxu1 %v968_v51  ;;  %2014 = vmatpush2.msra.mxu0 %v711_v54  ;;  %v377_v39 = vld [vmem:[%s6286_s1 + $0xa70] sm:$0xff]  ;;  %v114_v50 = vld [vmem:[%s6286_s1 + $0x238] sm:$0xff] }
 0x1a2   :  { %2103 = vmatpush2.msra.mxu1 %v967_v55  ;;  %1861 = vmatprep.mubr.f32.mxu0 %v2571_v60  ;;  %v370_v51 = vld [vmem:[%s6286_s1 + $0xa38] sm:$0xff]  ;;  %v113_v53 = vld [vmem:[%s6286_s1 + $0x230] sm:$0xff] }
 0x1a3   :  { %1950 = vmatprep.mubr.f32.mxu1 %v2572_v61  ;;  %2015 = vmatprep.subr.mxu0 %v704_v58  ;;  %v2589_v52 = vld [vmem:[%s6287_s0 + $0xf8] sm:$0xff]  ;;  %v369_v54 = vld [vmem:[%s6286_s1 + $0xa30] sm:$0xff] }
 0x1a4   :  { %2104 = vmatprep.subr.mxu1 %v960_v59  ;;  %1862 = vmatmul.mubr.f32.gmra.mxu0 %v2573_v56  ;;  %v106_v55 = vld [vmem:[%s6286_s1 + $0x1f8] sm:$0xff]  ;;  %v2590_v59 = vld [vmem:[%s6287_s0 + $0xf0] sm:$0xff] }
 0x1a5   :  { %1951 = vmatmul.mubr.f32.gmra.mxu1 %v2574_v57  ;;  %2016 = vmatpush2.msra.mxu0 %v703_v0  ;;  %v362_v58 = vld [vmem:[%s6286_s1 + $0x9f8] sm:$0xff]  ;;  %v105_v60 = vld [vmem:[%s6286_s1 + $0x1f0] sm:$0xff] }
 0x1a6   :  { %2105 = vmatpush2.msra.mxu1 %v959_v1  ;;  %2017 = vmatprep.subr.mxu0 %v696_v2  ;;  %v361_v61 = vld [vmem:[%s6286_s1 + $0x9f0] sm:$0xff]  ;;  %v98_v0 = vld [vmem:[%s6286_s1 + $0x1b8] sm:$0xff]  ;;  %v5416_v2 = vpop.f32.mrf.mxu0 }
 0x1a7   :  { %2106 = vmatprep.subr.mxu1 %v952_v3  ;;  %2018 = vmatpush2.msra.mxu0 %v695_v4  ;;  %v354_v1 = vld [vmem:[%s6286_s1 + $0x9b8] sm:$0xff]  ;;  %v5418_v3 = vpop.f32.mrf.mxu1  ;;  %v97_v56 = vld [vmem:[%s6286_s1 + $0x1b0] sm:$0xff] }
 0x1a8   :  { %2107 = vmatpush2.msra.mxu1 %v951_v5  ;;  %2019 = vmatprep.subr.mxu0 %v688_v6  ;;  %v353_v57 = vld [vmem:[%s6286_s1 + $0x9b0] sm:$0xff]  ;;  %v90_v4 = vld [vmem:[%s6286_s1 + $0x178] sm:$0xff] }
 0x1a9   :  { %2108 = vmatprep.subr.mxu1 %v944_v7  ;;  %2020 = vmatpush2.msra.mxu0 %v687_v10  ;;  %v346_v5 = vld [vmem:[%s6286_s1 + $0x978] sm:$0xff]  ;;  %v89_v6 = vld [vmem:[%s6286_s1 + $0x170] sm:$0xff] }
 0x1aa   :  { %2021 = vmatprep.mubr.f32.mxu0 %v2575_v11  ;;  %2109 = vmatpush2.msra.mxu1 %v943_v62  ;;  %v345_v7 = vld [vmem:[%s6286_s1 + $0x970] sm:$0xff]  ;;  %v82_v10 = vld [vmem:[%s6286_s1 + $0x138] sm:$0xff]  ;;  %v5446_v11 = vpop.f32.mrf.mxu1 }
 0x1ab   :  { %2022 = vmatmul.mubr.f32.vlgmr.msra.gmra.mxu0 %v2576_v13  ;;  %2110 = vmatprep.mubr.f32.mxu1 %v2577_v17  ;;  %v338_v62 = vld [vmem:[%s6286_s1 + $0x938] sm:$0xff]  ;;  %v337_v13 = vld [vmem:[%s6286_s1 + $0x930] sm:$0xff] }
 0x1ac   :  { %2135 = vmatprep.subr.mxu0 %v170_v63  ;;  %2224 = vmatprep.subr.mxu1 %v426_v12  ;;  %v5444_v63 = vpop.f32.mrf.mxu0  ;;  %v81_v12 = vld [vmem:[%s6286_s1 + $0x130] sm:$0xff] }
 0x1ad   :  { %2111 = vmatmul.mubr.f32.vlgmr.msra.gmra.mxu1 %v2578_v21  ;;  %2136 = vmatpush1.msra.mxu0 %v169_v15  ;;  %v74_v15 = vld [vmem:[%s6286_s1 + $0xf8] sm:$0xff]  ;;  %v73_v17 = vld [vmem:[%s6286_s1 + $0xf0] sm:$0xff] }
 0x1ae   :  { %2225 = vmatpush1.msra.mxu1 %v425_v16  ;;  %2137 = vmatprep.subr.mxu0 %v162_v18  ;;  %v330_v16 = vld [vmem:[%s6286_s1 + $0x8f8] sm:$0xff]  ;;  %v329_v18 = vld [vmem:[%s6286_s1 + $0x8f0] sm:$0xff] }
 0x1af   :  { %2226 = vmatprep.subr.mxu1 %v418_v20  ;;  %2027 = vmatprep.mubr.f32.mxu0 %v2579_v8 }
 0x1b0   :  { %2138 = vmatpush1.msra.mxu0 %v161_v22  ;;  %2227 = vmatpush1.msra.mxu1 %v417_v23  ;;  %v66_v22 = vld [vmem:[%s6286_s1 + $0xb8] sm:$0xff] }
 0x1b1   :  { %2028 = vmatmul.mubr.f32.gmra.mxu0 %v2580_v27  ;;  %2139 = vmatprep.subr.mxu0 %v154_v25  ;;  %v322_v23 = vld [vmem:[%s6286_s1 + $0x8b8] sm:$0xff]  ;;  %v65_v25 = vld [vmem:[%s6286_s1 + $0xb0] sm:$0xff] }
 0x1b2   :  { %2228 = vmatprep.subr.mxu1 %v410_v26  ;;  %2116 = vmatprep.mubr.f32.mxu1 %v2581_v33  ;;  %v321_v26 = vld [vmem:[%s6286_s1 + $0x8b0] sm:$0xff]  ;;  %v58_v27 = vld [vmem:[%s6286_s1 + $0x78] sm:$0xff] }
 0x1b3   :  { %2140 = vmatpush1.msra.mxu0 %v153_v9  ;;  %2229 = vmatpush1.msra.mxu1 %v409_v28  ;;  %v314_v28 = vld [vmem:[%s6286_s1 + $0x878] sm:$0xff] }
 0x1b4   :  { %2141 = vmatprep.subr.mxu0 %v146_v31  ;;  %2117 = vmatmul.mubr.f32.gmra.mxu1 %v2582_v34  ;;  %v57_v31 = vld [vmem:[%s6286_s1 + $0x70] sm:$0xff]  ;;  %v50_v33 = vld [vmem:[%s6286_s1 + $0x38] sm:$0xff] }
 0x1b5   :  { %2230 = vmatprep.subr.mxu1 %v402_v32  ;;  %2033 = vmatprep.mubr.f32.mxu0 %v2583_v37  ;;  %v313_v32 = vld [vmem:[%s6286_s1 + $0x870] sm:$0xff]  ;;  %v298_v37 = vld [vmem:[%s6286_s1 + $0x7f8] sm:$0xff] }
 0x1b6   :  { %2142 = vmatpush1.msra.mxu0 %v145_v14  ;;  %2231 = vmatpush1.msra.mxu1 %v401_v19  ;;  %v306_v14 = vld [vmem:[%s6286_s1 + $0x838] sm:$0xff]  ;;  %v49_v19 = vld [vmem:[%s6286_s1 + $0x30] sm:$0xff] }
 0x1b7   :  { %2034 = vmatmul.mubr.f32.gmra.mxu0 %v2584_v38  ;;  %2143 = vmatprep.subr.mxu0 %v138_v35  ;;  %v305_v34 = vld [vmem:[%s6286_s1 + $0x830] sm:$0xff] }
 0x1b8   :  { %2232 = vmatprep.subr.mxu1 %v394_v36  ;;  %2122 = vmatprep.mubr.f32.mxu1 %v2585_v44  ;;  %v297_v38 = vld [vmem:[%s6286_s1 + $0x7f0] sm:$0xff]  ;;  %v546_v44 = vld [vmem:[%s6286_s1 + $0xfb8] sm:$0xff] }
 0x1b9   :  { %2144 = vmatpush1.msra.mxu0 %v137_v40  ;;  %2233 = vmatpush1.msra.mxu1 %v393_v41  ;;  %v554_v40 = vld [vmem:[%s6286_s1 + $0xff8] sm:$0xff]  ;;  %v553_v41 = vld [vmem:[%s6286_s1 + $0xff0] sm:$0xff] }
 0x1ba   :  { %2145 = vmatprep.subr.mxu0 %v130_v42  ;;  %2123 = vmatmul.mubr.f32.gmra.mxu1 %v2586_v45 }
 0x1bb   :  { %2234 = vmatprep.subr.mxu1 %v386_v43  ;;  %2039 = vmatprep.mubr.f32.mxu0 %v2587_v48  ;;  %v290_v43 = vld [vmem:[%s6286_s1 + $0x7b8] sm:$0xff]  ;;  %v281_v48 = vld [vmem:[%s6286_s1 + $0x770] sm:$0xff] }
 0x1bc   :  { %2146 = vmatpush1.msra.mxu0 %v129_v24  ;;  %2235 = vmatpush1.msra.mxu1 %v385_v29  ;;  %v289_v24 = vld [vmem:[%s6286_s1 + $0x7b0] sm:$0xff] }
 0x1bd   :  { %2040 = vmatmul.mubr.f32.gmra.mxu0 %v2588_v30  ;;  %2147 = vmatprep.subr.mxu0 %v122_v46  ;;  %v545_v29 = vld [vmem:[%s6286_s1 + $0xfb0] sm:$0xff]  ;;  %v282_v46 = vld [vmem:[%s6286_s1 + $0x778] sm:$0xff] }
 0x1be   :  { %2236 = vmatprep.subr.mxu1 %v378_v47  ;;  %2128 = vmatprep.mubr.f32.mxu1 %v2589_v52  ;;  %v538_v47 = vld [vmem:[%s6286_s1 + $0xf78] sm:$0xff]  ;;  %v529_v52 = vld [vmem:[%s6286_s1 + $0xf30] sm:$0xff] }
 0x1bf   :  { %2148 = vmatpush1.msra.mxu0 %v121_v49  ;;  %2237 = vmatpush1.msra.mxu1 %v377_v39  ;;  %v537_v49 = vld [vmem:[%s6286_s1 + $0xf70] sm:$0xff]  ;;  %v274_v39 = vld [vmem:[%s6286_s1 + $0x738] sm:$0xff] }
 0x1c0   :  { %2149 = vmatprep.subr.mxu0 %v114_v50  ;;  %2129 = vmatmul.mubr.f32.gmra.mxu1 %v2590_v59  ;;  %v530_v50 = vld [vmem:[%s6286_s1 + $0xf38] sm:$0xff]  ;;  %v265_v59 = vld [vmem:[%s6286_s1 + $0x6f0] sm:$0xff] }
 0x1c1   :  { %2238 = vmatprep.subr.mxu1 %v370_v51  ;;  %2150 = vmatpush1.msra.mxu0 %v113_v53  ;;  %v273_v51 = vld [vmem:[%s6286_s1 + $0x730] sm:$0xff] }
 0x1c2   :  { %2239 = vmatpush1.msra.mxu1 %v369_v54  ;;  %2151 = vmatprep.subr.mxu0 %v106_v55  ;;  %v266_v55 = vld [vmem:[%s6286_s1 + $0x6f8] sm:$0xff] }
 0x1c3   :  { %2240 = vmatprep.subr.mxu1 %v362_v58  ;;  %2152 = vmatpush1.msra.mxu0 %v105_v60  ;;  %v522_v58 = vld [vmem:[%s6286_s1 + $0xef8] sm:$0xff]  ;;  %v521_v60 = vld [vmem:[%s6286_s1 + $0xef0] sm:$0xff] }
 0x1c4   :  { %2241 = vmatpush1.msra.mxu1 %v361_v61  ;;  %2153 = vmatprep.subr.mxu0 %v98_v0  ;;  %v1579_v61 = vadd.f32 %v5418_v3, %v5416_v2  ;;  %v258_v0 = vld [vmem:[%s6286_s1 + $0x6b8] sm:$0xff]  ;;  %v513_v2 = vld [vmem:[%s6286_s1 + $0xeb0] sm:$0xff] }
 0x1c5   :  { %2242 = vmatprep.subr.mxu1 %v354_v1  ;;  %2154 = vmatpush1.msra.mxu0 %v97_v56  ;;  %v514_v1 = vld [vmem:[%s6286_s1 + $0xeb8] sm:$0xff]  ;;  %v257_v56 = vld [vmem:[%s6286_s1 + $0x6b0] sm:$0xff] }
 0x1c6   :  { %2243 = vmatpush1.msra.mxu1 %v353_v57  ;;  %2155 = vmatprep.subr.mxu0 %v90_v4  ;;  %v1581_v4 = vadd.f32 %v5446_v11, %v5444_v63 }
 0x1c7   :  { %2244 = vmatprep.subr.mxu1 %v346_v5  ;;  %2156 = vmatpush1.msra.mxu0 %v89_v6  ;;  %v250_v5 = vld [vmem:[%s6286_s1 + $0x678] sm:$0xff] }
 0x1c8   :  { %2245 = vmatpush1.msra.mxu1 %v345_v7  ;;  %2157 = vmatprep.subr.mxu0 %v82_v10  ;;  %v5466_v20 = vpop.f32.mrf.mxu0  ;;  %v506_v6 = vld [vmem:[%s6286_s1 + $0xe78] sm:$0xff]  ;;  %v249_v10 = vld [vmem:[%s6286_s1 + $0x670] sm:$0xff] }
 0x1c9   :  { %2246 = vmatprep.subr.mxu1 %v338_v62  ;;  %v5468_v21 = vpop.f32.mrf.mxu1  ;;  %2158 = vmatpush1.msra.mxu0 %v81_v12  ;;  %v505_v62 = vld [vmem:[%s6286_s1 + $0xe70] sm:$0xff]  ;;  %v242_v12 = vld [vmem:[%s6286_s1 + $0x638] sm:$0xff] }
 0x1ca   :  { %2247 = vmatpush1.msra.mxu1 %v337_v13  ;;  %2159 = vmatprep.subr.mxu0 %v74_v15  ;;  %v5482_v8 = vpop.f32.mrf.mxu0  ;;  %v498_v13 = vld [vmem:[%s6286_s1 + $0xe38] sm:$0xff] }
 0x1cb   :  { %2248 = vmatprep.subr.mxu1 %v330_v16  ;;  %v5484_v9 = vpop.f32.mrf.mxu1  ;;  %2160 = vmatpush1.msra.mxu0 %v73_v17  ;;  %v241_v17 = vld [vmem:[%s6286_s1 + $0x630] sm:$0xff] }
 0x1cc   :  { %2249 = vmatpush1.msra.mxu1 %v329_v18  ;;  %2161 = vmatprep.subr.mxu0 %v66_v22  ;;  %v497_v18 = vld [vmem:[%s6286_s1 + $0xe30] sm:$0xff] }
 0x1cd   :  { %2250 = vmatprep.subr.mxu1 %v322_v23  ;;  %2162 = vmatpush1.msra.mxu0 %v65_v25  ;;  %v234_v23 = vld [vmem:[%s6286_s1 + $0x5f8] sm:$0xff] }
 0x1ce   :  { %2251 = vmatpush1.msra.mxu1 %v321_v26  ;;  %2163 = vmatprep.subr.mxu0 %v58_v27  ;;  %v5510_v35 = vpop.f32.mrf.mxu0  ;;  %v490_v25 = vld [vmem:[%s6286_s1 + $0xdf8] sm:$0xff]  ;;  %v1585_v26 = vadd.f32 %v5468_v21, %v5466_v20 }
 0x1cf   :  { %2252 = vmatprep.subr.mxu1 %v314_v28  ;;  %v5512_v36 = vpop.f32.mrf.mxu1  ;;  %2164 = vmatpush1.msra.mxu0 %v57_v31  ;;  %v233_v28 = vld [vmem:[%s6286_s1 + $0x5f0] sm:$0xff]  ;;  %v226_v20 = vld [vmem:[%s6286_s1 + $0x5b8] sm:$0xff] }
 0x1d0   :  { %2253 = vmatpush1.msra.mxu1 %v313_v32  ;;  %2165 = vmatprep.subr.mxu0 %v50_v33  ;;  %v5526_v42 = vpop.f32.mrf.mxu0  ;;  %v489_v31 = vld [vmem:[%s6286_s1 + $0xdf0] sm:$0xff]  ;;  %v482_v21 = vld [vmem:[%s6286_s1 + $0xdb8] sm:$0xff]  ;;  %v1587_v33 = vadd.f32 %v5484_v9, %v5482_v8 }
 0x1d1   :  { %2254 = vmatprep.subr.mxu1 %v306_v14  ;;  %2166 = vmatpush1.msra.mxu0 %v49_v19  ;;  %v5540_v45 = vpop.f32.mrf.mxu1  ;;  %v225_v19 = vld [vmem:[%s6286_s1 + $0x5b0] sm:$0xff]  ;;  %v218_v8 = vld [vmem:[%s6286_s1 + $0x578] sm:$0xff] }
 0x1d2   :  { %2255 = vmatpush1.msra.mxu1 %v305_v34  ;;  %2167 = vmatprep.subr.mxu0 %v298_v37  ;;  %v481_v34 = vld [vmem:[%s6286_s1 + $0xdb0] sm:$0xff]  ;;  %v474_v9 = vld [vmem:[%s6286_s1 + $0xd78] sm:$0xff] }
 0x1d3   :  { %2256 = vmatprep.subr.mxu1 %v554_v40  ;;  %2168 = vmatpush2.msra.mxu0 %v297_v38  ;;  %v217_v38 = vld [vmem:[%s6286_s1 + $0x570] sm:$0xff] }
 0x1d4   :  { %2257 = vmatpush2.msra.mxu1 %v553_v41  ;;  %2169 = vmatprep.subr.mxu0 %v290_v43  ;;  %v5554_v30 = vpop.f32.mrf.mxu0  ;;  %v473_v41 = vld [vmem:[%s6286_s1 + $0xd70] sm:$0xff] }
 0x1d5   :  { %2258 = vmatprep.subr.mxu1 %v546_v44  ;;  %2170 = vmatpush2.msra.mxu0 %v289_v24  ;;  %v5568_v53 = vpop.f32.mrf.mxu1  ;;  %v210_v44 = vld [vmem:[%s6286_s1 + $0x538] sm:$0xff] }
 0x1d6   :  { %2259 = vmatpush2.msra.mxu1 %v545_v29  ;;  %2171 = vmatprep.subr.mxu0 %v282_v46  ;;  %v5570_v54 = vpop.f32.mrf.mxu0  ;;  %v466_v24 = vld [vmem:[%s6286_s1 + $0xd38] sm:$0xff]  ;;  %v1591_v29 = vadd.f32 %v5512_v36, %v5510_v35  ;;  %v1593_v36 = vadd.f32 %v5540_v45, %v5526_v42 }
 0x1d7   :  { %2260 = vmatprep.subr.mxu1 %v538_v47  ;;  %2172 = vmatpush2.msra.mxu0 %v281_v48  ;;  %v5598_v3 = vpop.f32.mrf.mxu1  ;;  %v209_v47 = vld [vmem:[%s6286_s1 + $0x530] sm:$0xff]  ;;  %v458_v35 = vld [vmem:[%s6286_s1 + $0xcf8] sm:$0xff] }
 0x1d8   :  { %2261 = vmatpush2.msra.mxu1 %v537_v49  ;;  %2173 = vmatprep.subr.mxu0 %v274_v39  ;;  %v465_v48 = vld [vmem:[%s6286_s1 + $0xd30] sm:$0xff]  ;;  %v194_v42 = vld [vmem:[%s6286_s1 + $0x4b8] sm:$0xff] }
 0x1d9   :  { %2262 = vmatprep.subr.mxu1 %v530_v50  ;;  %2174 = vmatpush2.msra.mxu0 %v273_v51  ;;  %v202_v50 = vld [vmem:[%s6286_s1 + $0x4f8] sm:$0xff] }
 0x1da   :  { %2263 = vmatpush2.msra.mxu1 %v529_v52  ;;  %2175 = vmatprep.subr.mxu0 %v266_v55  ;;  %v201_v55 = vld [vmem:[%s6286_s1 + $0x4f0] sm:$0xff]  ;;  %v450_v45 = vld [vmem:[%s6286_s1 + $0xcb8] sm:$0xff] }
 0x1db   :  { %2264 = vmatprep.subr.mxu1 %v522_v58  ;;  %v1667_v57 = vpop.f32.mrf.mxu0  ;;  %2176 = vmatpush2.msra.mxu0 %v265_v59  ;;  %v457_v58 = vld [vmem:[%s6286_s1 + $0xcf0] sm:$0xff] }
 0x1dc   :  { %2265 = vmatpush2.msra.mxu1 %v521_v60  ;;  %v1668_v7 = vadd.f32 %v1667_v57, %v1579_v61  ;;  %2177 = vmatprep.subr.mxu0 %v258_v0  ;;  %v193_v61 = vld [vmem:[%s6286_s1 + $0x4b0] sm:$0xff]  ;;  %v442_v57 = vld [vmem:[%s6286_s1 + $0xc78] sm:$0xff] }
 0x1dd   :  { %2266 = vmatprep.subr.mxu1 %v514_v1  ;;  %v1756_v63 = vpop.f32.mrf.mxu1  ;;  %v1669_v11 = vpop.f32.mrf.mxu0  ;;  %2178 = vmatpush2.msra.mxu0 %v257_v56  ;;  %v449_v0 = vld [vmem:[%s6286_s1 + $0xcb0] sm:$0xff]  ;;  %v1597_v56 = vadd.f32 %v5568_v53, %v5554_v30 }
 0x1de   :  { %2267 = vmatpush2.msra.mxu1 %v513_v2  ;;  %v1757_v15 = vadd.f32 %v1756_v63, %v1668_v7  ;;  %v1670_v16 = vadd.f32 %v1669_v11, %v1581_v4  ;;  %2179 = vmatprep.subr.mxu0 %v250_v5  ;;  %v186_v2 = vld [vmem:[%s6286_s1 + $0x478] sm:$0xff]  ;;  %v185_v5 = vld [vmem:[%s6286_s1 + $0x470] sm:$0xff]  ;;  %v1599_v7 = vadd.f32 %v5598_v3, %v5570_v54 }
 0x1df   :  { %2268 = vmatprep.subr.mxu1 %v506_v6  ;;  %v1758_v22 = vpop.f32.mrf.mxu1  ;;  %2180 = vmatpush2.msra.mxu0 %v249_v10  ;;  %v441_v6 = vld [vmem:[%s6286_s1 + $0xc70] sm:$0xff]  ;;  %v178_v10 = vld [vmem:[%s6286_s1 + $0x438] sm:$0xff] }
 0x1e0   :  { %2269 = vmatpush2.msra.mxu1 %v505_v62  ;;  %2493 = vst [vmem:[%s6288_s2 + $0x10] sm:$0xff] %v1757_v15  ;;  %v1759_v27 = vadd.f32 %v1758_v22, %v1670_v16  ;;  %2181 = vmatprep.subr.mxu0 %v242_v12  ;;  %v434_v62 = vld [vmem:[%s6286_s1 + $0xc38] sm:$0xff]  ;;  %v177_v54 = vld [vmem:[%s6286_s1 + $0x430] sm:$0xff]  ;;  %v2591_v16 = vld [vmem:[%s6287_s0 + $0x8] sm:$0xff] }
 0x1e1   :  { %2270 = vmatprep.subr.mxu1 %v498_v13  ;;  %v1673_v32 = vpop.f32.mrf.mxu0  ;;  %2182 = vmatpush2.msra.mxu0 %v241_v17  ;;  %v433_v12 = vld [vmem:[%s6286_s1 + $0xc30] sm:$0xff]  ;;  %v682_v17 = vld [vmem:[%s6286_s1 + $0x13f8] sm:$0xff] }
 0x1e2   :  { %2271 = vmatpush2.msra.mxu1 %v497_v18  ;;  %2494 = vst [vmem:[%s6288_s2 + $0x18] sm:$0xff] %v1759_v27  ;;  %v1674_v14 = vadd.f32 %v1673_v32, %v1585_v26  ;;  %2183 = vmatprep.subr.mxu0 %v234_v23  ;;  %v938_v18 = vld [vmem:[%s6286_s1 + $0x1bf8] sm:$0xff]  ;;  %v937_v26 = vld [vmem:[%s6286_s1 + $0x1bf0] sm:$0xff] }
 0x1e3   :  { %2272 = vmatprep.subr.mxu1 %v490_v25  ;;  %v1675_v37 = vpop.f32.mrf.mxu0  ;;  %2184 = vmatpush2.msra.mxu0 %v233_v28  ;;  %v2592_v23 = vld [vmem:[%s6287_s0 + $0x18] sm:$0xff]  ;;  %v681_v25 = vld [vmem:[%s6286_s1 + $0x13f0] sm:$0xff]  ;;  %v2593_v28 = vld [vmem:[%s6287_s0] sm:$0xff] }
 0x1e4   :  { %2273 = vmatpush2.msra.mxu1 %v489_v31  ;;  %v1676_v40 = vadd.f32 %v1675_v37, %v1587_v33  ;;  %2185 = vmatprep.subr.mxu0 %v226_v20  ;;  %v1762_v43 = vpop.f32.mrf.mxu1  ;;  %v2594_v31 = vld [vmem:[%s6287_s0 + $0x10] sm:$0xff]  ;;  %v674_v32 = vld [vmem:[%s6286_s1 + $0x13b8] sm:$0xff] }
 0x1e5   :  { %2274 = vmatprep.subr.mxu1 %v482_v21  ;;  %2186 = vmatpush2.msra.mxu0 %v225_v19  ;;  %v1763_v46 = vadd.f32 %v1762_v43, %v1674_v14  ;;  %v930_v20 = vld [vmem:[%s6286_s1 + $0x1bb8] sm:$0xff]  ;;  %v673_v33 = vld [vmem:[%s6286_s1 + $0x13b0] sm:$0xff] }
 0x1e6   :  { %2275 = vmatpush2.msra.mxu1 %v481_v34  ;;  %2187 = vmatprep.subr.mxu0 %v218_v8  ;;  %v1764_v39 = vpop.f32.mrf.mxu1  ;;  %v929_v14 = vld [vmem:[%s6286_s1 + $0x1bb0] sm:$0xff]  ;;  %v666_v19 = vld [vmem:[%s6286_s1 + $0x1378] sm:$0xff] }
 0x1e7   :  { %2276 = vmatprep.subr.mxu1 %v474_v9  ;;  %v1679_v49 = vpop.f32.mrf.mxu0  ;;  %2188 = vmatpush2.msra.mxu0 %v217_v38  ;;  %2501 = vst [vmem:[%s6288_s2 + $0x50] sm:$0xff] %v1763_v46  ;;  %v1765_v52 = vadd.f32 %v1764_v39, %v1676_v40  ;;  %v922_v34 = vld [vmem:[%s6286_s1 + $0x1b78] sm:$0xff]  ;;  %v665_v37 = vld [vmem:[%s6286_s1 + $0x1370] sm:$0xff] }
 0x1e8   :  { %2277 = vmatpush2.msra.mxu1 %v473_v41  ;;  %v1680_v51 = vadd.f32 %v1679_v49, %v1591_v29  ;;  %2189 = vmatprep.subr.mxu0 %v210_v44  ;;  %v921_v8 = vld [vmem:[%s6286_s1 + $0x1b70] sm:$0xff]  ;;  %v658_v9 = vld [vmem:[%s6286_s1 + $0x1338] sm:$0xff] }
 0x1e9   :  { %2278 = vmatprep.subr.mxu1 %v466_v24  ;;  %v1681_v59 = vpop.f32.mrf.mxu0  ;;  %2190 = vmatpush2.msra.mxu0 %v209_v47  ;;  %2502 = vst [vmem:[%s6288_s2 + $0x58] sm:$0xff] %v1765_v52  ;;  %v914_v40 = vld [vmem:[%s6286_s1 + $0x1b38] sm:$0xff]  ;;  %v657_v38 = vld [vmem:[%s6286_s1 + $0x1330] sm:$0xff] }
 0x1ea   :  { %2279 = vmatpush2.msra.mxu1 %v465_v48  ;;  %v1682_v60 = vadd.f32 %v1681_v59, %v1593_v36  ;;  %2191 = vmatprep.subr.mxu0 %v202_v50  ;;  %v1768_v1 = vpop.f32.mrf.mxu1  ;;  %v913_v41 = vld [vmem:[%s6286_s1 + $0x1b30] sm:$0xff]  ;;  %v650_v43 = vld [vmem:[%s6286_s1 + $0x12f8] sm:$0xff] }
 0x1eb   :  { %2280 = vmatprep.subr.mxu1 %v458_v35  ;;  %2192 = vmatpush2.msra.mxu0 %v201_v55  ;;  %v1769_v4 = vadd.f32 %v1768_v1, %v1680_v51  ;;  %v906_v44 = vld [vmem:[%s6286_s1 + $0x1af8] sm:$0xff]  ;;  %v649_v24 = vld [vmem:[%s6286_s1 + $0x12f0] sm:$0xff] }
 0x1ec   :  { %2281 = vmatpush2.msra.mxu1 %v457_v58  ;;  %2193 = vmatprep.subr.mxu0 %v194_v42  ;;  %v1770_v53 = vpop.f32.mrf.mxu1  ;;  %v905_v29 = vld [vmem:[%s6286_s1 + $0x1af0] sm:$0xff]  ;;  %v642_v46 = vld [vmem:[%s6286_s1 + $0x12b8] sm:$0xff] }
 0x1ed   :  { %2282 = vmatprep.subr.mxu1 %v450_v45  ;;  %v1685_v30 = vpop.f32.mrf.mxu0  ;;  %2194 = vmatpush2.msra.mxu0 %v193_v61  ;;  %2509 = vst [vmem:[%s6288_s2 + $0x90] sm:$0xff] %v1769_v4  ;;  %v1771_v11 = vadd.f32 %v1770_v53, %v1682_v60  ;;  %v898_v47 = vld [vmem:[%s6286_s1 + $0x1ab8] sm:$0xff]  ;;  %v641_v48 = vld [vmem:[%s6286_s1 + $0x12b0] sm:$0xff] }
 0x1ee   :  { %2283 = vmatpush2.msra.mxu1 %v449_v0  ;;  %v1686_v63 = vadd.f32 %v1685_v30, %v1597_v56  ;;  %2195 = vmatprep.subr.mxu0 %v186_v2  ;;  %v897_v49 = vld [vmem:[%s6286_s1 + $0x1ab0] sm:$0xff]  ;;  %v634_v39 = vld [vmem:[%s6286_s1 + $0x1278] sm:$0xff] }
 0x1ef   :  { %2284 = vmatprep.subr.mxu1 %v442_v57  ;;  %v1687_v3 = vpop.f32.mrf.mxu0  ;;  %2196 = vmatpush2.msra.mxu0 %v185_v5  ;;  %2510 = vst [vmem:[%s6288_s2 + $0x98] sm:$0xff] %v1771_v11  ;;  %v890_v50 = vld [vmem:[%s6286_s1 + $0x1a78] sm:$0xff]  ;;  %v633_v35 = vld [vmem:[%s6286_s1 + $0x1270] sm:$0xff] }
 0x1f0   :  { %2285 = vmatpush2.msra.mxu1 %v441_v6  ;;  %v1688_v13 = vadd.f32 %v1687_v3, %v1599_v7  ;;  %2197 = vmatprep.subr.mxu0 %v178_v10  ;;  %v1774_v15 = vpop.f32.mrf.mxu1  ;;  %v889_v36 = vld [vmem:[%s6286_s1 + $0x1a70] sm:$0xff]  ;;  %v626_v51 = vld [vmem:[%s6286_s1 + $0x1238] sm:$0xff] }
 0x1f1   :  { %2286 = vmatprep.subr.mxu1 %v434_v62  ;;  %2198 = vmatpush2.msra.mxu0 %v177_v54  ;;  %v1775_v22 = vadd.f32 %v1774_v15, %v1686_v63  ;;  %v882_v52 = vld [vmem:[%s6286_s1 + $0x1a38] sm:$0xff]  ;;  %v625_v55 = vld [vmem:[%s6286_s1 + $0x1230] sm:$0xff] }
 0x1f2   :  { %2199 = vmatprep.mubr.f32.mxu0 %v2591_v16  ;;  %2287 = vmatpush2.msra.mxu1 %v433_v12  ;;  %v1776_v27 = vpop.f32.mrf.mxu1  ;;  %v881_v58 = vld [vmem:[%s6286_s1 + $0x1a30] sm:$0xff]  ;;  %v618_v59 = vld [vmem:[%s6286_s1 + $0x11f8] sm:$0xff] }
 0x1f3   :  { %2288 = vmatprep.mubr.f32.mxu1 %v2592_v23  ;;  %2200 = vmatmul.mubr.f32.vlgmr.msra.gmra.mxu0 %v2593_v28  ;;  %2517 = vst [vmem:[%s6288_s2 + $0xd0] sm:$0xff] %v1775_v22  ;;  %v1777_v21 = vadd.f32 %v1776_v27, %v1688_v13  ;;  %v874_v42 = vld [vmem:[%s6286_s1 + $0x19f8] sm:$0xff]  ;;  %v617_v45 = vld [vmem:[%s6286_s1 + $0x11f0] sm:$0xff] }
 0x1f4   :  { %2289 = vmatmul.mubr.f32.vlgmr.msra.gmra.mxu1 %v2594_v31  ;;  %2313 = vmatprep.subr.mxu0 %v682_v17  ;;  %v873_v60 = vld [vmem:[%s6286_s1 + $0x19f0] sm:$0xff]  ;;  %v610_v61 = vld [vmem:[%s6286_s1 + $0x11b8] sm:$0xff] }
 0x1f5   :  { %2402 = vmatprep.subr.mxu1 %v938_v18  ;;  %2314 = vmatpush1.msra.mxu0 %v681_v25  ;;  %2518 = vst [vmem:[%s6288_s2 + $0xd8] sm:$0xff] %v1777_v21  ;;  %v866_v0 = vld [vmem:[%s6286_s1 + $0x19b8] sm:$0xff]  ;;  %v609_v1 = vld [vmem:[%s6286_s1 + $0x11b0] sm:$0xff] }
 0x1f6   :  { %2403 = vmatpush1.msra.mxu1 %v937_v26  ;;  %2315 = vmatprep.subr.mxu0 %v674_v32  ;;  %v865_v56 = vld [vmem:[%s6286_s1 + $0x19b0] sm:$0xff]  ;;  %v602_v2 = vld [vmem:[%s6286_s1 + $0x1178] sm:$0xff] }
 0x1f7   :  { %2404 = vmatprep.subr.mxu1 %v930_v20  ;;  %2316 = vmatpush1.msra.mxu0 %v673_v33  ;;  %v858_v57 = vld [vmem:[%s6286_s1 + $0x1978] sm:$0xff]  ;;  %v601_v4 = vld [vmem:[%s6286_s1 + $0x1170] sm:$0xff] }
 0x1f8   :  { %2405 = vmatpush1.msra.mxu1 %v929_v14  ;;  %2317 = vmatprep.subr.mxu0 %v666_v19  ;;  %v857_v5 = vld [vmem:[%s6286_s1 + $0x1970] sm:$0xff]  ;;  %v594_v6 = vld [vmem:[%s6286_s1 + $0x1138] sm:$0xff] }
 0x1f9   :  { %2406 = vmatprep.subr.mxu1 %v922_v34  ;;  %2318 = vmatpush1.msra.mxu0 %v665_v37  ;;  %v850_v30 = vld [vmem:[%s6286_s1 + $0x1938] sm:$0xff]  ;;  %v593_v53 = vld [vmem:[%s6286_s1 + $0x1130] sm:$0xff] }
 0x1fa   :  { %2407 = vmatpush1.msra.mxu1 %v921_v8  ;;  %2319 = vmatprep.subr.mxu0 %v658_v9  ;;  %v849_v7 = vld [vmem:[%s6286_s1 + $0x1930] sm:$0xff]  ;;  %v586_v10 = vld [vmem:[%s6286_s1 + $0x10f8] sm:$0xff] }
 0x1fb   :  { %2408 = vmatprep.subr.mxu1 %v914_v40  ;;  %2320 = vmatpush1.msra.mxu0 %v657_v38  ;;  %v842_v62 = vld [vmem:[%s6286_s1 + $0x18f8] sm:$0xff]  ;;  %v585_v63 = vld [vmem:[%s6286_s1 + $0x10f0] sm:$0xff] }
 0x1fc   :  { %2409 = vmatpush1.msra.mxu1 %v913_v41  ;;  %2321 = vmatprep.subr.mxu0 %v650_v43  ;;  %v841_v11 = vld [vmem:[%s6286_s1 + $0x18f0] sm:$0xff]  ;;  %v578_v54 = vld [vmem:[%s6286_s1 + $0x10b8] sm:$0xff] }
 0x1fd   :  { %2410 = vmatprep.subr.mxu1 %v906_v44  ;;  %2322 = vmatpush1.msra.mxu0 %v649_v24  ;;  %v834_v3 = vld [vmem:[%s6286_s1 + $0x18b8] sm:$0xff]  ;;  %v577_v12 = vld [vmem:[%s6286_s1 + $0x10b0] sm:$0xff] }
 0x1fe   :  { %2411 = vmatpush1.msra.mxu1 %v905_v29  ;;  %2323 = vmatprep.subr.mxu0 %v642_v46  ;;  %v833_v13 = vld [vmem:[%s6286_s1 + $0x18b0] sm:$0xff]  ;;  %v570_v15 = vld [vmem:[%s6286_s1 + $0x1078] sm:$0xff] }
 0x1ff   :  { %2412 = vmatprep.subr.mxu1 %v898_v47  ;;  %2324 = vmatpush1.msra.mxu0 %v641_v48  ;;  %v826_v16 = vld [vmem:[%s6286_s1 + $0x1878] sm:$0xff]  ;;  %v569_v17 = vld [vmem:[%s6286_s1 + $0x1070] sm:$0xff] }
 0x200   :  { %2413 = vmatpush1.msra.mxu1 %v897_v49  ;;  %2325 = vmatprep.subr.mxu0 %v634_v39  ;;  %v825_v18 = vld [vmem:[%s6286_s1 + $0x1870] sm:$0xff]  ;;  %v562_v22 = vld [vmem:[%s6286_s1 + $0x1038] sm:$0xff] }
 0x201   :  { %2414 = vmatprep.subr.mxu1 %v890_v50  ;;  %2326 = vmatpush1.msra.mxu0 %v633_v35  ;;  %v818_v23 = vld [vmem:[%s6286_s1 + $0x1838] sm:$0xff]  ;;  %v561_v25 = vld [vmem:[%s6286_s1 + $0x1030] sm:$0xff] }
 0x202   :  { %2415 = vmatpush1.msra.mxu1 %v889_v36  ;;  %2327 = vmatprep.subr.mxu0 %v626_v51  ;;  %v817_v26 = vld [vmem:[%s6286_s1 + $0x1830] sm:$0xff]  ;;  %v810_v27 = vld [vmem:[%s6286_s1 + $0x17f8] sm:$0xff] }
 0x203   :  { %2416 = vmatprep.subr.mxu1 %v882_v52  ;;  %2328 = vmatpush1.msra.mxu0 %v625_v55  ;;  %v1066_v28 = vld [vmem:[%s6286_s1 + $0x1ff8] sm:$0xff]  ;;  %v809_v31 = vld [vmem:[%s6286_s1 + $0x17f0] sm:$0xff] }
 0x204   :  { %2417 = vmatpush1.msra.mxu1 %v881_v58  ;;  %2329 = vmatprep.subr.mxu0 %v618_v59  ;;  %v1065_v32 = vld [vmem:[%s6286_s1 + $0x1ff0] sm:$0xff]  ;;  %v802_v20 = vld [vmem:[%s6286_s1 + $0x17b8] sm:$0xff] }
 0x205   :  { %2418 = vmatprep.subr.mxu1 %v874_v42  ;;  %2330 = vmatpush1.msra.mxu0 %v617_v45  ;;  %v1058_v21 = vld [vmem:[%s6286_s1 + $0x1fb8] sm:$0xff]  ;;  %v801_v33 = vld [vmem:[%s6286_s1 + $0x17b0] sm:$0xff] }
 0x206   :  { %2419 = vmatpush1.msra.mxu1 %v873_v60  ;;  %2331 = vmatprep.subr.mxu0 %v610_v61  ;;  %v1057_v14 = vld [vmem:[%s6286_s1 + $0x1fb0] sm:$0xff]  ;;  %v794_v19 = vld [vmem:[%s6286_s1 + $0x1778] sm:$0xff]  ;;  %v2595_v61 = vld [vmem:[%s6287_s0 + $0x48] sm:$0xff] }
 0x207   :  { %2420 = vmatprep.subr.mxu1 %v866_v0  ;;  %2332 = vmatpush1.msra.mxu0 %v609_v1  ;;  %v1050_v34 = vld [vmem:[%s6286_s1 + $0x1f78] sm:$0xff]  ;;  %v793_v37 = vld [vmem:[%s6286_s1 + $0x1770] sm:$0xff] }
 0x208   :  { %2421 = vmatpush1.msra.mxu1 %v865_v56  ;;  %2333 = vmatprep.subr.mxu0 %v602_v2  ;;  %v1049_v8 = vld [vmem:[%s6286_s1 + $0x1f70] sm:$0xff]  ;;  %v786_v9 = vld [vmem:[%s6286_s1 + $0x1738] sm:$0xff] }
 0x209   :  { %2422 = vmatprep.subr.mxu1 %v858_v57  ;;  %2334 = vmatpush1.msra.mxu0 %v601_v4  ;;  %v1042_v40 = vld [vmem:[%s6286_s1 + $0x1f38] sm:$0xff]  ;;  %v785_v38 = vld [vmem:[%s6286_s1 + $0x1730] sm:$0xff]  ;;  %v2597_v4 = vld [vmem:[%s6287_s0 + $0x40] sm:$0xff] }
 0x20a   :  { %2423 = vmatpush1.msra.mxu1 %v857_v5  ;;  %2335 = vmatprep.subr.mxu0 %v594_v6  ;;  %v1041_v41 = vld [vmem:[%s6286_s1 + $0x1f30] sm:$0xff]  ;;  %v778_v43 = vld [vmem:[%s6286_s1 + $0x16f8] sm:$0xff] }
 0x20b   :  { %2424 = vmatprep.subr.mxu1 %v850_v30  ;;  %2336 = vmatpush1.msra.mxu0 %v593_v53  ;;  %v1034_v44 = vld [vmem:[%s6286_s1 + $0x1ef8] sm:$0xff]  ;;  %v777_v24 = vld [vmem:[%s6286_s1 + $0x16f0] sm:$0xff] }
 0x20c   :  { %2425 = vmatpush1.msra.mxu1 %v849_v7  ;;  %2337 = vmatprep.subr.mxu0 %v586_v10  ;;  %v1033_v29 = vld [vmem:[%s6286_s1 + $0x1ef0] sm:$0xff]  ;;  %v770_v46 = vld [vmem:[%s6286_s1 + $0x16b8] sm:$0xff]  ;;  %v2599_v10 = vld [vmem:[%s6287_s0 + $0x88] sm:$0xff] }
 0x20d   :  { %2426 = vmatprep.subr.mxu1 %v842_v62  ;;  %2338 = vmatpush1.msra.mxu0 %v585_v63  ;;  %v1026_v47 = vld [vmem:[%s6286_s1 + $0x1eb8] sm:$0xff]  ;;  %v769_v48 = vld [vmem:[%s6286_s1 + $0x16b0] sm:$0xff] }
 0x20e   :  { %2427 = vmatpush1.msra.mxu1 %v841_v11  ;;  %2339 = vmatprep.subr.mxu0 %v578_v54  ;;  %v1025_v49 = vld [vmem:[%s6286_s1 + $0x1eb0] sm:$0xff]  ;;  %v762_v39 = vld [vmem:[%s6286_s1 + $0x1678] sm:$0xff] }
 0x20f   :  { %2428 = vmatprep.subr.mxu1 %v834_v3  ;;  %2340 = vmatpush1.msra.mxu0 %v577_v12  ;;  %v1018_v50 = vld [vmem:[%s6286_s1 + $0x1e78] sm:$0xff]  ;;  %v761_v35 = vld [vmem:[%s6286_s1 + $0x1670] sm:$0xff]  ;;  %v2601_v12 = vld [vmem:[%s6287_s0 + $0x80] sm:$0xff] }
 0x210   :  { %2429 = vmatpush1.msra.mxu1 %v833_v13  ;;  %2341 = vmatprep.subr.mxu0 %v570_v15  ;;  %v1017_v36 = vld [vmem:[%s6286_s1 + $0x1e70] sm:$0xff]  ;;  %v754_v51 = vld [vmem:[%s6286_s1 + $0x1638] sm:$0xff] }
 0x211   :  { %2430 = vmatprep.subr.mxu1 %v826_v16  ;;  %2342 = vmatpush1.msra.mxu0 %v569_v17  ;;  %v1010_v52 = vld [vmem:[%s6286_s1 + $0x1e38] sm:$0xff]  ;;  %v753_v55 = vld [vmem:[%s6286_s1 + $0x1630] sm:$0xff] }
 0x212   :  { %2431 = vmatpush1.msra.mxu1 %v825_v18  ;;  %2343 = vmatprep.subr.mxu0 %v562_v22  ;;  %v1009_v58 = vld [vmem:[%s6286_s1 + $0x1e30] sm:$0xff]  ;;  %v746_v59 = vld [vmem:[%s6286_s1 + $0x15f8] sm:$0xff]  ;;  %v2603_v22 = vld [vmem:[%s6287_s0 + $0xc8] sm:$0xff] }
 0x213   :  { %2432 = vmatprep.subr.mxu1 %v818_v23  ;;  %2344 = vmatpush1.msra.mxu0 %v561_v25  ;;  %v1002_v42 = vld [vmem:[%s6286_s1 + $0x1df8] sm:$0xff]  ;;  %v745_v45 = vld [vmem:[%s6286_s1 + $0x15f0] sm:$0xff] }
 0x214   :  { %2433 = vmatpush1.msra.mxu1 %v817_v26  ;;  %2345 = vmatprep.subr.mxu0 %v810_v27  ;;  %v1001_v60 = vld [vmem:[%s6286_s1 + $0x1df0] sm:$0xff]  ;;  %v2596_v0 = vld [vmem:[%s6287_s0 + $0x58] sm:$0xff] }
 0x215   :  { %2434 = vmatprep.subr.mxu1 %v1066_v28  ;;  %2346 = vmatpush2.msra.mxu0 %v809_v31  ;;  %v738_v1 = vld [vmem:[%s6286_s1 + $0x15b8] sm:$0xff]  ;;  %v737_v2 = vld [vmem:[%s6286_s1 + $0x15b0] sm:$0xff]  ;;  %v2605_v31 = vld [vmem:[%s6287_s0 + $0xc0] sm:$0xff] }
 0x216   :  { %2435 = vmatpush2.msra.mxu1 %v1065_v32  ;;  %2347 = vmatprep.subr.mxu0 %v802_v20  ;;  %v994_v56 = vld [vmem:[%s6286_s1 + $0x1db8] sm:$0xff]  ;;  %v993_v57 = vld [vmem:[%s6286_s1 + $0x1db0] sm:$0xff] }
 0x217   :  { %2436 = vmatprep.subr.mxu1 %v1058_v21  ;;  %2348 = vmatpush2.msra.mxu0 %v801_v33  ;;  %v2598_v5 = vld [vmem:[%s6287_s0 + $0x50] sm:$0xff]  ;;  %v730_v6 = vld [vmem:[%s6286_s1 + $0x1578] sm:$0xff] }
 0x218   :  { %2437 = vmatpush2.msra.mxu1 %v1057_v14  ;;  %2349 = vmatprep.subr.mxu0 %v794_v19  ;;  %v986_v30 = vld [vmem:[%s6286_s1 + $0x1d78] sm:$0xff]  ;;  %v729_v53 = vld [vmem:[%s6286_s1 + $0x1570] sm:$0xff] }
 0x219   :  { %2438 = vmatprep.subr.mxu1 %v1050_v34  ;;  %2350 = vmatpush2.msra.mxu0 %v793_v37  ;;  %v985_v7 = vld [vmem:[%s6286_s1 + $0x1d70] sm:$0xff]  ;;  %v2600_v62 = vld [vmem:[%s6287_s0 + $0x98] sm:$0xff] }
 0x21a   :  { %2439 = vmatpush2.msra.mxu1 %v1049_v8  ;;  %2351 = vmatprep.subr.mxu0 %v786_v9  ;;  %v722_v63 = vld [vmem:[%s6286_s1 + $0x1538] sm:$0xff]  ;;  %v721_v54 = vld [vmem:[%s6286_s1 + $0x1530] sm:$0xff]  ;;  %v2607_v9 = vld [vmem:[%s6287_s0 + $0x28] sm:$0xff] }
 0x21b   :  { %2440 = vmatprep.subr.mxu1 %v1042_v40  ;;  %2352 = vmatpush2.msra.mxu0 %v785_v38  ;;  %v978_v11 = vld [vmem:[%s6286_s1 + $0x1d38] sm:$0xff]  ;;  %v977_v3 = vld [vmem:[%s6286_s1 + $0x1d30] sm:$0xff]  ;;  %v2609_v38 = vld [vmem:[%s6287_s0 + $0x20] sm:$0xff] }
 0x21c   :  { %2441 = vmatpush2.msra.mxu1 %v1041_v41  ;;  %2353 = vmatprep.subr.mxu0 %v778_v43  ;;  %v2602_v13 = vld [vmem:[%s6287_s0 + $0x90] sm:$0xff]  ;;  %v714_v15 = vld [vmem:[%s6286_s1 + $0x14f8] sm:$0xff]  ;;  %v2611_v43 = vld [vmem:[%s6287_s0 + $0x68] sm:$0xff] }
 0x21d   :  { %2442 = vmatprep.subr.mxu1 %v1034_v44  ;;  %2354 = vmatpush2.msra.mxu0 %v777_v24  ;;  %v970_v16 = vld [vmem:[%s6286_s1 + $0x1cf8] sm:$0xff]  ;;  %v713_v17 = vld [vmem:[%s6286_s1 + $0x14f0] sm:$0xff]  ;;  %v2613_v24 = vld [vmem:[%s6287_s0 + $0x60] sm:$0xff] }
 0x21e   :  { %2443 = vmatpush2.msra.mxu1 %v1033_v29  ;;  %2355 = vmatprep.subr.mxu0 %v770_v46  ;;  %v969_v18 = vld [vmem:[%s6286_s1 + $0x1cf0] sm:$0xff]  ;;  %v2604_v23 = vld [vmem:[%s6287_s0 + $0xd8] sm:$0xff]  ;;  %v2615_v46 = vld [vmem:[%s6287_s0 + $0xa8] sm:$0xff] }
 0x21f   :  { %2444 = vmatprep.subr.mxu1 %v1026_v47  ;;  %2356 = vmatpush2.msra.mxu0 %v769_v48  ;;  %v706_v25 = vld [vmem:[%s6286_s1 + $0x14b8] sm:$0xff]  ;;  %v705_v27 = vld [vmem:[%s6286_s1 + $0x14b0] sm:$0xff]  ;;  %v2617_v48 = vld [vmem:[%s6287_s0 + $0xa0] sm:$0xff] }
 0x220   :  { %2445 = vmatpush2.msra.mxu1 %v1025_v49  ;;  %2357 = vmatprep.subr.mxu0 %v762_v39  ;;  %v962_v26 = vld [vmem:[%s6286_s1 + $0x1cb8] sm:$0xff]  ;;  %v961_v28 = vld [vmem:[%s6286_s1 + $0x1cb0] sm:$0xff]  ;;  %v2619_v39 = vld [vmem:[%s6287_s0 + $0xe8] sm:$0xff] }
 0x221   :  { %2446 = vmatprep.subr.mxu1 %v1018_v50  ;;  %2358 = vmatpush2.msra.mxu0 %v761_v35  ;;  %v2606_v32 = vld [vmem:[%s6287_s0 + $0xd0] sm:$0xff]  ;;  %v698_v20 = vld [vmem:[%s6286_s1 + $0x1478] sm:$0xff]  ;;  %v2621_v35 = vld [vmem:[%s6287_s0 + $0xe0] sm:$0xff] }
 0x222   :  { %2447 = vmatpush2.msra.mxu1 %v1017_v36  ;;  %2359 = vmatprep.subr.mxu0 %v754_v51  ;;  %v954_v21 = vld [vmem:[%s6286_s1 + $0x1c78] sm:$0xff]  ;;  %v697_v33 = vld [vmem:[%s6286_s1 + $0x1470] sm:$0xff] }
 0x223   :  { %2448 = vmatprep.subr.mxu1 %v1010_v52  ;;  %2360 = vmatpush2.msra.mxu0 %v753_v55  ;;  %v953_v14 = vld [vmem:[%s6286_s1 + $0x1c70] sm:$0xff]  ;;  %v690_v19 = vld [vmem:[%s6286_s1 + $0x1438] sm:$0xff]  ;;  %v1845_v51 = vpop.f32.mrf.mxu0 }
 0x224   :  { %2449 = vmatpush2.msra.mxu1 %v1009_v58  ;;  %2361 = vmatprep.subr.mxu0 %v746_v59  ;;  %v946_v34 = vld [vmem:[%s6286_s1 + $0x1c38] sm:$0xff]  ;;  %v689_v37 = vld [vmem:[%s6286_s1 + $0x1430] sm:$0xff]  ;;  %v1934_v52 = vpop.f32.mrf.mxu1 }
 0x225   :  { %2450 = vmatprep.subr.mxu1 %v1002_v42  ;;  %2205 = vmatprep.mubr.f32.mxu0 %v2595_v61  ;;  %v945_v8 = vld [vmem:[%s6286_s1 + $0x1c30] sm:$0xff]  ;;  %v2608_v40 = vld [vmem:[%s6287_s0 + $0x38] sm:$0xff]  ;;  %v1847_v55 = vpop.f32.mrf.mxu0 }
 0x226   :  { %2294 = vmatprep.mubr.f32.mxu1 %v2596_v0  ;;  %2362 = vmatpush2.msra.mxu0 %v745_v45  ;;  %v2610_v41 = vld [vmem:[%s6287_s0 + $0x30] sm:$0xff]  ;;  %v2612_v44 = vld [vmem:[%s6287_s0 + $0x78] sm:$0xff]  ;;  %v1936_v58 = vpop.f32.mrf.mxu1 }
 0x227   :  { %2451 = vmatpush2.msra.mxu1 %v1001_v60  ;;  %2206 = vmatmul.mubr.f32.gmra.mxu0 %v2597_v4  ;;  %v2614_v29 = vld [vmem:[%s6287_s0 + $0x70] sm:$0xff]  ;;  %v2616_v47 = vld [vmem:[%s6287_s0 + $0xb8] sm:$0xff] }
 0x228   :  { %2295 = vmatmul.mubr.f32.gmra.mxu1 %v2598_v5  ;;  %2363 = vmatprep.subr.mxu0 %v738_v1  ;;  %v2618_v49 = vld [vmem:[%s6287_s0 + $0xb0] sm:$0xff]  ;;  %v2620_v50 = vld [vmem:[%s6287_s0 + $0xf8] sm:$0xff]  ;;  %v1935_v5 = vadd.f32 %v1934_v52, %v1845_v51 }
 0x229   :  { %2452 = vmatprep.subr.mxu1 %v994_v56  ;;  %2364 = vmatpush2.msra.mxu0 %v737_v2  ;;  %v2622_v36 = vld [vmem:[%s6287_s0 + $0xf0] sm:$0xff] }
 0x22a   :  { %2453 = vmatpush2.msra.mxu1 %v993_v57  ;;  %2365 = vmatprep.subr.mxu0 %v730_v6 }
 0x22b   :  { %2454 = vmatprep.subr.mxu1 %v986_v30  ;;  %2211 = vmatprep.mubr.f32.mxu0 %v2599_v10 }
 0x22c   :  { %2300 = vmatprep.mubr.f32.mxu1 %v2600_v62  ;;  %2366 = vmatpush2.msra.mxu0 %v729_v53  ;;  %v1937_v53 = vadd.f32 %v1936_v58, %v1847_v55 }
 0x22d   :  { %2455 = vmatpush2.msra.mxu1 %v985_v7  ;;  %2212 = vmatmul.mubr.f32.gmra.mxu0 %v2601_v12 }
 0x22e   :  { %2301 = vmatmul.mubr.f32.gmra.mxu1 %v2602_v13  ;;  %2367 = vmatprep.subr.mxu0 %v722_v63 }
 0x22f   :  { %2456 = vmatprep.subr.mxu1 %v978_v11  ;;  %2368 = vmatpush2.msra.mxu0 %v721_v54 }
 0x230   :  { %2457 = vmatpush2.msra.mxu1 %v977_v3  ;;  %2369 = vmatprep.subr.mxu0 %v714_v15 }
 0x231   :  { %2458 = vmatprep.subr.mxu1 %v970_v16  ;;  %2217 = vmatprep.mubr.f32.mxu0 %v2603_v22 }
 0x232   :  { %2306 = vmatprep.mubr.f32.mxu1 %v2604_v23  ;;  %2370 = vmatpush2.msra.mxu0 %v713_v17 }
 0x233   :  { %2459 = vmatpush2.msra.mxu1 %v969_v18  ;;  %2218 = vmatmul.mubr.f32.gmra.mxu0 %v2605_v31 }
 0x234   :  { %2307 = vmatmul.mubr.f32.gmra.mxu1 %v2606_v32  ;;  %2371 = vmatprep.subr.mxu0 %v706_v25 }
 0x235   :  { %2460 = vmatprep.subr.mxu1 %v962_v26  ;;  %2372 = vmatpush2.msra.mxu0 %v705_v27 }
 0x236   :  { %2461 = vmatpush2.msra.mxu1 %v961_v28  ;;  %2373 = vmatprep.subr.mxu0 %v698_v20 }
 0x237   :  { %2462 = vmatprep.subr.mxu1 %v954_v21  ;;  %2374 = vmatpush2.msra.mxu0 %v697_v33 }
 0x238   :  { %2463 = vmatpush2.msra.mxu1 %v953_v14  ;;  %2375 = vmatprep.subr.mxu0 %v690_v19 }
 0x239   :  { %2464 = vmatprep.subr.mxu1 %v946_v34  ;;  %2376 = vmatpush2.msra.mxu0 %v689_v37 }
 0x23a   :  { %2377 = vmatprep.mubr.f32.mxu0 %v2607_v9  ;;  %2465 = vmatpush2.msra.mxu1 %v945_v8 }
 0x23b   :  { %2466 = vmatprep.mubr.f32.mxu1 %v2608_v40  ;;  %2378 = vmatmul.mubr.f32.vlgmr.msra.gmra.mxu0 %v2609_v38 }
 0x23c   :  { %2467 = vmatmul.mubr.f32.vlgmr.msra.gmra.mxu1 %v2610_v41  ;;  %2383 = vmatprep.mubr.f32.mxu0 %v2611_v43 }
 0x23d   :  { %2472 = vmatprep.mubr.f32.mxu1 %v2612_v44 }
 0x23f   :  { %2384 = vmatmul.mubr.f32.gmra.mxu0 %v2613_v24 }
 0x240   :  { %2473 = vmatmul.mubr.f32.gmra.mxu1 %v2614_v29  ;;  %2389 = vmatprep.mubr.f32.mxu0 %v2615_v46 }
 0x241   :  { %2478 = vmatprep.mubr.f32.mxu1 %v2616_v47 }
 0x243   :  { %2390 = vmatmul.mubr.f32.gmra.mxu0 %v2617_v48 }
 0x244   :  { %2479 = vmatmul.mubr.f32.gmra.mxu1 %v2618_v49  ;;  %2395 = vmatprep.mubr.f32.mxu0 %v2619_v39 }
 0x245   :  { %2484 = vmatprep.mubr.f32.mxu1 %v2620_v50 }
 0x247   :  { %2396 = vmatmul.mubr.f32.gmra.mxu0 %v2621_v35 }
 0x248   :  { %2485 = vmatmul.mubr.f32.gmra.mxu1 %v2622_v36 }
 0x258   :  { %v1851_v59 = vpop.f32.mrf.mxu0 }
 0x259   :  { %v1940_v42 = vpop.f32.mrf.mxu1 }
 0x25a   :  { %v1853_v45 = vpop.f32.mrf.mxu0  ;;  %v1941_v3 = vadd.f32 %v1940_v42, %v1851_v59 }
 0x25b   :  { %v1942_v60 = vpop.f32.mrf.mxu1 }
 0x25c   :  { %v1943_v15 = vadd.f32 %v1942_v60, %v1853_v45 }
 0x25e   :  { %v1857_v61 = vpop.f32.mrf.mxu0 }
 0x25f   :  { %v1946_v0 = vpop.f32.mrf.mxu1 }
 0x260   :  { %v1859_v1 = vpop.f32.mrf.mxu0  ;;  %v1947_v23 = vadd.f32 %v1946_v0, %v1857_v61 }
 0x261   :  { %v1948_v56 = vpop.f32.mrf.mxu1 }
 0x262   :  { %v1949_v28 = vadd.f32 %v1948_v56, %v1859_v1 }
 0x264   :  { %v1863_v2 = vpop.f32.mrf.mxu0 }
 0x265   :  { %v1952_v57 = vpop.f32.mrf.mxu1 }
 0x266   :  { %v1865_v4 = vpop.f32.mrf.mxu0  ;;  %v1953_v14 = vadd.f32 %v1952_v57, %v1863_v2 }
 0x267   :  { %v1954_v6 = vpop.f32.mrf.mxu1 }
 0x268   :  { %v1955_v8 = vadd.f32 %v1954_v6, %v1865_v4 }
 0x26b   :  { %v2023_v30 = vpop.f32.mrf.mxu0 }
 0x26c   :  { %v2024_v7 = vadd.f32 %v2023_v30, %v1935_v5 }
 0x26d   :  { %v2112_v10 = vpop.f32.mrf.mxu1  ;;  %v2025_v62 = vpop.f32.mrf.mxu0 }
 0x26e   :  { %v2113_v63 = vadd.f32 %v2112_v10, %v2024_v7  ;;  %v2026_v11 = vadd.f32 %v2025_v62, %v1937_v53 }
 0x26f   :  { %v2114_v54 = vpop.f32.mrf.mxu1 }
 0x270   :  { %2495 = vst [vmem:[%s6288_s2 + $0x20] sm:$0xff] %v2113_v63  ;;  %v2115_v12 = vadd.f32 %v2114_v54, %v2026_v11 }
 0x271   :  { %v2029_v13 = vpop.f32.mrf.mxu0 }
 0x272   :  { %2496 = vst [vmem:[%s6288_s2 + $0x28] sm:$0xff] %v2115_v12  ;;  %v2030_v16 = vadd.f32 %v2029_v13, %v1941_v3 }
 0x273   :  { %v2031_v17 = vpop.f32.mrf.mxu0 }
 0x274   :  { %v2032_v18 = vadd.f32 %v2031_v17, %v1943_v15  ;;  %v2118_v22 = vpop.f32.mrf.mxu1 }
 0x275   :  { %v2119_v25 = vadd.f32 %v2118_v22, %v2030_v16 }
 0x276   :  { %v2120_v27 = vpop.f32.mrf.mxu1 }
 0x277   :  { %v2035_v26 = vpop.f32.mrf.mxu0  ;;  %2503 = vst [vmem:[%s6288_s2 + $0x60] sm:$0xff] %v2119_v25  ;;  %v2121_v32 = vadd.f32 %v2120_v27, %v2032_v18 }
 0x278   :  { %v2036_v31 = vadd.f32 %v2035_v26, %v1947_v23 }
 0x279   :  { %v2037_v20 = vpop.f32.mrf.mxu0  ;;  %2504 = vst [vmem:[%s6288_s2 + $0x68] sm:$0xff] %v2121_v32 }
 0x27a   :  { %v2038_v21 = vadd.f32 %v2037_v20, %v1949_v28  ;;  %v2124_v33 = vpop.f32.mrf.mxu1 }
 0x27b   :  { %v2125_v19 = vadd.f32 %v2124_v33, %v2036_v31 }
 0x27c   :  { %v2126_v37 = vpop.f32.mrf.mxu1 }
 0x27d   :  { %v2041_v34 = vpop.f32.mrf.mxu0  ;;  %2511 = vst [vmem:[%s6288_s2 + $0xa0] sm:$0xff] %v2125_v19  ;;  %v2127_v40 = vadd.f32 %v2126_v37, %v2038_v21 }
 0x27e   :  { %v2042_v9 = vadd.f32 %v2041_v34, %v1953_v14 }
 0x27f   :  { %v2043_v38 = vpop.f32.mrf.mxu0  ;;  %2512 = vst [vmem:[%s6288_s2 + $0xa8] sm:$0xff] %v2127_v40 }
 0x280   :  { %v2044_v41 = vadd.f32 %v2043_v38, %v1955_v8  ;;  %v2130_v43 = vpop.f32.mrf.mxu1 }
 0x281   :  { %v2131_v44 = vadd.f32 %v2130_v43, %v2042_v9 }
 0x282   :  { %v2132_v24 = vpop.f32.mrf.mxu1 }
 0x283   :  { %2519 = vst [vmem:[%s6288_s2 + $0xe0] sm:$0xff] %v2131_v44  ;;  %v2133_v29 = vadd.f32 %v2132_v24, %v2044_v41 }
 0x285   :  { %2520 = vst [vmem:[%s6288_s2 + $0xe8] sm:$0xff] %v2133_v29 }
 0x2b3   :  { %v2201_v46 = vpop.f32.mrf.mxu0 }
 0x2b4   :  { %v2290_v47 = vpop.f32.mrf.mxu1 }
 0x2b5   :  { %v2203_v48 = vpop.f32.mrf.mxu0  ;;  %v2291_v61 = vadd.f32 %v2290_v47, %v2201_v46 }
 0x2b6   :  { %v2292_v49 = vpop.f32.mrf.mxu1 }
 0x2b7   :  { %v2293_v56 = vadd.f32 %v2292_v49, %v2203_v48 }
 0x2e7   :  { %v2207_v39 = vpop.f32.mrf.mxu0 }
 0x2e8   :  { %v2296_v50 = vpop.f32.mrf.mxu1 }
 0x2e9   :  { %v2209_v35 = vpop.f32.mrf.mxu0  ;;  %v2297_v5 = vadd.f32 %v2296_v50, %v2207_v39 }
 0x2ea   :  { %v2298_v36 = vpop.f32.mrf.mxu1 }
 0x2eb   :  { %v2299_v10 = vadd.f32 %v2298_v36, %v2209_v35 }
 0x2ed   :  { %v2213_v51 = vpop.f32.mrf.mxu0 }
 0x2ee   :  { %v2302_v52 = vpop.f32.mrf.mxu1 }
 0x2ef   :  { %v2215_v55 = vpop.f32.mrf.mxu0  ;;  %v2303_v3 = vadd.f32 %v2302_v52, %v2213_v51 }
 0x2f0   :  { %v2304_v58 = vpop.f32.mrf.mxu1 }
 0x2f1   :  { %v2305_v17 = vadd.f32 %v2304_v58, %v2215_v55 }
 0x2f3   :  { %v2219_v59 = vpop.f32.mrf.mxu0 }
 0x2f4   :  { %v2308_v42 = vpop.f32.mrf.mxu1 }
 0x2f5   :  { %v2221_v45 = vpop.f32.mrf.mxu0  ;;  %v2309_v26 = vadd.f32 %v2308_v42, %v2219_v59 }
 0x2f6   :  { %v2310_v60 = vpop.f32.mrf.mxu1 }
 0x2f7   :  { %v2311_v20 = vadd.f32 %v2310_v60, %v2221_v45 }
 0x2fb   :  { %v2379_v0 = vpop.f32.mrf.mxu0 }
 0x2fc   :  { %v2468_v1 = vpop.f32.mrf.mxu1  ;;  %v2380_v2 = vadd.f32 %v2379_v0, %v2291_v61 }
 0x2fd   :  { %v2381_v57 = vpop.f32.mrf.mxu0 }
 0x2fe   :  { %v2470_v4 = vpop.f32.mrf.mxu1  ;;  %v2469_v6 = vadd.f32 %v2468_v1, %v2380_v2  ;;  %v2382_v30 = vadd.f32 %v2381_v57, %v2293_v56 }
 0x2ff   :  { %v2385_v53 = vpop.f32.mrf.mxu0 }
 0x300   :  { %v2474_v7 = vpop.f32.mrf.mxu1  ;;  %2497 = vst [vmem:[%s6288_s2 + $0x30] sm:$0xff] %v2469_v6  ;;  %v2471_v62 = vadd.f32 %v2470_v4, %v2382_v30  ;;  %v2386_v63 = vadd.f32 %v2385_v53, %v2297_v5 }
 0x301   :  { %v2387_v11 = vpop.f32.mrf.mxu0 }
 0x302   :  { %v2476_v54 = vpop.f32.mrf.mxu1  ;;  %2498 = vst [vmem:[%s6288_s2 + $0x38] sm:$0xff] %v2471_v62  ;;  %v2475_v12 = vadd.f32 %v2474_v7, %v2386_v63  ;;  %v2388_v13 = vadd.f32 %v2387_v11, %v2299_v10 }
 0x303   :  { %v2391_v15 = vpop.f32.mrf.mxu0 }
 0x304   :  { %v2480_v16 = vpop.f32.mrf.mxu1  ;;  %2505 = vst [vmem:[%s6288_s2 + $0x70] sm:$0xff] %v2475_v12  ;;  %v2477_v18 = vadd.f32 %v2476_v54, %v2388_v13  ;;  %v2392_v22 = vadd.f32 %v2391_v15, %v2303_v3 }
 0x305   :  { %v2393_v23 = vpop.f32.mrf.mxu0 }
 0x306   :  { %v2482_v25 = vpop.f32.mrf.mxu1  ;;  %2506 = vst [vmem:[%s6288_s2 + $0x78] sm:$0xff] %v2477_v18  ;;  %v2481_v27 = vadd.f32 %v2480_v16, %v2392_v22  ;;  %v2394_v28 = vadd.f32 %v2393_v23, %v2305_v17 }
 0x307   :  { %v2397_v31 = vpop.f32.mrf.mxu0 }
 0x308   :  { %v2486_v32 = vpop.f32.mrf.mxu1  ;;  %2513 = vst [vmem:[%s6288_s2 + $0xb0] sm:$0xff] %v2481_v27  ;;  %v2483_v21 = vadd.f32 %v2482_v25, %v2394_v28  ;;  %v2398_v33 = vadd.f32 %v2397_v31, %v2309_v26 }
 0x309   :  { %v2399_v14 = vpop.f32.mrf.mxu0 }
 0x30a   :  { %2514 = vst [vmem:[%s6288_s2 + $0xb8] sm:$0xff] %v2483_v21  ;;  %v2487_v19 = vadd.f32 %v2486_v32, %v2398_v33  ;;  %v2400_v34 = vadd.f32 %v2399_v14, %v2311_v20  ;;  %v2488_v37 = vpop.f32.mrf.mxu1 }
 0x30c   :  { %2521 = vst [vmem:[%s6288_s2 + $0xf0] sm:$0xff] %v2487_v19  ;;  %v2489_v8 = vadd.f32 %v2488_v37, %v2400_v34 }
 0x30e   :  { %2522 = vst [vmem:[%s6288_s2 + $0xf8] sm:$0xff] %v2489_v8 }

</bundles_post_ra>
